<compile_context>
chip_gen: v6e
topology: v6e:2x2x1
jax: 0.10.0
libtpu: 0.0.40
codegen_flags: <defaults>
</compile_context>

<pallas_src>
import jax
import jax.numpy as jnp
from jax.experimental import pallas as pl
from jax.experimental.pallas import tpu as pltpu

# ---------------- scaled-down ViT-L/16-style configuration ----------------
IMG = 32            # (ViT-L/16: 224)
PATCH = 16          # same patch size as ViT-L/16
C_IN = 3
HIDDEN = 32         # (ViT-L/16: 1024)
LAYERS = 2          # (ViT-L/16: 24)
HEADS = 4           # (ViT-L/16: 16)
HEAD_DIM = HIDDEN // HEADS
MLP_DIM = 64        # (ViT-L/16: 4096)
HEAD_HIDDEN = 64    # custom head hidden (original: 512)
NUM_CLASSES = 16    # original default: 1200
BATCH = 2
N_PATCH = (IMG // PATCH) ** 2
SEQ = N_PATCH + 1
SEQ_PAD = 8         # sublane-aligned padded sequence length (>= SEQ, multiple of 8)
PATCH_DIM = C_IN * PATCH * PATCH
LN_EPS = 1e-6       # torchvision ViT uses LayerNorm(eps=1e-6)

# kernel input layout: [patches, conv_w_t, conv_b, cls_pos0, pos_rest,
#                       12 refs per encoder layer,
#                       ln_g, ln_b, head1_w_t, head1_b, head2_w_t, head2_b]
N_IN = 5 + 12 * LAYERS + 6


# ------------------------- fully fused forward kernel -------------------------
def _fused_vit_kernel(*refs):
    (patches_ref, conv_w_ref, conv_b_ref, cls_pos0_ref, pos_rest_ref) = refs[:5]
    (ln_g_ref, ln_b_ref, h1_w_ref, h1_b_ref, h2_w_ref, h2_b_ref) = refs[5 + 12 * LAYERS:N_IN]
    logits_ref = refs[N_IN]
    h_ref, attn_ref, qkv_ref, cls_ref = refs[N_IN + 1:]

    def layernorm(x, g_ref, b_ref):
        mu = jnp.mean(x, axis=-1, keepdims=True)
        var = jnp.mean(jnp.square(x - mu), axis=-1, keepdims=True)
        return (x - mu) * jax.lax.rsqrt(var + LN_EPS) * g_ref[...] + b_ref[...]

    # padded rows of the residual stream must be defined (VMEM scratch is uninitialized)
    h_ref[...] = jnp.zeros_like(h_ref)

    # ---- patch embedding (Conv2d k=s=16 == patch matmul) + class token + pos embedding ----
    # One matmul over ALL batch elements' patches at once.
    tok_all = (jnp.dot(patches_ref[...], conv_w_ref[...], preferred_element_type=jnp.float32)
               + conv_b_ref[...])                                              # (B*N_PATCH, HIDDEN)
    pos_rest = pos_rest_ref[...]                                               # (N_PATCH, HIDDEN)
    for b in range(BATCH):
        r0 = b * SEQ_PAD
        h_ref[pl.ds(r0, 1), :] = cls_pos0_ref[...]                             # cls_token + pos[0]
        h_ref[pl.ds(r0 + 1, N_PATCH), :] = tok_all[b * N_PATCH:(b + 1) * N_PATCH, :] + pos_rest
    # encoder dropout: identity (inference semantics)

    scale = 1.0 / (HEAD_DIM ** 0.5)
    # static additive mask that disables padded KEY positions (columns >= SEQ)
    col = jax.lax.broadcasted_iota(jnp.int32, (SEQ_PAD, SEQ_PAD), 1)
    key_neg = jnp.where(col < SEQ, 0.0, -1e30).astype(jnp.float32)

    # ---- pre-LN encoder layers (all state stays in VMEM) ----
    for l in range(LAYERS):
        (ln1_g, ln1_b, qkv_w, qkv_b, out_w, out_b,
         ln2_g, ln2_b, mlp_w1, mlp_b1, mlp_w2, mlp_b2) = refs[5 + 12 * l: 5 + 12 * (l + 1)]

        # ----- multi-head self-attention block -----
        h = h_ref[...]                                                         # (B*SEQ_PAD, HIDDEN)
        y = layernorm(h, ln1_g, ln1_b)
        qkv_ref[...] = (jnp.dot(y, qkv_w[...], preferred_element_type=jnp.float32)
                        + qkv_b[...])                                          # (B*SEQ_PAD, 3*HIDDEN)

        for b in range(BATCH):
            r0 = b * SEQ_PAD                                                   # sublane-aligned
            for hd in range(HEADS):
                q = qkv_ref[pl.ds(r0, SEQ_PAD), pl.ds(hd * HEAD_DIM, HEAD_DIM)]
                k = qkv_ref[pl.ds(r0, SEQ_PAD), pl.ds(HIDDEN + hd * HEAD_DIM, HEAD_DIM)]
                v = qkv_ref[pl.ds(r0, SEQ_PAD), pl.ds(2 * HIDDEN + hd * HEAD_DIM, HEAD_DIM)]
                # scores = (q * scale) @ k^T   (contract last dims, no explicit transpose)
                s = jax.lax.dot_general(q * scale, k, (((1,), (1,)), ((), ())),
                                        preferred_element_type=jnp.float32)    # (SEQ_PAD, SEQ_PAD)
                s = s + key_neg                                                # mask padded keys
                m = jnp.max(s, axis=-1, keepdims=True)
                p = jnp.exp(s - m)
                p = p * pl.reciprocal(jnp.sum(p, axis=-1, keepdims=True), approx=True)
                attn_ref[pl.ds(r0, SEQ_PAD), pl.ds(hd * HEAD_DIM, HEAD_DIM)] = jnp.dot(
                    p, v, preferred_element_type=jnp.float32)

        attn = (jnp.dot(attn_ref[...], out_w[...], preferred_element_type=jnp.float32)
                + out_b[...])
        h = h + attn                                                           # dropout: identity
        h_ref[...] = h

        # ----- MLP block -----
        y = layernorm(h, ln2_g, ln2_b)
        y = jnp.dot(y, mlp_w1[...], preferred_element_type=jnp.float32) + mlp_b1[...]
        # TODO(synk): torchvision nn.GELU defaults to the exact erf formulation;
        # using the tanh approximation here for guaranteed Mosaic lowering.
        y = jax.nn.gelu(y, approximate=True)
        y = jnp.dot(y, mlp_w2[...], preferred_element_type=jnp.float32) + mlp_b2[...]
        h_ref[...] = h + y                                                     # dropout: identity

    # ---- final LN (applied to class tokens only, which is all the head reads) ----
    for b in range(BATCH):
        cls_ref[pl.ds(b, 1), :] = h_ref[pl.ds(b * SEQ_PAD, 1), :]
    cls = layernorm(cls_ref[...], ln_g_ref, ln_b_ref)                          # (B, HIDDEN)

    # ---- custom classification head: Linear -> ReLU -> Dropout(identity) -> Linear ----
    y = jnp.dot(cls, h1_w_ref[...], preferred_element_type=jnp.float32) + h1_b_ref[...]
    y = jnp.maximum(y, 0.0)
    logits_ref[...] = (jnp.dot(y, h2_w_ref[...], preferred_element_type=jnp.float32)
                       + h2_b_ref[...])


# --------------------------- parameter creation ----------------------------
def init_params(key):
    """PyTorch-layout synthetic weights (Conv2d (O,C,kh,kw), Linear (out,in), etc.)."""
    def nrm(k, shape, scale=0.02):
        return scale * jax.random.normal(k, shape, dtype=jnp.float32)

    keys = iter(jax.random.split(key, 128))
    p = {
        "conv_w": nrm(next(keys), (HIDDEN, C_IN, PATCH, PATCH)),
        "conv_b": nrm(next(keys), (HIDDEN,)),
        "class_token": nrm(next(keys), (1, 1, HIDDEN)),
        "pos_embedding": nrm(next(keys), (1, SEQ, HIDDEN)),
        "layers": [],
    }
    for _ in range(LAYERS):
        p["layers"].append({
            "ln1_g": jnp.ones((HIDDEN,), jnp.float32),
            "ln1_b": jnp.zeros((HIDDEN,), jnp.float32),
            "qkv_w": nrm(next(keys), (3 * HIDDEN, HIDDEN)),  # MultiheadAttention in_proj
            "qkv_b": nrm(next(keys), (3 * HIDDEN,)),
            "out_w": nrm(next(keys), (HIDDEN, HIDDEN)),      # out_proj
            "out_b": nrm(next(keys), (HIDDEN,)),
            "ln2_g": jnp.ones((HIDDEN,), jnp.float32),
            "ln2_b": jnp.zeros((HIDDEN,), jnp.float32),
            "mlp_w1": nrm(next(keys), (MLP_DIM, HIDDEN)),
            "mlp_b1": nrm(next(keys), (MLP_DIM,)),
            "mlp_w2": nrm(next(keys), (HIDDEN, MLP_DIM)),
            "mlp_b2": nrm(next(keys), (HIDDEN,)),
        })
    p["ln_g"] = jnp.ones((HIDDEN,), jnp.float32)
    p["ln_b"] = jnp.zeros((HIDDEN,), jnp.float32)
    p["head1_w"] = nrm(next(keys), (HEAD_HIDDEN, HIDDEN))
    p["head1_b"] = nrm(next(keys), (HEAD_HIDDEN,))
    p["head2_w"] = nrm(next(keys), (NUM_CLASSES, HEAD_HIDDEN))
    p["head2_b"] = nrm(next(keys), (NUM_CLASSES,))
    return p


def pack_params(p):
    """One-time packing: pre-transpose / pre-reshape every weight into kernel layout."""
    flat = [
        p["conv_w"].reshape(HIDDEN, PATCH_DIM).T,                   # (PATCH_DIM, HIDDEN)
        p["conv_b"].reshape(1, HIDDEN),
        p["class_token"][0] + p["pos_embedding"][0, 0:1, :],        # cls + pos[0]  (1, HIDDEN)
        p["pos_embedding"][0, 1:, :],                               # pos[1:]       (N_PATCH, HIDDEN)
    ]
    for lp in p["layers"]:
        flat += [
            lp["ln1_g"].reshape(1, HIDDEN), lp["ln1_b"].reshape(1, HIDDEN),
            lp["qkv_w"].T, lp["qkv_b"].reshape(1, 3 * HIDDEN),
            lp["out_w"].T, lp["out_b"].reshape(1, HIDDEN),
            lp["ln2_g"].reshape(1, HIDDEN), lp["ln2_b"].reshape(1, HIDDEN),
            lp["mlp_w1"].T, lp["mlp_b1"].reshape(1, MLP_DIM),
            lp["mlp_w2"].T, lp["mlp_b2"].reshape(1, HIDDEN),
        ]
    flat += [
        p["ln_g"].reshape(1, HIDDEN), p["ln_b"].reshape(1, HIDDEN),
        p["head1_w"].T, p["head1_b"].reshape(1, HEAD_HIDDEN),
        p["head2_w"].T, p["head2_b"].reshape(1, NUM_CLASSES),
    ]
    return flat


# ------------------------------- forward -----------------------------------
def slug_classifier_forward(x, flat_params):
    """x: (B, 3, IMG, IMG) NCHW, flat_params: list from pack_params -> (B, NUM_CLASSES)."""
    B = x.shape[0]
    assert B == BATCH
    nh = IMG // PATCH

    # Patch extraction (pure layout glue, the only XLA op outside the fused kernel).
    patches = x.reshape(B, C_IN, nh, PATCH, nh, PATCH)
    patches = patches.transpose(0, 2, 4, 1, 3, 5).reshape(B * nh * nh, PATCH_DIM)

    inputs = [patches, *flat_params]
    return pl.pallas_call(
        _fused_vit_kernel,
        out_shape=jax.ShapeDtypeStruct((B, NUM_CLASSES), jnp.float32),
        grid=(1,),
        in_specs=[pl.BlockSpec(a.shape, lambda i: (0, 0)) for a in inputs],
        out_specs=pl.BlockSpec((B, NUM_CLASSES), lambda i: (0, 0)),
        scratch_shapes=[
            pltpu.VMEM((B * SEQ_PAD, HIDDEN), jnp.float32),      # residual stream h (padded)
            pltpu.VMEM((B * SEQ_PAD, HIDDEN), jnp.float32),      # attention context (padded)
            pltpu.VMEM((B * SEQ_PAD, 3 * HIDDEN), jnp.float32),  # qkv slab (padded)
            pltpu.VMEM((B, HIDDEN), jnp.float32),                # class-token rows
        ],
        compiler_params=pltpu.CompilerParams(dimension_semantics=("arbitrary",)),
    )(*inputs)


if __name__ == "__main__":
    key = jax.random.PRNGKey(0)
    xkey, pkey = jax.random.split(key)
    x = jax.random.normal(xkey, (BATCH, C_IN, IMG, IMG), dtype=jnp.float32)  # NCHW
    params = init_params(pkey)
    flat_params = pack_params(params)   # pre-transposed once, outside the forward

    logits = jax.jit(slug_classifier_forward)(x, flat_params)
    logits = jax.block_until_ready(logits)
    assert logits.shape == (BATCH, NUM_CLASSES)
    assert bool(jnp.all(jnp.isfinite(logits)))
    print("KERNEL_OK")
</pallas_src>

<mosaic_0001>
module attributes {stable_mosaic.version = 11 : i64} {
  func.func @_fused_vit_kernel(%arg0: i32, %arg1: memref<8x768xf32, #tpu.memory_space<vmem>>, %arg2: memref<768x32xf32, #tpu.memory_space<vmem>>, %arg3: memref<1x32xf32, #tpu.memory_space<vmem>>, %arg4: memref<1x32xf32, #tpu.memory_space<vmem>>, %arg5: memref<4x32xf32, #tpu.memory_space<vmem>>, %arg6: memref<1x32xf32, #tpu.memory_space<vmem>>, %arg7: memref<1x32xf32, #tpu.memory_space<vmem>>, %arg8: memref<32x96xf32, #tpu.memory_space<vmem>>, %arg9: memref<1x96xf32, #tpu.memory_space<vmem>>, %arg10: memref<32x32xf32, #tpu.memory_space<vmem>>, %arg11: memref<1x32xf32, #tpu.memory_space<vmem>>, %arg12: memref<1x32xf32, #tpu.memory_space<vmem>>, %arg13: memref<1x32xf32, #tpu.memory_space<vmem>>, %arg14: memref<32x64xf32, #tpu.memory_space<vmem>>, %arg15: memref<1x64xf32, #tpu.memory_space<vmem>>, %arg16: memref<64x32xf32, #tpu.memory_space<vmem>>, %arg17: memref<1x32xf32, #tpu.memory_space<vmem>>, %arg18: memref<1x32xf32, #tpu.memory_space<vmem>>, %arg19: memref<1x32xf32, #tpu.memory_space<vmem>>, %arg20: memref<32x96xf32, #tpu.memory_space<vmem>>, %arg21: memref<1x96xf32, #tpu.memory_space<vmem>>, %arg22: memref<32x32xf32, #tpu.memory_space<vmem>>, %arg23: memref<1x32xf32, #tpu.memory_space<vmem>>, %arg24: memref<1x32xf32, #tpu.memory_space<vmem>>, %arg25: memref<1x32xf32, #tpu.memory_space<vmem>>, %arg26: memref<32x64xf32, #tpu.memory_space<vmem>>, %arg27: memref<1x64xf32, #tpu.memory_space<vmem>>, %arg28: memref<64x32xf32, #tpu.memory_space<vmem>>, %arg29: memref<1x32xf32, #tpu.memory_space<vmem>>, %arg30: memref<1x32xf32, #tpu.memory_space<vmem>>, %arg31: memref<1x32xf32, #tpu.memory_space<vmem>>, %arg32: memref<32x64xf32, #tpu.memory_space<vmem>>, %arg33: memref<1x64xf32, #tpu.memory_space<vmem>>, %arg34: memref<64x16xf32, #tpu.memory_space<vmem>>, %arg35: memref<1x16xf32, #tpu.memory_space<vmem>>, %arg36: memref<2x16xf32, #tpu.memory_space<vmem>>, %arg37: memref<16x32xf32, #tpu.memory_space<vmem>>, %arg38: memref<16x32xf32, #tpu.memory_space<vmem>>, %arg39: memref<16x96xf32, #tpu.memory_space<vmem>>, %arg40: memref<2x32xf32, #tpu.memory_space<vmem>>) attributes {dimension_semantics = [#tpu.dimension_semantics<arbitrary>], iteration_bounds = array<i64: 1>, scalar_prefetch = 0 : i64, scratch_operands = 4 : i64, tpu.core_type = #tpu.core_type<tc>, window_params = [{pipeline_mode = #tpu.pipeline_mode<synchronous>, transform_indices = @transform_0, window_bounds = array<i64: 8, 768>}, {pipeline_mode = #tpu.pipeline_mode<synchronous>, transform_indices = @transform_1, window_bounds = array<i64: 768, 32>}, {pipeline_mode = #tpu.pipeline_mode<synchronous>, transform_indices = @transform_2, window_bounds = array<i64: 1, 32>}, {pipeline_mode = #tpu.pipeline_mode<synchronous>, transform_indices = @transform_3, window_bounds = array<i64: 1, 32>}, {pipeline_mode = #tpu.pipeline_mode<synchronous>, transform_indices = @transform_4, window_bounds = array<i64: 4, 32>}, {pipeline_mode = #tpu.pipeline_mode<synchronous>, transform_indices = @transform_5, window_bounds = array<i64: 1, 32>}, {pipeline_mode = #tpu.pipeline_mode<synchronous>, transform_indices = @transform_6, window_bounds = array<i64: 1, 32>}, {pipeline_mode = #tpu.pipeline_mode<synchronous>, transform_indices = @transform_7, window_bounds = array<i64: 32, 96>}, {pipeline_mode = #tpu.pipeline_mode<synchronous>, transform_indices = @transform_8, window_bounds = array<i64: 1, 96>}, {pipeline_mode = #tpu.pipeline_mode<synchronous>, transform_indices = @transform_9, window_bounds = array<i64: 32, 32>}, {pipeline_mode = #tpu.pipeline_mode<synchronous>, transform_indices = @transform_10, window_bounds = array<i64: 1, 32>}, {pipeline_mode = #tpu.pipeline_mode<synchronous>, transform_indices = @transform_11, window_bounds = array<i64: 1, 32>}, {pipeline_mode = #tpu.pipeline_mode<synchronous>, transform_indices = @transform_12, window_bounds = array<i64: 1, 32>}, {pipeline_mode = #tpu.pipeline_mode<synchronous>, transform_indices = @transform_13, window_bounds = array<i64: 32, 64>}, {pipeline_mode = #tpu.pipeline_mode<synchronous>, transform_indices = @transform_14, window_bounds = array<i64: 1, 64>}, {pipeline_mode = #tpu.pipeline_mode<synchronous>, transform_indices = @transform_15, window_bounds = array<i64: 64, 32>}, {pipeline_mode = #tpu.pipeline_mode<synchronous>, transform_indices = @transform_16, window_bounds = array<i64: 1, 32>}, {pipeline_mode = #tpu.pipeline_mode<synchronous>, transform_indices = @transform_17, window_bounds = array<i64: 1, 32>}, {pipeline_mode = #tpu.pipeline_mode<synchronous>, transform_indices = @transform_18, window_bounds = array<i64: 1, 32>}, {pipeline_mode = #tpu.pipeline_mode<synchronous>, transform_indices = @transform_19, window_bounds = array<i64: 32, 96>}, {pipeline_mode = #tpu.pipeline_mode<synchronous>, transform_indices = @transform_20, window_bounds = array<i64: 1, 96>}, {pipeline_mode = #tpu.pipeline_mode<synchronous>, transform_indices = @transform_21, window_bounds = array<i64: 32, 32>}, {pipeline_mode = #tpu.pipeline_mode<synchronous>, transform_indices = @transform_22, window_bounds = array<i64: 1, 32>}, {pipeline_mode = #tpu.pipeline_mode<synchronous>, transform_indices = @transform_23, window_bounds = array<i64: 1, 32>}, {pipeline_mode = #tpu.pipeline_mode<synchronous>, transform_indices = @transform_24, window_bounds = array<i64: 1, 32>}, {pipeline_mode = #tpu.pipeline_mode<synchronous>, transform_indices = @transform_25, window_bounds = array<i64: 32, 64>}, {pipeline_mode = #tpu.pipeline_mode<synchronous>, transform_indices = @transform_26, window_bounds = array<i64: 1, 64>}, {pipeline_mode = #tpu.pipeline_mode<synchronous>, transform_indices = @transform_27, window_bounds = array<i64: 64, 32>}, {pipeline_mode = #tpu.pipeline_mode<synchronous>, transform_indices = @transform_28, window_bounds = array<i64: 1, 32>}, {pipeline_mode = #tpu.pipeline_mode<synchronous>, transform_indices = @transform_29, window_bounds = array<i64: 1, 32>}, {pipeline_mode = #tpu.pipeline_mode<synchronous>, transform_indices = @transform_30, window_bounds = array<i64: 1, 32>}, {pipeline_mode = #tpu.pipeline_mode<synchronous>, transform_indices = @transform_31, window_bounds = array<i64: 32, 64>}, {pipeline_mode = #tpu.pipeline_mode<synchronous>, transform_indices = @transform_32, window_bounds = array<i64: 1, 64>}, {pipeline_mode = #tpu.pipeline_mode<synchronous>, transform_indices = @transform_33, window_bounds = array<i64: 64, 16>}, {pipeline_mode = #tpu.pipeline_mode<synchronous>, transform_indices = @transform_34, window_bounds = array<i64: 1, 16>}, {pipeline_mode = #tpu.pipeline_mode<synchronous>, transform_indices = @transform_35, window_bounds = array<i64: 2, 16>}]} {
    %cst = arith.constant 0.000000e+00 : f32
    %0 = vector.broadcast %cst : f32 to vector<16x32xf32>
    %c0 = arith.constant 0 : index
    %c0_0 = arith.constant 0 : index
    %1 = vector.load %arg37[%c0, %c0_0] : memref<16x32xf32, #tpu.memory_space<vmem>>, vector<16x32xf32>
    tpu.vector_store %arg37[%c0, %c0_0], %0 {strides = array<i32>} : memref<16x32xf32, #tpu.memory_space<vmem>>, vector<16x32xf32>,
    %c0_1 = arith.constant 0 : index
    %c0_2 = arith.constant 0 : index
    %2 = vector.load %arg1[%c0_1, %c0_2] : memref<8x768xf32, #tpu.memory_space<vmem>>, vector<8x768xf32>
    %c0_3 = arith.constant 0 : index
    %c0_4 = arith.constant 0 : index
    %3 = vector.load %arg2[%c0_3, %c0_4] : memref<768x32xf32, #tpu.memory_space<vmem>>, vector<768x32xf32>
    %cst_5 = arith.constant dense<0.000000e+00> : vector<8x32xf32>
    %4 = tpu.matmul %2, %3, %cst_5 {dimension_numbers = #tpu.dot_dimension_numbers<[1], [0], [0], [1], [0, 0, 1, 1], [], []>} : vector<8x768xf32>, vector<768x32xf32>, vector<8x32xf32> -> vector<8x32xf32>
    %c0_6 = arith.constant 0 : index
    %c0_7 = arith.constant 0 : index
    %5 = vector.load %arg3[%c0_6, %c0_7] : memref<1x32xf32, #tpu.memory_space<vmem>>, vector<1x32xf32>
    %6 = vector.broadcast %5 : vector<1x32xf32> to vector<8x32xf32>
    %7 = arith.addf %4, %6 : vector<8x32xf32>
    %c0_8 = arith.constant 0 : index
    %c0_9 = arith.constant 0 : index
    %8 = vector.load %arg5[%c0_8, %c0_9] : memref<4x32xf32, #tpu.memory_space<vmem>>, vector<4x32xf32>
    %c0_10 = arith.constant 0 : index
    %c0_11 = arith.constant 0 : index
    %9 = vector.load %arg4[%c0_10, %c0_11] : memref<1x32xf32, #tpu.memory_space<vmem>>, vector<1x32xf32>
    %c0_12 = arith.constant 0 : index
    %c0_13 = arith.constant 0 : index
    %10 = vector.load %arg37[%c0_12, %c0_13] : memref<16x32xf32, #tpu.memory_space<vmem>>, vector<1x32xf32>
    tpu.vector_store %arg37[%c0_12, %c0_13], %9 {strides = array<i32>} : memref<16x32xf32, #tpu.memory_space<vmem>>, vector<1x32xf32>,
    %11 = vector.extract_strided_slice %7 {offsets = [0, 0], sizes = [4, 32], strides = [1, 1]} : vector<8x32xf32> to vector<4x32xf32>
    %12 = arith.addf %11, %8 : vector<4x32xf32>
    %c1 = arith.constant 1 : index
    %c0_14 = arith.constant 0 : index
    %13 = vector.load %arg37[%c1, %c0_14] : memref<16x32xf32, #tpu.memory_space<vmem>>, vector<4x32xf32>
    tpu.vector_store %arg37[%c1, %c0_14], %12 {strides = array<i32>} : memref<16x32xf32, #tpu.memory_space<vmem>>, vector<4x32xf32>,
    %c0_15 = arith.constant 0 : index
    %c0_16 = arith.constant 0 : index
    %14 = vector.load %arg4[%c0_15, %c0_16] : memref<1x32xf32, #tpu.memory_space<vmem>>, vector<1x32xf32>
    %c8 = arith.constant 8 : index
    %c0_17 = arith.constant 0 : index
    %15 = vector.load %arg37[%c8, %c0_17] : memref<16x32xf32, #tpu.memory_space<vmem>>, vector<1x32xf32>
    tpu.vector_store %arg37[%c8, %c0_17], %14 {strides = array<i32>} : memref<16x32xf32, #tpu.memory_space<vmem>>, vector<1x32xf32>,
    %16 = vector.extract_strided_slice %7 {offsets = [4, 0], sizes = [4, 32], strides = [1, 1]} : vector<8x32xf32> to vector<4x32xf32>
    %17 = arith.addf %16, %8 : vector<4x32xf32>
    %c9 = arith.constant 9 : index
    %c0_18 = arith.constant 0 : index
    %18 = vector.load %arg37[%c9, %c0_18] : memref<16x32xf32, #tpu.memory_space<vmem>>, vector<4x32xf32>
    tpu.vector_store %arg37[%c9, %c0_18], %17 {strides = array<i32>} : memref<16x32xf32, #tpu.memory_space<vmem>>, vector<4x32xf32>,
    %19 = tpu.iota {dimensions = array<i32: 1>} : vector<8x8xi32>
    %c5_i32 = arith.constant 5 : i32
    %20 = vector.broadcast %c5_i32 : i32 to vector<8x8xi32>
    %21 = arith.cmpi slt, %19, %20 : vector<8x8xi32>
    %cst_19 = arith.constant 0.000000e+00 : f32
    %cst_20 = arith.constant -1.000000e+30 : f32
    %22 = vector.broadcast %cst_19 : f32 to vector<8x8xf32>
    %23 = vector.broadcast %cst_20 : f32 to vector<8x8xf32>
    %24 = arith.select %21, %22, %23 : vector<8x8xi1>, vector<8x8xf32>
    %c0_21 = arith.constant 0 : index
    %c0_22 = arith.constant 0 : index
    %25 = vector.load %arg37[%c0_21, %c0_22] : memref<16x32xf32, #tpu.memory_space<vmem>>, vector<16x32xf32>
    %cst_23 = arith.constant dense<0.000000e+00> : vector<16xf32>
    %26 = vector.multi_reduction <add>, %25, %cst_23 [1] : vector<16x32xf32> to vector<16xf32>
    %27 = vector.shape_cast %26 : vector<16xf32> to vector<16x1xf32>
    %cst_24 = arith.constant 3.200000e+01 : f32
    %28 = vector.broadcast %cst_24 : f32 to vector<16x1xf32>
    %29 = arith.divf %27, %28 : vector<16x1xf32>
    %30 = vector.broadcast %29 : vector<16x1xf32> to vector<16x32xf32>
    %31 = arith.subf %25, %30 : vector<16x32xf32>
    %32 = arith.mulf %31, %31 : vector<16x32xf32>
    %cst_25 = arith.constant dense<0.000000e+00> : vector<16xf32>
    %33 = vector.multi_reduction <add>, %32, %cst_25 [1] : vector<16x32xf32> to vector<16xf32>
    %34 = vector.shape_cast %33 : vector<16xf32> to vector<16x1xf32>
    %cst_26 = arith.constant 3.200000e+01 : f32
    %35 = vector.broadcast %cst_26 : f32 to vector<16x1xf32>
    %36 = arith.divf %34, %35 : vector<16x1xf32>
    %37 = vector.broadcast %29 : vector<16x1xf32> to vector<16x32xf32>
    %38 = arith.subf %25, %37 : vector<16x32xf32>
    %cst_27 = arith.constant 9.99999997E-7 : f32
    %39 = vector.broadcast %cst_27 : f32 to vector<16x1xf32>
    %40 = arith.addf %36, %39 : vector<16x1xf32>
    %41 = math.rsqrt %40 : vector<16x1xf32>
    %42 = vector.broadcast %41 : vector<16x1xf32> to vector<16x32xf32>
    %43 = arith.mulf %38, %42 : vector<16x32xf32>
    %c0_28 = arith.constant 0 : index
    %c0_29 = arith.constant 0 : index
    %44 = vector.load %arg6[%c0_28, %c0_29] : memref<1x32xf32, #tpu.memory_space<vmem>>, vector<1x32xf32>
    %45 = vector.broadcast %44 : vector<1x32xf32> to vector<16x32xf32>
    %46 = arith.mulf %43, %45 : vector<16x32xf32>
    %c0_30 = arith.constant 0 : index
    %c0_31 = arith.constant 0 : index
    %47 = vector.load %arg7[%c0_30, %c0_31] : memref<1x32xf32, #tpu.memory_space<vmem>>, vector<1x32xf32>
    %48 = vector.broadcast %47 : vector<1x32xf32> to vector<16x32xf32>
    %49 = arith.addf %46, %48 : vector<16x32xf32>
    %c0_32 = arith.constant 0 : index
    %c0_33 = arith.constant 0 : index
    %50 = vector.load %arg8[%c0_32, %c0_33] : memref<32x96xf32, #tpu.memory_space<vmem>>, vector<32x96xf32>
    %cst_34 = arith.constant dense<0.000000e+00> : vector<16x96xf32>
    %51 = tpu.matmul %49, %50, %cst_34 {dimension_numbers = #tpu.dot_dimension_numbers<[1], [0], [0], [1], [0, 0, 1, 1], [], []>} : vector<16x32xf32>, vector<32x96xf32>, vector<16x96xf32> -> vector<16x96xf32>
    %c0_35 = arith.constant 0 : index
    %c0_36 = arith.constant 0 : index
    %52 = vector.load %arg9[%c0_35, %c0_36] : memref<1x96xf32, #tpu.memory_space<vmem>>, vector<1x96xf32>
    %53 = vector.broadcast %52 : vector<1x96xf32> to vector<16x96xf32>
    %54 = arith.addf %51, %53 : vector<16x96xf32>
    %c0_37 = arith.constant 0 : index
    %c0_38 = arith.constant 0 : index
    %55 = vector.load %arg39[%c0_37, %c0_38] : memref<16x96xf32, #tpu.memory_space<vmem>>, vector<16x96xf32>
    tpu.vector_store %arg39[%c0_37, %c0_38], %54 {strides = array<i32>} : memref<16x96xf32, #tpu.memory_space<vmem>>, vector<16x96xf32>,
    %c0_39 = arith.constant 0 : index
    %c0_40 = arith.constant 0 : index
    %56 = vector.load %arg39[%c0_39, %c0_40] : memref<16x96xf32, #tpu.memory_space<vmem>>, vector<8x8xf32>
    %c0_41 = arith.constant 0 : index
    %c32 = arith.constant 32 : index
    %57 = vector.load %arg39[%c0_41, %c32] : memref<16x96xf32, #tpu.memory_space<vmem>>, vector<8x8xf32>
    %c0_42 = arith.constant 0 : index
    %c64 = arith.constant 64 : index
    %58 = vector.load %arg39[%c0_42, %c64] : memref<16x96xf32, #tpu.memory_space<vmem>>, vector<8x8xf32>
    %cst_43 = arith.constant 0.353553385 : f32
    %59 = vector.broadcast %cst_43 : f32 to vector<8x8xf32>
    %60 = arith.mulf %56, %59 : vector<8x8xf32>
    %cst_44 = arith.constant dense<0.000000e+00> : vector<8x8xf32>
    %61 = tpu.matmul %60, %57, %cst_44 {dimension_numbers = #tpu.dot_dimension_numbers<[1], [1], [0], [0], [0, 0, 1, 0], [], []>} : vector<8x8xf32>, vector<8x8xf32>, vector<8x8xf32> -> vector<8x8xf32>
    %62 = arith.addf %61, %24 : vector<8x8xf32>
    %cst_45 = arith.constant dense<0xFF800000> : vector<8xf32>
    %63 = vector.multi_reduction <maximumf>, %62, %cst_45 [1] : vector<8x8xf32> to vector<8xf32>
    %64 = vector.shape_cast %63 : vector<8xf32> to vector<8x1xf32>
    %65 = vector.broadcast %64 : vector<8x1xf32> to vector<8x8xf32>
    %66 = arith.subf %62, %65 : vector<8x8xf32>
    %67 = math.exp %66 : vector<8x8xf32>
    %cst_46 = arith.constant dense<0.000000e+00> : vector<8xf32>
    %68 = vector.multi_reduction <add>, %67, %cst_46 [1] : vector<8x8xf32> to vector<8xf32>
    %69 = vector.shape_cast %68 : vector<8xf32> to vector<8x1xf32>
    %70 = tpu.reciprocal %69 {approx = true} : vector<8x1xf32> -> vector<8x1xf32>
    %71 = vector.broadcast %70 : vector<8x1xf32> to vector<8x8xf32>
    %72 = arith.mulf %67, %71 : vector<8x8xf32>
    %cst_47 = arith.constant dense<0.000000e+00> : vector<8x8xf32>
    %73 = tpu.matmul %72, %58, %cst_47 {dimension_numbers = #tpu.dot_dimension_numbers<[1], [0], [0], [1], [0, 0, 1, 1], [], []>} : vector<8x8xf32>, vector<8x8xf32>, vector<8x8xf32> -> vector<8x8xf32>
    %c0_48 = arith.constant 0 : index
    %c0_49 = arith.constant 0 : index
    %74 = vector.load %arg38[%c0_48, %c0_49] : memref<16x32xf32, #tpu.memory_space<vmem>>, vector<8x8xf32>
    tpu.vector_store %arg38[%c0_48, %c0_49], %73 {strides = array<i32>} : memref<16x32xf32, #tpu.memory_space<vmem>>, vector<8x8xf32>,
    %c0_50 = arith.constant 0 : index
    %c8_51 = arith.constant 8 : index
    %75 = vector.load %arg39[%c0_50, %c8_51] : memref<16x96xf32, #tpu.memory_space<vmem>>, vector<8x8xf32>
    %c0_52 = arith.constant 0 : index
    %c40 = arith.constant 40 : index
    %76 = vector.load %arg39[%c0_52, %c40] : memref<16x96xf32, #tpu.memory_space<vmem>>, vector<8x8xf32>
    %c0_53 = arith.constant 0 : index
    %c72 = arith.constant 72 : index
    %77 = vector.load %arg39[%c0_53, %c72] : memref<16x96xf32, #tpu.memory_space<vmem>>, vector<8x8xf32>
    %cst_54 = arith.constant 0.353553385 : f32
    %78 = vector.broadcast %cst_54 : f32 to vector<8x8xf32>
    %79 = arith.mulf %75, %78 : vector<8x8xf32>
    %cst_55 = arith.constant dense<0.000000e+00> : vector<8x8xf32>
    %80 = tpu.matmul %79, %76, %cst_55 {dimension_numbers = #tpu.dot_dimension_numbers<[1], [1], [0], [0], [0, 0, 1, 0], [], []>} : vector<8x8xf32>, vector<8x8xf32>, vector<8x8xf32> -> vector<8x8xf32>
    %81 = arith.addf %80, %24 : vector<8x8xf32>
    %cst_56 = arith.constant dense<0xFF800000> : vector<8xf32>
    %82 = vector.multi_reduction <maximumf>, %81, %cst_56 [1] : vector<8x8xf32> to vector<8xf32>
    %83 = vector.shape_cast %82 : vector<8xf32> to vector<8x1xf32>
    %84 = vector.broadcast %83 : vector<8x1xf32> to vector<8x8xf32>
    %85 = arith.subf %81, %84 : vector<8x8xf32>
    %86 = math.exp %85 : vector<8x8xf32>
    %cst_57 = arith.constant dense<0.000000e+00> : vector<8xf32>
    %87 = vector.multi_reduction <add>, %86, %cst_57 [1] : vector<8x8xf32> to vector<8xf32>
    %88 = vector.shape_cast %87 : vector<8xf32> to vector<8x1xf32>
    %89 = tpu.reciprocal %88 {approx = true} : vector<8x1xf32> -> vector<8x1xf32>
    %90 = vector.broadcast %89 : vector<8x1xf32> to vector<8x8xf32>
    %91 = arith.mulf %86, %90 : vector<8x8xf32>
    %cst_58 = arith.constant dense<0.000000e+00> : vector<8x8xf32>
    %92 = tpu.matmul %91, %77, %cst_58 {dimension_numbers = #tpu.dot_dimension_numbers<[1], [0], [0], [1], [0, 0, 1, 1], [], []>} : vector<8x8xf32>, vector<8x8xf32>, vector<8x8xf32> -> vector<8x8xf32>
    %c0_59 = arith.constant 0 : index
    %c8_60 = arith.constant 8 : index
    %93 = vector.load %arg38[%c0_59, %c8_60] : memref<16x32xf32, #tpu.memory_space<vmem>>, vector<8x8xf32>
    tpu.vector_store %arg38[%c0_59, %c8_60], %92 {strides = array<i32>} : memref<16x32xf32, #tpu.memory_space<vmem>>, vector<8x8xf32>,
    %c0_61 = arith.constant 0 : index
    %c16 = arith.constant 16 : index
    %94 = vector.load %arg39[%c0_61, %c16] : memref<16x96xf32, #tpu.memory_space<vmem>>, vector<8x8xf32>
    %c0_62 = arith.constant 0 : index
    %c48 = arith.constant 48 : index
    %95 = vector.load %arg39[%c0_62, %c48] : memref<16x96xf32, #tpu.memory_space<vmem>>, vector<8x8xf32>
    %c0_63 = arith.constant 0 : index
    %c80 = arith.constant 80 : index
    %96 = vector.load %arg39[%c0_63, %c80] : memref<16x96xf32, #tpu.memory_space<vmem>>, vector<8x8xf32>
    %cst_64 = arith.constant 0.353553385 : f32
    %97 = vector.broadcast %cst_64 : f32 to vector<8x8xf32>
    %98 = arith.mulf %94, %97 : vector<8x8xf32>
    %cst_65 = arith.constant dense<0.000000e+00> : vector<8x8xf32>
    %99 = tpu.matmul %98, %95, %cst_65 {dimension_numbers = #tpu.dot_dimension_numbers<[1], [1], [0], [0], [0, 0, 1, 0], [], []>} : vector<8x8xf32>, vector<8x8xf32>, vector<8x8xf32> -> vector<8x8xf32>
    %100 = arith.addf %99, %24 : vector<8x8xf32>
    %cst_66 = arith.constant dense<0xFF800000> : vector<8xf32>
    %101 = vector.multi_reduction <maximumf>, %100, %cst_66 [1] : vector<8x8xf32> to vector<8xf32>
    %102 = vector.shape_cast %101 : vector<8xf32> to vector<8x1xf32>
    %103 = vector.broadcast %102 : vector<8x1xf32> to vector<8x8xf32>
    %104 = arith.subf %100, %103 : vector<8x8xf32>
    %105 = math.exp %104 : vector<8x8xf32>
    %cst_67 = arith.constant dense<0.000000e+00> : vector<8xf32>
    %106 = vector.multi_reduction <add>, %105, %cst_67 [1] : vector<8x8xf32> to vector<8xf32>
    %107 = vector.shape_cast %106 : vector<8xf32> to vector<8x1xf32>
    %108 = tpu.reciprocal %107 {approx = true} : vector<8x1xf32> -> vector<8x1xf32>
    %109 = vector.broadcast %108 : vector<8x1xf32> to vector<8x8xf32>
    %110 = arith.mulf %105, %109 : vector<8x8xf32>
    %cst_68 = arith.constant dense<0.000000e+00> : vector<8x8xf32>
    %111 = tpu.matmul %110, %96, %cst_68 {dimension_numbers = #tpu.dot_dimension_numbers<[1], [0], [0], [1], [0, 0, 1, 1], [], []>} : vector<8x8xf32>, vector<8x8xf32>, vector<8x8xf32> -> vector<8x8xf32>
    %c0_69 = arith.constant 0 : index
    %c16_70 = arith.constant 16 : index
    %112 = vector.load %arg38[%c0_69, %c16_70] : memref<16x32xf32, #tpu.memory_space<vmem>>, vector<8x8xf32>
    tpu.vector_store %arg38[%c0_69, %c16_70], %111 {strides = array<i32>} : memref<16x32xf32, #tpu.memory_space<vmem>>, vector<8x8xf32>,
    %c0_71 = arith.constant 0 : index
    %c24 = arith.constant 24 : index
    %113 = vector.load %arg39[%c0_71, %c24] : memref<16x96xf32, #tpu.memory_space<vmem>>, vector<8x8xf32>
    %c0_72 = arith.constant 0 : index
    %c56 = arith.constant 56 : index
    %114 = vector.load %arg39[%c0_72, %c56] : memref<16x96xf32, #tpu.memory_space<vmem>>, vector<8x8xf32>
    %c0_73 = arith.constant 0 : index
    %c88 = arith.constant 88 : index
    %115 = vector.load %arg39[%c0_73, %c88] : memref<16x96xf32, #tpu.memory_space<vmem>>, vector<8x8xf32>
    %cst_74 = arith.constant 0.353553385 : f32
    %116 = vector.broadcast %cst_74 : f32 to vector<8x8xf32>
    %117 = arith.mulf %113, %116 : vector<8x8xf32>
    %cst_75 = arith.constant dense<0.000000e+00> : vector<8x8xf32>
    %118 = tpu.matmul %117, %114, %cst_75 {dimension_numbers = #tpu.dot_dimension_numbers<[1], [1], [0], [0], [0, 0, 1, 0], [], []>} : vector<8x8xf32>, vector<8x8xf32>, vector<8x8xf32> -> vector<8x8xf32>
    %119 = arith.addf %118, %24 : vector<8x8xf32>
    %cst_76 = arith.constant dense<0xFF800000> : vector<8xf32>
    %120 = vector.multi_reduction <maximumf>, %119, %cst_76 [1] : vector<8x8xf32> to vector<8xf32>
    %121 = vector.shape_cast %120 : vector<8xf32> to vector<8x1xf32>
    %122 = vector.broadcast %121 : vector<8x1xf32> to vector<8x8xf32>
    %123 = arith.subf %119, %122 : vector<8x8xf32>
    %124 = math.exp %123 : vector<8x8xf32>
    %cst_77 = arith.constant dense<0.000000e+00> : vector<8xf32>
    %125 = vector.multi_reduction <add>, %124, %cst_77 [1] : vector<8x8xf32> to vector<8xf32>
    %126 = vector.shape_cast %125 : vector<8xf32> to vector<8x1xf32>
    %127 = tpu.reciprocal %126 {approx = true} : vector<8x1xf32> -> vector<8x1xf32>
    %128 = vector.broadcast %127 : vector<8x1xf32> to vector<8x8xf32>
    %129 = arith.mulf %124, %128 : vector<8x8xf32>
    %cst_78 = arith.constant dense<0.000000e+00> : vector<8x8xf32>
    %130 = tpu.matmul %129, %115, %cst_78 {dimension_numbers = #tpu.dot_dimension_numbers<[1], [0], [0], [1], [0, 0, 1, 1], [], []>} : vector<8x8xf32>, vector<8x8xf32>, vector<8x8xf32> -> vector<8x8xf32>
    %c0_79 = arith.constant 0 : index
    %c24_80 = arith.constant 24 : index
    %131 = vector.load %arg38[%c0_79, %c24_80] : memref<16x32xf32, #tpu.memory_space<vmem>>, vector<8x8xf32>
    tpu.vector_store %arg38[%c0_79, %c24_80], %130 {strides = array<i32>} : memref<16x32xf32, #tpu.memory_space<vmem>>, vector<8x8xf32>,
    %c8_81 = arith.constant 8 : index
    %c0_82 = arith.constant 0 : index
    %132 = vector.load %arg39[%c8_81, %c0_82] : memref<16x96xf32, #tpu.memory_space<vmem>>, vector<8x8xf32>
    %c8_83 = arith.constant 8 : index
    %c32_84 = arith.constant 32 : index
    %133 = vector.load %arg39[%c8_83, %c32_84] : memref<16x96xf32, #tpu.memory_space<vmem>>, vector<8x8xf32>
    %c8_85 = arith.constant 8 : index
    %c64_86 = arith.constant 64 : index
    %134 = vector.load %arg39[%c8_85, %c64_86] : memref<16x96xf32, #tpu.memory_space<vmem>>, vector<8x8xf32>
    %cst_87 = arith.constant 0.353553385 : f32
    %135 = vector.broadcast %cst_87 : f32 to vector<8x8xf32>
    %136 = arith.mulf %132, %135 : vector<8x8xf32>
    %cst_88 = arith.constant dense<0.000000e+00> : vector<8x8xf32>
    %137 = tpu.matmul %136, %133, %cst_88 {dimension_numbers = #tpu.dot_dimension_numbers<[1], [1], [0], [0], [0, 0, 1, 0], [], []>} : vector<8x8xf32>, vector<8x8xf32>, vector<8x8xf32> -> vector<8x8xf32>
    %138 = arith.addf %137, %24 : vector<8x8xf32>
    %cst_89 = arith.constant dense<0xFF800000> : vector<8xf32>
    %139 = vector.multi_reduction <maximumf>, %138, %cst_89 [1] : vector<8x8xf32> to vector<8xf32>
    %140 = vector.shape_cast %139 : vector<8xf32> to vector<8x1xf32>
    %141 = vector.broadcast %140 : vector<8x1xf32> to vector<8x8xf32>
    %142 = arith.subf %138, %141 : vector<8x8xf32>
    %143 = math.exp %142 : vector<8x8xf32>
    %cst_90 = arith.constant dense<0.000000e+00> : vector<8xf32>
    %144 = vector.multi_reduction <add>, %143, %cst_90 [1] : vector<8x8xf32> to vector<8xf32>
    %145 = vector.shape_cast %144 : vector<8xf32> to vector<8x1xf32>
    %146 = tpu.reciprocal %145 {approx = true} : vector<8x1xf32> -> vector<8x1xf32>
    %147 = vector.broadcast %146 : vector<8x1xf32> to vector<8x8xf32>
    %148 = arith.mulf %143, %147 : vector<8x8xf32>
    %cst_91 = arith.constant dense<0.000000e+00> : vector<8x8xf32>
    %149 = tpu.matmul %148, %134, %cst_91 {dimension_numbers = #tpu.dot_dimension_numbers<[1], [0], [0], [1], [0, 0, 1, 1], [], []>} : vector<8x8xf32>, vector<8x8xf32>, vector<8x8xf32> -> vector<8x8xf32>
    %c8_92 = arith.constant 8 : index
    %c0_93 = arith.constant 0 : index
    %150 = vector.load %arg38[%c8_92, %c0_93] : memref<16x32xf32, #tpu.memory_space<vmem>>, vector<8x8xf32>
    tpu.vector_store %arg38[%c8_92, %c0_93], %149 {strides = array<i32>} : memref<16x32xf32, #tpu.memory_space<vmem>>, vector<8x8xf32>,
    %c8_94 = arith.constant 8 : index
    %c8_95 = arith.constant 8 : index
    %151 = vector.load %arg39[%c8_94, %c8_95] : memref<16x96xf32, #tpu.memory_space<vmem>>, vector<8x8xf32>
    %c8_96 = arith.constant 8 : index
    %c40_97 = arith.constant 40 : index
    %152 = vector.load %arg39[%c8_96, %c40_97] : memref<16x96xf32, #tpu.memory_space<vmem>>, vector<8x8xf32>
    %c8_98 = arith.constant 8 : index
    %c72_99 = arith.constant 72 : index
    %153 = vector.load %arg39[%c8_98, %c72_99] : memref<16x96xf32, #tpu.memory_space<vmem>>, vector<8x8xf32>
    %cst_100 = arith.constant 0.353553385 : f32
    %154 = vector.broadcast %cst_100 : f32 to vector<8x8xf32>
    %155 = arith.mulf %151, %154 : vector<8x8xf32>
    %cst_101 = arith.constant dense<0.000000e+00> : vector<8x8xf32>
    %156 = tpu.matmul %155, %152, %cst_101 {dimension_numbers = #tpu.dot_dimension_numbers<[1], [1], [0], [0], [0, 0, 1, 0], [], []>} : vector<8x8xf32>, vector<8x8xf32>, vector<8x8xf32> -> vector<8x8xf32>
    %157 = arith.addf %156, %24 : vector<8x8xf32>
    %cst_102 = arith.constant dense<0xFF800000> : vector<8xf32>
    %158 = vector.multi_reduction <maximumf>, %157, %cst_102 [1] : vector<8x8xf32> to vector<8xf32>
    %159 = vector.shape_cast %158 : vector<8xf32> to vector<8x1xf32>
    %160 = vector.broadcast %159 : vector<8x1xf32> to vector<8x8xf32>
    %161 = arith.subf %157, %160 : vector<8x8xf32>
    %162 = math.exp %161 : vector<8x8xf32>
    %cst_103 = arith.constant dense<0.000000e+00> : vector<8xf32>
    %163 = vector.multi_reduction <add>, %162, %cst_103 [1] : vector<8x8xf32> to vector<8xf32>
    %164 = vector.shape_cast %163 : vector<8xf32> to vector<8x1xf32>
    %165 = tpu.reciprocal %164 {approx = true} : vector<8x1xf32> -> vector<8x1xf32>
    %166 = vector.broadcast %165 : vector<8x1xf32> to vector<8x8xf32>
    %167 = arith.mulf %162, %166 : vector<8x8xf32>
    %cst_104 = arith.constant dense<0.000000e+00> : vector<8x8xf32>
    %168 = tpu.matmul %167, %153, %cst_104 {dimension_numbers = #tpu.dot_dimension_numbers<[1], [0], [0], [1], [0, 0, 1, 1], [], []>} : vector<8x8xf32>, vector<8x8xf32>, vector<8x8xf32> -> vector<8x8xf32>
    %c8_105 = arith.constant 8 : index
    %c8_106 = arith.constant 8 : index
    %169 = vector.load %arg38[%c8_105, %c8_106] : memref<16x32xf32, #tpu.memory_space<vmem>>, vector<8x8xf32>
    tpu.vector_store %arg38[%c8_105, %c8_106], %168 {strides = array<i32>} : memref<16x32xf32, #tpu.memory_space<vmem>>, vector<8x8xf32>,
    %c8_107 = arith.constant 8 : index
    %c16_108 = arith.constant 16 : index
    %170 = vector.load %arg39[%c8_107, %c16_108] : memref<16x96xf32, #tpu.memory_space<vmem>>, vector<8x8xf32>
    %c8_109 = arith.constant 8 : index
    %c48_110 = arith.constant 48 : index
    %171 = vector.load %arg39[%c8_109, %c48_110] : memref<16x96xf32, #tpu.memory_space<vmem>>, vector<8x8xf32>
    %c8_111 = arith.constant 8 : index
    %c80_112 = arith.constant 80 : index
    %172 = vector.load %arg39[%c8_111, %c80_112] : memref<16x96xf32, #tpu.memory_space<vmem>>, vector<8x8xf32>
    %cst_113 = arith.constant 0.353553385 : f32
    %173 = vector.broadcast %cst_113 : f32 to vector<8x8xf32>
    %174 = arith.mulf %170, %173 : vector<8x8xf32>
    %cst_114 = arith.constant dense<0.000000e+00> : vector<8x8xf32>
    %175 = tpu.matmul %174, %171, %cst_114 {dimension_numbers = #tpu.dot_dimension_numbers<[1], [1], [0], [0], [0, 0, 1, 0], [], []>} : vector<8x8xf32>, vector<8x8xf32>, vector<8x8xf32> -> vector<8x8xf32>
    %176 = arith.addf %175, %24 : vector<8x8xf32>
    %cst_115 = arith.constant dense<0xFF800000> : vector<8xf32>
    %177 = vector.multi_reduction <maximumf>, %176, %cst_115 [1] : vector<8x8xf32> to vector<8xf32>
    %178 = vector.shape_cast %177 : vector<8xf32> to vector<8x1xf32>
    %179 = vector.broadcast %178 : vector<8x1xf32> to vector<8x8xf32>
    %180 = arith.subf %176, %179 : vector<8x8xf32>
    %181 = math.exp %180 : vector<8x8xf32>
    %cst_116 = arith.constant dense<0.000000e+00> : vector<8xf32>
    %182 = vector.multi_reduction <add>, %181, %cst_116 [1] : vector<8x8xf32> to vector<8xf32>
    %183 = vector.shape_cast %182 : vector<8xf32> to vector<8x1xf32>
    %184 = tpu.reciprocal %183 {approx = true} : vector<8x1xf32> -> vector<8x1xf32>
    %185 = vector.broadcast %184 : vector<8x1xf32> to vector<8x8xf32>
    %186 = arith.mulf %181, %185 : vector<8x8xf32>
    %cst_117 = arith.constant dense<0.000000e+00> : vector<8x8xf32>
    %187 = tpu.matmul %186, %172, %cst_117 {dimension_numbers = #tpu.dot_dimension_numbers<[1], [0], [0], [1], [0, 0, 1, 1], [], []>} : vector<8x8xf32>, vector<8x8xf32>, vector<8x8xf32> -> vector<8x8xf32>
    %c8_118 = arith.constant 8 : index
    %c16_119 = arith.constant 16 : index
    %188 = vector.load %arg38[%c8_118, %c16_119] : memref<16x32xf32, #tpu.memory_space<vmem>>, vector<8x8xf32>
    tpu.vector_store %arg38[%c8_118, %c16_119], %187 {strides = array<i32>} : memref<16x32xf32, #tpu.memory_space<vmem>>, vector<8x8xf32>,
    %c8_120 = arith.constant 8 : index
    %c24_121 = arith.constant 24 : index
    %189 = vector.load %arg39[%c8_120, %c24_121] : memref<16x96xf32, #tpu.memory_space<vmem>>, vector<8x8xf32>
    %c8_122 = arith.constant 8 : index
    %c56_123 = arith.constant 56 : index
    %190 = vector.load %arg39[%c8_122, %c56_123] : memref<16x96xf32, #tpu.memory_space<vmem>>, vector<8x8xf32>
    %c8_124 = arith.constant 8 : index
    %c88_125 = arith.constant 88 : index
    %191 = vector.load %arg39[%c8_124, %c88_125] : memref<16x96xf32, #tpu.memory_space<vmem>>, vector<8x8xf32>
    %cst_126 = arith.constant 0.353553385 : f32
    %192 = vector.broadcast %cst_126 : f32 to vector<8x8xf32>
    %193 = arith.mulf %189, %192 : vector<8x8xf32>
    %cst_127 = arith.constant dense<0.000000e+00> : vector<8x8xf32>
    %194 = tpu.matmul %193, %190, %cst_127 {dimension_numbers = #tpu.dot_dimension_numbers<[1], [1], [0], [0], [0, 0, 1, 0], [], []>} : vector<8x8xf32>, vector<8x8xf32>, vector<8x8xf32> -> vector<8x8xf32>
    %195 = arith.addf %194, %24 : vector<8x8xf32>
    %cst_128 = arith.constant dense<0xFF800000> : vector<8xf32>
    %196 = vector.multi_reduction <maximumf>, %195, %cst_128 [1] : vector<8x8xf32> to vector<8xf32>
    %197 = vector.shape_cast %196 : vector<8xf32> to vector<8x1xf32>
    %198 = vector.broadcast %197 : vector<8x1xf32> to vector<8x8xf32>
    %199 = arith.subf %195, %198 : vector<8x8xf32>
    %200 = math.exp %199 : vector<8x8xf32>
    %cst_129 = arith.constant dense<0.000000e+00> : vector<8xf32>
    %201 = vector.multi_reduction <add>, %200, %cst_129 [1] : vector<8x8xf32> to vector<8xf32>
    %202 = vector.shape_cast %201 : vector<8xf32> to vector<8x1xf32>
    %203 = tpu.reciprocal %202 {approx = true} : vector<8x1xf32> -> vector<8x1xf32>
    %204 = vector.broadcast %203 : vector<8x1xf32> to vector<8x8xf32>
    %205 = arith.mulf %200, %204 : vector<8x8xf32>
    %cst_130 = arith.constant dense<0.000000e+00> : vector<8x8xf32>
    %206 = tpu.matmul %205, %191, %cst_130 {dimension_numbers = #tpu.dot_dimension_numbers<[1], [0], [0], [1], [0, 0, 1, 1], [], []>} : vector<8x8xf32>, vector<8x8xf32>, vector<8x8xf32> -> vector<8x8xf32>
    %c8_131 = arith.constant 8 : index
    %c24_132 = arith.constant 24 : index
    %207 = vector.load %arg38[%c8_131, %c24_132] : memref<16x32xf32, #tpu.memory_space<vmem>>, vector<8x8xf32>
    tpu.vector_store %arg38[%c8_131, %c24_132], %206 {strides = array<i32>} : memref<16x32xf32, #tpu.memory_space<vmem>>, vector<8x8xf32>,
    %c0_133 = arith.constant 0 : index
    %c0_134 = arith.constant 0 : index
    %208 = vector.load %arg38[%c0_133, %c0_134] : memref<16x32xf32, #tpu.memory_space<vmem>>, vector<16x32xf32>
    %c0_135 = arith.constant 0 : index
    %c0_136 = arith.constant 0 : index
    %209 = vector.load %arg10[%c0_135, %c0_136] : memref<32x32xf32, #tpu.memory_space<vmem>>, vector<32x32xf32>
    %cst_137 = arith.constant dense<0.000000e+00> : vector<16x32xf32>
    %210 = tpu.matmul %208, %209, %cst_137 {dimension_numbers = #tpu.dot_dimension_numbers<[1], [0], [0], [1], [0, 0, 1, 1], [], []>} : vector<16x32xf32>, vector<32x32xf32>, vector<16x32xf32> -> vector<16x32xf32>
    %c0_138 = arith.constant 0 : index
    %c0_139 = arith.constant 0 : index
    %211 = vector.load %arg11[%c0_138, %c0_139] : memref<1x32xf32, #tpu.memory_space<vmem>>, vector<1x32xf32>
    %212 = vector.broadcast %211 : vector<1x32xf32> to vector<16x32xf32>
    %213 = arith.addf %210, %212 : vector<16x32xf32>
    %214 = arith.addf %25, %213 : vector<16x32xf32>
    %c0_140 = arith.constant 0 : index
    %c0_141 = arith.constant 0 : index
    %215 = vector.load %arg37[%c0_140, %c0_141] : memref<16x32xf32, #tpu.memory_space<vmem>>, vector<16x32xf32>
    tpu.vector_store %arg37[%c0_140, %c0_141], %214 {strides = array<i32>} : memref<16x32xf32, #tpu.memory_space<vmem>>, vector<16x32xf32>,
    %cst_142 = arith.constant dense<0.000000e+00> : vector<16xf32>
    %216 = vector.multi_reduction <add>, %214, %cst_142 [1] : vector<16x32xf32> to vector<16xf32>
    %217 = vector.shape_cast %216 : vector<16xf32> to vector<16x1xf32>
    %cst_143 = arith.constant 3.200000e+01 : f32
    %218 = vector.broadcast %cst_143 : f32 to vector<16x1xf32>
    %219 = arith.divf %217, %218 : vector<16x1xf32>
    %220 = vector.broadcast %219 : vector<16x1xf32> to vector<16x32xf32>
    %221 = arith.subf %214, %220 : vector<16x32xf32>
    %222 = arith.mulf %221, %221 : vector<16x32xf32>
    %cst_144 = arith.constant dense<0.000000e+00> : vector<16xf32>
    %223 = vector.multi_reduction <add>, %222, %cst_144 [1] : vector<16x32xf32> to vector<16xf32>
    %224 = vector.shape_cast %223 : vector<16xf32> to vector<16x1xf32>
    %cst_145 = arith.constant 3.200000e+01 : f32
    %225 = vector.broadcast %cst_145 : f32 to vector<16x1xf32>
    %226 = arith.divf %224, %225 : vector<16x1xf32>
    %227 = vector.broadcast %219 : vector<16x1xf32> to vector<16x32xf32>
    %228 = arith.subf %214, %227 : vector<16x32xf32>
    %cst_146 = arith.constant 9.99999997E-7 : f32
    %229 = vector.broadcast %cst_146 : f32 to vector<16x1xf32>
    %230 = arith.addf %226, %229 : vector<16x1xf32>
    %231 = math.rsqrt %230 : vector<16x1xf32>
    %232 = vector.broadcast %231 : vector<16x1xf32> to vector<16x32xf32>
    %233 = arith.mulf %228, %232 : vector<16x32xf32>
    %c0_147 = arith.constant 0 : index
    %c0_148 = arith.constant 0 : index
    %234 = vector.load %arg12[%c0_147, %c0_148] : memref<1x32xf32, #tpu.memory_space<vmem>>, vector<1x32xf32>
    %235 = vector.broadcast %234 : vector<1x32xf32> to vector<16x32xf32>
    %236 = arith.mulf %233, %235 : vector<16x32xf32>
    %c0_149 = arith.constant 0 : index
    %c0_150 = arith.constant 0 : index
    %237 = vector.load %arg13[%c0_149, %c0_150] : memref<1x32xf32, #tpu.memory_space<vmem>>, vector<1x32xf32>
    %238 = vector.broadcast %237 : vector<1x32xf32> to vector<16x32xf32>
    %239 = arith.addf %236, %238 : vector<16x32xf32>
    %c0_151 = arith.constant 0 : index
    %c0_152 = arith.constant 0 : index
    %240 = vector.load %arg14[%c0_151, %c0_152] : memref<32x64xf32, #tpu.memory_space<vmem>>, vector<32x64xf32>
    %cst_153 = arith.constant dense<0.000000e+00> : vector<16x64xf32>
    %241 = tpu.matmul %239, %240, %cst_153 {dimension_numbers = #tpu.dot_dimension_numbers<[1], [0], [0], [1], [0, 0, 1, 1], [], []>} : vector<16x32xf32>, vector<32x64xf32>, vector<16x64xf32> -> vector<16x64xf32>
    %c0_154 = arith.constant 0 : index
    %c0_155 = arith.constant 0 : index
    %242 = vector.load %arg15[%c0_154, %c0_155] : memref<1x64xf32, #tpu.memory_space<vmem>>, vector<1x64xf32>
    %243 = vector.broadcast %242 : vector<1x64xf32> to vector<16x64xf32>
    %244 = arith.addf %241, %243 : vector<16x64xf32>
    %245 = arith.mulf %244, %244 : vector<16x64xf32>
    %246 = arith.mulf %244, %245 : vector<16x64xf32>
    %cst_156 = arith.constant 4.471500e-02 : f32
    %247 = vector.broadcast %cst_156 : f32 to vector<16x64xf32>
    %248 = arith.mulf %247, %246 : vector<16x64xf32>
    %249 = arith.addf %244, %248 : vector<16x64xf32>
    %cst_157 = arith.constant 0.797884583 : f32
    %250 = vector.broadcast %cst_157 : f32 to vector<16x64xf32>
    %251 = arith.mulf %250, %249 : vector<16x64xf32>
    %252 = math.tanh %251 : vector<16x64xf32>
    %cst_158 = arith.constant 1.000000e+00 : f32
    %253 = vector.broadcast %cst_158 : f32 to vector<16x64xf32>
    %254 = arith.addf %253, %252 : vector<16x64xf32>
    %cst_159 = arith.constant 5.000000e-01 : f32
    %255 = vector.broadcast %cst_159 : f32 to vector<16x64xf32>
    %256 = arith.mulf %255, %254 : vector<16x64xf32>
    %257 = arith.mulf %244, %256 : vector<16x64xf32>
    %c0_160 = arith.constant 0 : index
    %c0_161 = arith.constant 0 : index
    %258 = vector.load %arg16[%c0_160, %c0_161] : memref<64x32xf32, #tpu.memory_space<vmem>>, vector<64x32xf32>
    %cst_162 = arith.constant dense<0.000000e+00> : vector<16x32xf32>
    %259 = tpu.matmul %257, %258, %cst_162 {dimension_numbers = #tpu.dot_dimension_numbers<[1], [0], [0], [1], [0, 0, 1, 1], [], []>} : vector<16x64xf32>, vector<64x32xf32>, vector<16x32xf32> -> vector<16x32xf32>
    %c0_163 = arith.constant 0 : index
    %c0_164 = arith.constant 0 : index
    %260 = vector.load %arg17[%c0_163, %c0_164] : memref<1x32xf32, #tpu.memory_space<vmem>>, vector<1x32xf32>
    %261 = vector.broadcast %260 : vector<1x32xf32> to vector<16x32xf32>
    %262 = arith.addf %259, %261 : vector<16x32xf32>
    %263 = arith.addf %214, %262 : vector<16x32xf32>
    %c0_165 = arith.constant 0 : index
    %c0_166 = arith.constant 0 : index
    %264 = vector.load %arg37[%c0_165, %c0_166] : memref<16x32xf32, #tpu.memory_space<vmem>>, vector<16x32xf32>
    tpu.vector_store %arg37[%c0_165, %c0_166], %263 {strides = array<i32>} : memref<16x32xf32, #tpu.memory_space<vmem>>, vector<16x32xf32>,
    %c0_167 = arith.constant 0 : index
    %c0_168 = arith.constant 0 : index
    %265 = vector.load %arg37[%c0_167, %c0_168] : memref<16x32xf32, #tpu.memory_space<vmem>>, vector<16x32xf32>
    %cst_169 = arith.constant dense<0.000000e+00> : vector<16xf32>
    %266 = vector.multi_reduction <add>, %265, %cst_169 [1] : vector<16x32xf32> to vector<16xf32>
    %267 = vector.shape_cast %266 : vector<16xf32> to vector<16x1xf32>
    %cst_170 = arith.constant 3.200000e+01 : f32
    %268 = vector.broadcast %cst_170 : f32 to vector<16x1xf32>
    %269 = arith.divf %267, %268 : vector<16x1xf32>
    %270 = vector.broadcast %269 : vector<16x1xf32> to vector<16x32xf32>
    %271 = arith.subf %265, %270 : vector<16x32xf32>
    %272 = arith.mulf %271, %271 : vector<16x32xf32>
    %cst_171 = arith.constant dense<0.000000e+00> : vector<16xf32>
    %273 = vector.multi_reduction <add>, %272, %cst_171 [1] : vector<16x32xf32> to vector<16xf32>
    %274 = vector.shape_cast %273 : vector<16xf32> to vector<16x1xf32>
    %cst_172 = arith.constant 3.200000e+01 : f32
    %275 = vector.broadcast %cst_172 : f32 to vector<16x1xf32>
    %276 = arith.divf %274, %275 : vector<16x1xf32>
    %277 = vector.broadcast %269 : vector<16x1xf32> to vector<16x32xf32>
    %278 = arith.subf %265, %277 : vector<16x32xf32>
    %cst_173 = arith.constant 9.99999997E-7 : f32
    %279 = vector.broadcast %cst_173 : f32 to vector<16x1xf32>
    %280 = arith.addf %276, %279 : vector<16x1xf32>
    %281 = math.rsqrt %280 : vector<16x1xf32>
    %282 = vector.broadcast %281 : vector<16x1xf32> to vector<16x32xf32>
    %283 = arith.mulf %278, %282 : vector<16x32xf32>
    %c0_174 = arith.constant 0 : index
    %c0_175 = arith.constant 0 : index
    %284 = vector.load %arg18[%c0_174, %c0_175] : memref<1x32xf32, #tpu.memory_space<vmem>>, vector<1x32xf32>
    %285 = vector.broadcast %284 : vector<1x32xf32> to vector<16x32xf32>
    %286 = arith.mulf %283, %285 : vector<16x32xf32>
    %c0_176 = arith.constant 0 : index
    %c0_177 = arith.constant 0 : index
    %287 = vector.load %arg19[%c0_176, %c0_177] : memref<1x32xf32, #tpu.memory_space<vmem>>, vector<1x32xf32>
    %288 = vector.broadcast %287 : vector<1x32xf32> to vector<16x32xf32>
    %289 = arith.addf %286, %288 : vector<16x32xf32>
    %c0_178 = arith.constant 0 : index
    %c0_179 = arith.constant 0 : index
    %290 = vector.load %arg20[%c0_178, %c0_179] : memref<32x96xf32, #tpu.memory_space<vmem>>, vector<32x96xf32>
    %cst_180 = arith.constant dense<0.000000e+00> : vector<16x96xf32>
    %291 = tpu.matmul %289, %290, %cst_180 {dimension_numbers = #tpu.dot_dimension_numbers<[1], [0], [0], [1], [0, 0, 1, 1], [], []>} : vector<16x32xf32>, vector<32x96xf32>, vector<16x96xf32> -> vector<16x96xf32>
    %c0_181 = arith.constant 0 : index
    %c0_182 = arith.constant 0 : index
    %292 = vector.load %arg21[%c0_181, %c0_182] : memref<1x96xf32, #tpu.memory_space<vmem>>, vector<1x96xf32>
    %293 = vector.broadcast %292 : vector<1x96xf32> to vector<16x96xf32>
    %294 = arith.addf %291, %293 : vector<16x96xf32>
    %c0_183 = arith.constant 0 : index
    %c0_184 = arith.constant 0 : index
    %295 = vector.load %arg39[%c0_183, %c0_184] : memref<16x96xf32, #tpu.memory_space<vmem>>, vector<16x96xf32>
    tpu.vector_store %arg39[%c0_183, %c0_184], %294 {strides = array<i32>} : memref<16x96xf32, #tpu.memory_space<vmem>>, vector<16x96xf32>,
    %c0_185 = arith.constant 0 : index
    %c0_186 = arith.constant 0 : index
    %296 = vector.load %arg39[%c0_185, %c0_186] : memref<16x96xf32, #tpu.memory_space<vmem>>, vector<8x8xf32>
    %c0_187 = arith.constant 0 : index
    %c32_188 = arith.constant 32 : index
    %297 = vector.load %arg39[%c0_187, %c32_188] : memref<16x96xf32, #tpu.memory_space<vmem>>, vector<8x8xf32>
    %c0_189 = arith.constant 0 : index
    %c64_190 = arith.constant 64 : index
    %298 = vector.load %arg39[%c0_189, %c64_190] : memref<16x96xf32, #tpu.memory_space<vmem>>, vector<8x8xf32>
    %cst_191 = arith.constant 0.353553385 : f32
    %299 = vector.broadcast %cst_191 : f32 to vector<8x8xf32>
    %300 = arith.mulf %296, %299 : vector<8x8xf32>
    %cst_192 = arith.constant dense<0.000000e+00> : vector<8x8xf32>
    %301 = tpu.matmul %300, %297, %cst_192 {dimension_numbers = #tpu.dot_dimension_numbers<[1], [1], [0], [0], [0, 0, 1, 0], [], []>} : vector<8x8xf32>, vector<8x8xf32>, vector<8x8xf32> -> vector<8x8xf32>
    %302 = arith.addf %301, %24 : vector<8x8xf32>
    %cst_193 = arith.constant dense<0xFF800000> : vector<8xf32>
    %303 = vector.multi_reduction <maximumf>, %302, %cst_193 [1] : vector<8x8xf32> to vector<8xf32>
    %304 = vector.shape_cast %303 : vector<8xf32> to vector<8x1xf32>
    %305 = vector.broadcast %304 : vector<8x1xf32> to vector<8x8xf32>
    %306 = arith.subf %302, %305 : vector<8x8xf32>
    %307 = math.exp %306 : vector<8x8xf32>
    %cst_194 = arith.constant dense<0.000000e+00> : vector<8xf32>
    %308 = vector.multi_reduction <add>, %307, %cst_194 [1] : vector<8x8xf32> to vector<8xf32>
    %309 = vector.shape_cast %308 : vector<8xf32> to vector<8x1xf32>
    %310 = tpu.reciprocal %309 {approx = true} : vector<8x1xf32> -> vector<8x1xf32>
    %311 = vector.broadcast %310 : vector<8x1xf32> to vector<8x8xf32>
    %312 = arith.mulf %307, %311 : vector<8x8xf32>
    %cst_195 = arith.constant dense<0.000000e+00> : vector<8x8xf32>
    %313 = tpu.matmul %312, %298, %cst_195 {dimension_numbers = #tpu.dot_dimension_numbers<[1], [0], [0], [1], [0, 0, 1, 1], [], []>} : vector<8x8xf32>, vector<8x8xf32>, vector<8x8xf32> -> vector<8x8xf32>
    %c0_196 = arith.constant 0 : index
    %c0_197 = arith.constant 0 : index
    %314 = vector.load %arg38[%c0_196, %c0_197] : memref<16x32xf32, #tpu.memory_space<vmem>>, vector<8x8xf32>
    tpu.vector_store %arg38[%c0_196, %c0_197], %313 {strides = array<i32>} : memref<16x32xf32, #tpu.memory_space<vmem>>, vector<8x8xf32>,
    %c0_198 = arith.constant 0 : index
    %c8_199 = arith.constant 8 : index
    %315 = vector.load %arg39[%c0_198, %c8_199] : memref<16x96xf32, #tpu.memory_space<vmem>>, vector<8x8xf32>
    %c0_200 = arith.constant 0 : index
    %c40_201 = arith.constant 40 : index
    %316 = vector.load %arg39[%c0_200, %c40_201] : memref<16x96xf32, #tpu.memory_space<vmem>>, vector<8x8xf32>
    %c0_202 = arith.constant 0 : index
    %c72_203 = arith.constant 72 : index
    %317 = vector.load %arg39[%c0_202, %c72_203] : memref<16x96xf32, #tpu.memory_space<vmem>>, vector<8x8xf32>
    %cst_204 = arith.constant 0.353553385 : f32
    %318 = vector.broadcast %cst_204 : f32 to vector<8x8xf32>
    %319 = arith.mulf %315, %318 : vector<8x8xf32>
    %cst_205 = arith.constant dense<0.000000e+00> : vector<8x8xf32>
    %320 = tpu.matmul %319, %316, %cst_205 {dimension_numbers = #tpu.dot_dimension_numbers<[1], [1], [0], [0], [0, 0, 1, 0], [], []>} : vector<8x8xf32>, vector<8x8xf32>, vector<8x8xf32> -> vector<8x8xf32>
    %321 = arith.addf %320, %24 : vector<8x8xf32>
    %cst_206 = arith.constant dense<0xFF800000> : vector<8xf32>
    %322 = vector.multi_reduction <maximumf>, %321, %cst_206 [1] : vector<8x8xf32> to vector<8xf32>
    %323 = vector.shape_cast %322 : vector<8xf32> to vector<8x1xf32>
    %324 = vector.broadcast %323 : vector<8x1xf32> to vector<8x8xf32>
    %325 = arith.subf %321, %324 : vector<8x8xf32>
    %326 = math.exp %325 : vector<8x8xf32>
    %cst_207 = arith.constant dense<0.000000e+00> : vector<8xf32>
    %327 = vector.multi_reduction <add>, %326, %cst_207 [1] : vector<8x8xf32> to vector<8xf32>
    %328 = vector.shape_cast %327 : vector<8xf32> to vector<8x1xf32>
    %329 = tpu.reciprocal %328 {approx = true} : vector<8x1xf32> -> vector<8x1xf32>
    %330 = vector.broadcast %329 : vector<8x1xf32> to vector<8x8xf32>
    %331 = arith.mulf %326, %330 : vector<8x8xf32>
    %cst_208 = arith.constant dense<0.000000e+00> : vector<8x8xf32>
    %332 = tpu.matmul %331, %317, %cst_208 {dimension_numbers = #tpu.dot_dimension_numbers<[1], [0], [0], [1], [0, 0, 1, 1], [], []>} : vector<8x8xf32>, vector<8x8xf32>, vector<8x8xf32> -> vector<8x8xf32>
    %c0_209 = arith.constant 0 : index
    %c8_210 = arith.constant 8 : index
    %333 = vector.load %arg38[%c0_209, %c8_210] : memref<16x32xf32, #tpu.memory_space<vmem>>, vector<8x8xf32>
    tpu.vector_store %arg38[%c0_209, %c8_210], %332 {strides = array<i32>} : memref<16x32xf32, #tpu.memory_space<vmem>>, vector<8x8xf32>,
    %c0_211 = arith.constant 0 : index
    %c16_212 = arith.constant 16 : index
    %334 = vector.load %arg39[%c0_211, %c16_212] : memref<16x96xf32, #tpu.memory_space<vmem>>, vector<8x8xf32>
    %c0_213 = arith.constant 0 : index
    %c48_214 = arith.constant 48 : index
    %335 = vector.load %arg39[%c0_213, %c48_214] : memref<16x96xf32, #tpu.memory_space<vmem>>, vector<8x8xf32>
    %c0_215 = arith.constant 0 : index
    %c80_216 = arith.constant 80 : index
    %336 = vector.load %arg39[%c0_215, %c80_216] : memref<16x96xf32, #tpu.memory_space<vmem>>, vector<8x8xf32>
    %cst_217 = arith.constant 0.353553385 : f32
    %337 = vector.broadcast %cst_217 : f32 to vector<8x8xf32>
    %338 = arith.mulf %334, %337 : vector<8x8xf32>
    %cst_218 = arith.constant dense<0.000000e+00> : vector<8x8xf32>
    %339 = tpu.matmul %338, %335, %cst_218 {dimension_numbers = #tpu.dot_dimension_numbers<[1], [1], [0], [0], [0, 0, 1, 0], [], []>} : vector<8x8xf32>, vector<8x8xf32>, vector<8x8xf32> -> vector<8x8xf32>
    %340 = arith.addf %339, %24 : vector<8x8xf32>
    %cst_219 = arith.constant dense<0xFF800000> : vector<8xf32>
    %341 = vector.multi_reduction <maximumf>, %340, %cst_219 [1] : vector<8x8xf32> to vector<8xf32>
    %342 = vector.shape_cast %341 : vector<8xf32> to vector<8x1xf32>
    %343 = vector.broadcast %342 : vector<8x1xf32> to vector<8x8xf32>
    %344 = arith.subf %340, %343 : vector<8x8xf32>
    %345 = math.exp %344 : vector<8x8xf32>
    %cst_220 = arith.constant dense<0.000000e+00> : vector<8xf32>
    %346 = vector.multi_reduction <add>, %345, %cst_220 [1] : vector<8x8xf32> to vector<8xf32>
    %347 = vector.shape_cast %346 : vector<8xf32> to vector<8x1xf32>
    %348 = tpu.reciprocal %347 {approx = true} : vector<8x1xf32> -> vector<8x1xf32>
    %349 = vector.broadcast %348 : vector<8x1xf32> to vector<8x8xf32>
    %350 = arith.mulf %345, %349 : vector<8x8xf32>
    %cst_221 = arith.constant dense<0.000000e+00> : vector<8x8xf32>
    %351 = tpu.matmul %350, %336, %cst_221 {dimension_numbers = #tpu.dot_dimension_numbers<[1], [0], [0], [1], [0, 0, 1, 1], [], []>} : vector<8x8xf32>, vector<8x8xf32>, vector<8x8xf32> -> vector<8x8xf32>
    %c0_222 = arith.constant 0 : index
    %c16_223 = arith.constant 16 : index
    %352 = vector.load %arg38[%c0_222, %c16_223] : memref<16x32xf32, #tpu.memory_space<vmem>>, vector<8x8xf32>
    tpu.vector_store %arg38[%c0_222, %c16_223], %351 {strides = array<i32>} : memref<16x32xf32, #tpu.memory_space<vmem>>, vector<8x8xf32>,
    %c0_224 = arith.constant 0 : index
    %c24_225 = arith.constant 24 : index
    %353 = vector.load %arg39[%c0_224, %c24_225] : memref<16x96xf32, #tpu.memory_space<vmem>>, vector<8x8xf32>
    %c0_226 = arith.constant 0 : index
    %c56_227 = arith.constant 56 : index
    %354 = vector.load %arg39[%c0_226, %c56_227] : memref<16x96xf32, #tpu.memory_space<vmem>>, vector<8x8xf32>
    %c0_228 = arith.constant 0 : index
    %c88_229 = arith.constant 88 : index
    %355 = vector.load %arg39[%c0_228, %c88_229] : memref<16x96xf32, #tpu.memory_space<vmem>>, vector<8x8xf32>
    %cst_230 = arith.constant 0.353553385 : f32
    %356 = vector.broadcast %cst_230 : f32 to vector<8x8xf32>
    %357 = arith.mulf %353, %356 : vector<8x8xf32>
    %cst_231 = arith.constant dense<0.000000e+00> : vector<8x8xf32>
    %358 = tpu.matmul %357, %354, %cst_231 {dimension_numbers = #tpu.dot_dimension_numbers<[1], [1], [0], [0], [0, 0, 1, 0], [], []>} : vector<8x8xf32>, vector<8x8xf32>, vector<8x8xf32> -> vector<8x8xf32>
    %359 = arith.addf %358, %24 : vector<8x8xf32>
    %cst_232 = arith.constant dense<0xFF800000> : vector<8xf32>
    %360 = vector.multi_reduction <maximumf>, %359, %cst_232 [1] : vector<8x8xf32> to vector<8xf32>
    %361 = vector.shape_cast %360 : vector<8xf32> to vector<8x1xf32>
    %362 = vector.broadcast %361 : vector<8x1xf32> to vector<8x8xf32>
    %363 = arith.subf %359, %362 : vector<8x8xf32>
    %364 = math.exp %363 : vector<8x8xf32>
    %cst_233 = arith.constant dense<0.000000e+00> : vector<8xf32>
    %365 = vector.multi_reduction <add>, %364, %cst_233 [1] : vector<8x8xf32> to vector<8xf32>
    %366 = vector.shape_cast %365 : vector<8xf32> to vector<8x1xf32>
    %367 = tpu.reciprocal %366 {approx = true} : vector<8x1xf32> -> vector<8x1xf32>
    %368 = vector.broadcast %367 : vector<8x1xf32> to vector<8x8xf32>
    %369 = arith.mulf %364, %368 : vector<8x8xf32>
    %cst_234 = arith.constant dense<0.000000e+00> : vector<8x8xf32>
    %370 = tpu.matmul %369, %355, %cst_234 {dimension_numbers = #tpu.dot_dimension_numbers<[1], [0], [0], [1], [0, 0, 1, 1], [], []>} : vector<8x8xf32>, vector<8x8xf32>, vector<8x8xf32> -> vector<8x8xf32>
    %c0_235 = arith.constant 0 : index
    %c24_236 = arith.constant 24 : index
    %371 = vector.load %arg38[%c0_235, %c24_236] : memref<16x32xf32, #tpu.memory_space<vmem>>, vector<8x8xf32>
    tpu.vector_store %arg38[%c0_235, %c24_236], %370 {strides = array<i32>} : memref<16x32xf32, #tpu.memory_space<vmem>>, vector<8x8xf32>,
    %c8_237 = arith.constant 8 : index
    %c0_238 = arith.constant 0 : index
    %372 = vector.load %arg39[%c8_237, %c0_238] : memref<16x96xf32, #tpu.memory_space<vmem>>, vector<8x8xf32>
    %c8_239 = arith.constant 8 : index
    %c32_240 = arith.constant 32 : index
    %373 = vector.load %arg39[%c8_239, %c32_240] : memref<16x96xf32, #tpu.memory_space<vmem>>, vector<8x8xf32>
    %c8_241 = arith.constant 8 : index
    %c64_242 = arith.constant 64 : index
    %374 = vector.load %arg39[%c8_241, %c64_242] : memref<16x96xf32, #tpu.memory_space<vmem>>, vector<8x8xf32>
    %cst_243 = arith.constant 0.353553385 : f32
    %375 = vector.broadcast %cst_243 : f32 to vector<8x8xf32>
    %376 = arith.mulf %372, %375 : vector<8x8xf32>
    %cst_244 = arith.constant dense<0.000000e+00> : vector<8x8xf32>
    %377 = tpu.matmul %376, %373, %cst_244 {dimension_numbers = #tpu.dot_dimension_numbers<[1], [1], [0], [0], [0, 0, 1, 0], [], []>} : vector<8x8xf32>, vector<8x8xf32>, vector<8x8xf32> -> vector<8x8xf32>
    %378 = arith.addf %377, %24 : vector<8x8xf32>
    %cst_245 = arith.constant dense<0xFF800000> : vector<8xf32>
    %379 = vector.multi_reduction <maximumf>, %378, %cst_245 [1] : vector<8x8xf32> to vector<8xf32>
    %380 = vector.shape_cast %379 : vector<8xf32> to vector<8x1xf32>
    %381 = vector.broadcast %380 : vector<8x1xf32> to vector<8x8xf32>
    %382 = arith.subf %378, %381 : vector<8x8xf32>
    %383 = math.exp %382 : vector<8x8xf32>
    %cst_246 = arith.constant dense<0.000000e+00> : vector<8xf32>
    %384 = vector.multi_reduction <add>, %383, %cst_246 [1] : vector<8x8xf32> to vector<8xf32>
    %385 = vector.shape_cast %384 : vector<8xf32> to vector<8x1xf32>
    %386 = tpu.reciprocal %385 {approx = true} : vector<8x1xf32> -> vector<8x1xf32>
    %387 = vector.broadcast %386 : vector<8x1xf32> to vector<8x8xf32>
    %388 = arith.mulf %383, %387 : vector<8x8xf32>
    %cst_247 = arith.constant dense<0.000000e+00> : vector<8x8xf32>
    %389 = tpu.matmul %388, %374, %cst_247 {dimension_numbers = #tpu.dot_dimension_numbers<[1], [0], [0], [1], [0, 0, 1, 1], [], []>} : vector<8x8xf32>, vector<8x8xf32>, vector<8x8xf32> -> vector<8x8xf32>
    %c8_248 = arith.constant 8 : index
    %c0_249 = arith.constant 0 : index
    %390 = vector.load %arg38[%c8_248, %c0_249] : memref<16x32xf32, #tpu.memory_space<vmem>>, vector<8x8xf32>
    tpu.vector_store %arg38[%c8_248, %c0_249], %389 {strides = array<i32>} : memref<16x32xf32, #tpu.memory_space<vmem>>, vector<8x8xf32>,
    %c8_250 = arith.constant 8 : index
    %c8_251 = arith.constant 8 : index
    %391 = vector.load %arg39[%c8_250, %c8_251] : memref<16x96xf32, #tpu.memory_space<vmem>>, vector<8x8xf32>
    %c8_252 = arith.constant 8 : index
    %c40_253 = arith.constant 40 : index
    %392 = vector.load %arg39[%c8_252, %c40_253] : memref<16x96xf32, #tpu.memory_space<vmem>>, vector<8x8xf32>
    %c8_254 = arith.constant 8 : index
    %c72_255 = arith.constant 72 : index
    %393 = vector.load %arg39[%c8_254, %c72_255] : memref<16x96xf32, #tpu.memory_space<vmem>>, vector<8x8xf32>
    %cst_256 = arith.constant 0.353553385 : f32
    %394 = vector.broadcast %cst_256 : f32 to vector<8x8xf32>
    %395 = arith.mulf %391, %394 : vector<8x8xf32>
    %cst_257 = arith.constant dense<0.000000e+00> : vector<8x8xf32>
    %396 = tpu.matmul %395, %392, %cst_257 {dimension_numbers = #tpu.dot_dimension_numbers<[1], [1], [0], [0], [0, 0, 1, 0], [], []>} : vector<8x8xf32>, vector<8x8xf32>, vector<8x8xf32> -> vector<8x8xf32>
    %397 = arith.addf %396, %24 : vector<8x8xf32>
    %cst_258 = arith.constant dense<0xFF800000> : vector<8xf32>
    %398 = vector.multi_reduction <maximumf>, %397, %cst_258 [1] : vector<8x8xf32> to vector<8xf32>
    %399 = vector.shape_cast %398 : vector<8xf32> to vector<8x1xf32>
    %400 = vector.broadcast %399 : vector<8x1xf32> to vector<8x8xf32>
    %401 = arith.subf %397, %400 : vector<8x8xf32>
    %402 = math.exp %401 : vector<8x8xf32>
    %cst_259 = arith.constant dense<0.000000e+00> : vector<8xf32>
    %403 = vector.multi_reduction <add>, %402, %cst_259 [1] : vector<8x8xf32> to vector<8xf32>
    %404 = vector.shape_cast %403 : vector<8xf32> to vector<8x1xf32>
    %405 = tpu.reciprocal %404 {approx = true} : vector<8x1xf32> -> vector<8x1xf32>
    %406 = vector.broadcast %405 : vector<8x1xf32> to vector<8x8xf32>
    %407 = arith.mulf %402, %406 : vector<8x8xf32>
    %cst_260 = arith.constant dense<0.000000e+00> : vector<8x8xf32>
    %408 = tpu.matmul %407, %393, %cst_260 {dimension_numbers = #tpu.dot_dimension_numbers<[1], [0], [0], [1], [0, 0, 1, 1], [], []>} : vector<8x8xf32>, vector<8x8xf32>, vector<8x8xf32> -> vector<8x8xf32>
    %c8_261 = arith.constant 8 : index
    %c8_262 = arith.constant 8 : index
    %409 = vector.load %arg38[%c8_261, %c8_262] : memref<16x32xf32, #tpu.memory_space<vmem>>, vector<8x8xf32>
    tpu.vector_store %arg38[%c8_261, %c8_262], %408 {strides = array<i32>} : memref<16x32xf32, #tpu.memory_space<vmem>>, vector<8x8xf32>,
    %c8_263 = arith.constant 8 : index
    %c16_264 = arith.constant 16 : index
    %410 = vector.load %arg39[%c8_263, %c16_264] : memref<16x96xf32, #tpu.memory_space<vmem>>, vector<8x8xf32>
    %c8_265 = arith.constant 8 : index
    %c48_266 = arith.constant 48 : index
    %411 = vector.load %arg39[%c8_265, %c48_266] : memref<16x96xf32, #tpu.memory_space<vmem>>, vector<8x8xf32>
    %c8_267 = arith.constant 8 : index
    %c80_268 = arith.constant 80 : index
    %412 = vector.load %arg39[%c8_267, %c80_268] : memref<16x96xf32, #tpu.memory_space<vmem>>, vector<8x8xf32>
    %cst_269 = arith.constant 0.353553385 : f32
    %413 = vector.broadcast %cst_269 : f32 to vector<8x8xf32>
    %414 = arith.mulf %410, %413 : vector<8x8xf32>
    %cst_270 = arith.constant dense<0.000000e+00> : vector<8x8xf32>
    %415 = tpu.matmul %414, %411, %cst_270 {dimension_numbers = #tpu.dot_dimension_numbers<[1], [1], [0], [0], [0, 0, 1, 0], [], []>} : vector<8x8xf32>, vector<8x8xf32>, vector<8x8xf32> -> vector<8x8xf32>
    %416 = arith.addf %415, %24 : vector<8x8xf32>
    %cst_271 = arith.constant dense<0xFF800000> : vector<8xf32>
    %417 = vector.multi_reduction <maximumf>, %416, %cst_271 [1] : vector<8x8xf32> to vector<8xf32>
    %418 = vector.shape_cast %417 : vector<8xf32> to vector<8x1xf32>
    %419 = vector.broadcast %418 : vector<8x1xf32> to vector<8x8xf32>
    %420 = arith.subf %416, %419 : vector<8x8xf32>
    %421 = math.exp %420 : vector<8x8xf32>
    %cst_272 = arith.constant dense<0.000000e+00> : vector<8xf32>
    %422 = vector.multi_reduction <add>, %421, %cst_272 [1] : vector<8x8xf32> to vector<8xf32>
    %423 = vector.shape_cast %422 : vector<8xf32> to vector<8x1xf32>
    %424 = tpu.reciprocal %423 {approx = true} : vector<8x1xf32> -> vector<8x1xf32>
    %425 = vector.broadcast %424 : vector<8x1xf32> to vector<8x8xf32>
    %426 = arith.mulf %421, %425 : vector<8x8xf32>
    %cst_273 = arith.constant dense<0.000000e+00> : vector<8x8xf32>
    %427 = tpu.matmul %426, %412, %cst_273 {dimension_numbers = #tpu.dot_dimension_numbers<[1], [0], [0], [1], [0, 0, 1, 1], [], []>} : vector<8x8xf32>, vector<8x8xf32>, vector<8x8xf32> -> vector<8x8xf32>
    %c8_274 = arith.constant 8 : index
    %c16_275 = arith.constant 16 : index
    %428 = vector.load %arg38[%c8_274, %c16_275] : memref<16x32xf32, #tpu.memory_space<vmem>>, vector<8x8xf32>
    tpu.vector_store %arg38[%c8_274, %c16_275], %427 {strides = array<i32>} : memref<16x32xf32, #tpu.memory_space<vmem>>, vector<8x8xf32>,
    %c8_276 = arith.constant 8 : index
    %c24_277 = arith.constant 24 : index
    %429 = vector.load %arg39[%c8_276, %c24_277] : memref<16x96xf32, #tpu.memory_space<vmem>>, vector<8x8xf32>
    %c8_278 = arith.constant 8 : index
    %c56_279 = arith.constant 56 : index
    %430 = vector.load %arg39[%c8_278, %c56_279] : memref<16x96xf32, #tpu.memory_space<vmem>>, vector<8x8xf32>
    %c8_280 = arith.constant 8 : index
    %c88_281 = arith.constant 88 : index
    %431 = vector.load %arg39[%c8_280, %c88_281] : memref<16x96xf32, #tpu.memory_space<vmem>>, vector<8x8xf32>
    %cst_282 = arith.constant 0.353553385 : f32
    %432 = vector.broadcast %cst_282 : f32 to vector<8x8xf32>
    %433 = arith.mulf %429, %432 : vector<8x8xf32>
    %cst_283 = arith.constant dense<0.000000e+00> : vector<8x8xf32>
    %434 = tpu.matmul %433, %430, %cst_283 {dimension_numbers = #tpu.dot_dimension_numbers<[1], [1], [0], [0], [0, 0, 1, 0], [], []>} : vector<8x8xf32>, vector<8x8xf32>, vector<8x8xf32> -> vector<8x8xf32>
    %435 = arith.addf %434, %24 : vector<8x8xf32>
    %cst_284 = arith.constant dense<0xFF800000> : vector<8xf32>
    %436 = vector.multi_reduction <maximumf>, %435, %cst_284 [1] : vector<8x8xf32> to vector<8xf32>
    %437 = vector.shape_cast %436 : vector<8xf32> to vector<8x1xf32>
    %438 = vector.broadcast %437 : vector<8x1xf32> to vector<8x8xf32>
    %439 = arith.subf %435, %438 : vector<8x8xf32>
    %440 = math.exp %439 : vector<8x8xf32>
    %cst_285 = arith.constant dense<0.000000e+00> : vector<8xf32>
    %441 = vector.multi_reduction <add>, %440, %cst_285 [1] : vector<8x8xf32> to vector<8xf32>
    %442 = vector.shape_cast %441 : vector<8xf32> to vector<8x1xf32>
    %443 = tpu.reciprocal %442 {approx = true} : vector<8x1xf32> -> vector<8x1xf32>
    %444 = vector.broadcast %443 : vector<8x1xf32> to vector<8x8xf32>
    %445 = arith.mulf %440, %444 : vector<8x8xf32>
    %cst_286 = arith.constant dense<0.000000e+00> : vector<8x8xf32>
    %446 = tpu.matmul %445, %431, %cst_286 {dimension_numbers = #tpu.dot_dimension_numbers<[1], [0], [0], [1], [0, 0, 1, 1], [], []>} : vector<8x8xf32>, vector<8x8xf32>, vector<8x8xf32> -> vector<8x8xf32>
    %c8_287 = arith.constant 8 : index
    %c24_288 = arith.constant 24 : index
    %447 = vector.load %arg38[%c8_287, %c24_288] : memref<16x32xf32, #tpu.memory_space<vmem>>, vector<8x8xf32>
    tpu.vector_store %arg38[%c8_287, %c24_288], %446 {strides = array<i32>} : memref<16x32xf32, #tpu.memory_space<vmem>>, vector<8x8xf32>,
    %c0_289 = arith.constant 0 : index
    %c0_290 = arith.constant 0 : index
    %448 = vector.load %arg38[%c0_289, %c0_290] : memref<16x32xf32, #tpu.memory_space<vmem>>, vector<16x32xf32>
    %c0_291 = arith.constant 0 : index
    %c0_292 = arith.constant 0 : index
    %449 = vector.load %arg22[%c0_291, %c0_292] : memref<32x32xf32, #tpu.memory_space<vmem>>, vector<32x32xf32>
    %cst_293 = arith.constant dense<0.000000e+00> : vector<16x32xf32>
    %450 = tpu.matmul %448, %449, %cst_293 {dimension_numbers = #tpu.dot_dimension_numbers<[1], [0], [0], [1], [0, 0, 1, 1], [], []>} : vector<16x32xf32>, vector<32x32xf32>, vector<16x32xf32> -> vector<16x32xf32>
    %c0_294 = arith.constant 0 : index
    %c0_295 = arith.constant 0 : index
    %451 = vector.load %arg23[%c0_294, %c0_295] : memref<1x32xf32, #tpu.memory_space<vmem>>, vector<1x32xf32>
    %452 = vector.broadcast %451 : vector<1x32xf32> to vector<16x32xf32>
    %453 = arith.addf %450, %452 : vector<16x32xf32>
    %454 = arith.addf %265, %453 : vector<16x32xf32>
    %c0_296 = arith.constant 0 : index
    %c0_297 = arith.constant 0 : index
    %455 = vector.load %arg37[%c0_296, %c0_297] : memref<16x32xf32, #tpu.memory_space<vmem>>, vector<16x32xf32>
    tpu.vector_store %arg37[%c0_296, %c0_297], %454 {strides = array<i32>} : memref<16x32xf32, #tpu.memory_space<vmem>>, vector<16x32xf32>,
    %cst_298 = arith.constant dense<0.000000e+00> : vector<16xf32>
    %456 = vector.multi_reduction <add>, %454, %cst_298 [1] : vector<16x32xf32> to vector<16xf32>
    %457 = vector.shape_cast %456 : vector<16xf32> to vector<16x1xf32>
    %cst_299 = arith.constant 3.200000e+01 : f32
    %458 = vector.broadcast %cst_299 : f32 to vector<16x1xf32>
    %459 = arith.divf %457, %458 : vector<16x1xf32>
    %460 = vector.broadcast %459 : vector<16x1xf32> to vector<16x32xf32>
    %461 = arith.subf %454, %460 : vector<16x32xf32>
    %462 = arith.mulf %461, %461 : vector<16x32xf32>
    %cst_300 = arith.constant dense<0.000000e+00> : vector<16xf32>
    %463 = vector.multi_reduction <add>, %462, %cst_300 [1] : vector<16x32xf32> to vector<16xf32>
    %464 = vector.shape_cast %463 : vector<16xf32> to vector<16x1xf32>
    %cst_301 = arith.constant 3.200000e+01 : f32
    %465 = vector.broadcast %cst_301 : f32 to vector<16x1xf32>
    %466 = arith.divf %464, %465 : vector<16x1xf32>
    %467 = vector.broadcast %459 : vector<16x1xf32> to vector<16x32xf32>
    %468 = arith.subf %454, %467 : vector<16x32xf32>
    %cst_302 = arith.constant 9.99999997E-7 : f32
    %469 = vector.broadcast %cst_302 : f32 to vector<16x1xf32>
    %470 = arith.addf %466, %469 : vector<16x1xf32>
    %471 = math.rsqrt %470 : vector<16x1xf32>
    %472 = vector.broadcast %471 : vector<16x1xf32> to vector<16x32xf32>
    %473 = arith.mulf %468, %472 : vector<16x32xf32>
    %c0_303 = arith.constant 0 : index
    %c0_304 = arith.constant 0 : index
    %474 = vector.load %arg24[%c0_303, %c0_304] : memref<1x32xf32, #tpu.memory_space<vmem>>, vector<1x32xf32>
    %475 = vector.broadcast %474 : vector<1x32xf32> to vector<16x32xf32>
    %476 = arith.mulf %473, %475 : vector<16x32xf32>
    %c0_305 = arith.constant 0 : index
    %c0_306 = arith.constant 0 : index
    %477 = vector.load %arg25[%c0_305, %c0_306] : memref<1x32xf32, #tpu.memory_space<vmem>>, vector<1x32xf32>
    %478 = vector.broadcast %477 : vector<1x32xf32> to vector<16x32xf32>
    %479 = arith.addf %476, %478 : vector<16x32xf32>
    %c0_307 = arith.constant 0 : index
    %c0_308 = arith.constant 0 : index
    %480 = vector.load %arg26[%c0_307, %c0_308] : memref<32x64xf32, #tpu.memory_space<vmem>>, vector<32x64xf32>
    %cst_309 = arith.constant dense<0.000000e+00> : vector<16x64xf32>
    %481 = tpu.matmul %479, %480, %cst_309 {dimension_numbers = #tpu.dot_dimension_numbers<[1], [0], [0], [1], [0, 0, 1, 1], [], []>} : vector<16x32xf32>, vector<32x64xf32>, vector<16x64xf32> -> vector<16x64xf32>
    %c0_310 = arith.constant 0 : index
    %c0_311 = arith.constant 0 : index
    %482 = vector.load %arg27[%c0_310, %c0_311] : memref<1x64xf32, #tpu.memory_space<vmem>>, vector<1x64xf32>
    %483 = vector.broadcast %482 : vector<1x64xf32> to vector<16x64xf32>
    %484 = arith.addf %481, %483 : vector<16x64xf32>
    %485 = arith.mulf %484, %484 : vector<16x64xf32>
    %486 = arith.mulf %484, %485 : vector<16x64xf32>
    %cst_312 = arith.constant 4.471500e-02 : f32
    %487 = vector.broadcast %cst_312 : f32 to vector<16x64xf32>
    %488 = arith.mulf %487, %486 : vector<16x64xf32>
    %489 = arith.addf %484, %488 : vector<16x64xf32>
    %cst_313 = arith.constant 0.797884583 : f32
    %490 = vector.broadcast %cst_313 : f32 to vector<16x64xf32>
    %491 = arith.mulf %490, %489 : vector<16x64xf32>
    %492 = math.tanh %491 : vector<16x64xf32>
    %cst_314 = arith.constant 1.000000e+00 : f32
    %493 = vector.broadcast %cst_314 : f32 to vector<16x64xf32>
    %494 = arith.addf %493, %492 : vector<16x64xf32>
    %cst_315 = arith.constant 5.000000e-01 : f32
    %495 = vector.broadcast %cst_315 : f32 to vector<16x64xf32>
    %496 = arith.mulf %495, %494 : vector<16x64xf32>
    %497 = arith.mulf %484, %496 : vector<16x64xf32>
    %c0_316 = arith.constant 0 : index
    %c0_317 = arith.constant 0 : index
    %498 = vector.load %arg28[%c0_316, %c0_317] : memref<64x32xf32, #tpu.memory_space<vmem>>, vector<64x32xf32>
    %cst_318 = arith.constant dense<0.000000e+00> : vector<16x32xf32>
    %499 = tpu.matmul %497, %498, %cst_318 {dimension_numbers = #tpu.dot_dimension_numbers<[1], [0], [0], [1], [0, 0, 1, 1], [], []>} : vector<16x64xf32>, vector<64x32xf32>, vector<16x32xf32> -> vector<16x32xf32>
    %c0_319 = arith.constant 0 : index
    %c0_320 = arith.constant 0 : index
    %500 = vector.load %arg29[%c0_319, %c0_320] : memref<1x32xf32, #tpu.memory_space<vmem>>, vector<1x32xf32>
    %501 = vector.broadcast %500 : vector<1x32xf32> to vector<16x32xf32>
    %502 = arith.addf %499, %501 : vector<16x32xf32>
    %503 = arith.addf %454, %502 : vector<16x32xf32>
    %c0_321 = arith.constant 0 : index
    %c0_322 = arith.constant 0 : index
    %504 = vector.load %arg37[%c0_321, %c0_322] : memref<16x32xf32, #tpu.memory_space<vmem>>, vector<16x32xf32>
    tpu.vector_store %arg37[%c0_321, %c0_322], %503 {strides = array<i32>} : memref<16x32xf32, #tpu.memory_space<vmem>>, vector<16x32xf32>,
    %c0_323 = arith.constant 0 : index
    %c0_324 = arith.constant 0 : index
    %505 = vector.load %arg37[%c0_323, %c0_324] : memref<16x32xf32, #tpu.memory_space<vmem>>, vector<1x32xf32>
    %c0_325 = arith.constant 0 : index
    %c0_326 = arith.constant 0 : index
    %506 = vector.load %arg40[%c0_325, %c0_326] : memref<2x32xf32, #tpu.memory_space<vmem>>, vector<1x32xf32>
    tpu.vector_store %arg40[%c0_325, %c0_326], %505 {strides = array<i32>} : memref<2x32xf32, #tpu.memory_space<vmem>>, vector<1x32xf32>,
    %c8_327 = arith.constant 8 : index
    %c0_328 = arith.constant 0 : index
    %507 = vector.load %arg37[%c8_327, %c0_328] : memref<16x32xf32, #tpu.memory_space<vmem>>, vector<1x32xf32>
    %c1_329 = arith.constant 1 : index
    %c0_330 = arith.constant 0 : index
    %508 = vector.load %arg40[%c1_329, %c0_330] : memref<2x32xf32, #tpu.memory_space<vmem>>, vector<1x32xf32>
    tpu.vector_store %arg40[%c1_329, %c0_330], %507 {strides = array<i32>} : memref<2x32xf32, #tpu.memory_space<vmem>>, vector<1x32xf32>,
    %c0_331 = arith.constant 0 : index
    %c0_332 = arith.constant 0 : index
    %509 = vector.load %arg40[%c0_331, %c0_332] : memref<2x32xf32, #tpu.memory_space<vmem>>, vector<2x32xf32>
    %cst_333 = arith.constant dense<0.000000e+00> : vector<2xf32>
    %510 = vector.multi_reduction <add>, %509, %cst_333 [1] : vector<2x32xf32> to vector<2xf32>
    %511 = vector.shape_cast %510 : vector<2xf32> to vector<2x1xf32>
    %cst_334 = arith.constant 3.200000e+01 : f32
    %512 = vector.broadcast %cst_334 : f32 to vector<2x1xf32>
    %513 = arith.divf %511, %512 : vector<2x1xf32>
    %514 = vector.broadcast %513 : vector<2x1xf32> to vector<2x32xf32>
    %515 = arith.subf %509, %514 : vector<2x32xf32>
    %516 = arith.mulf %515, %515 : vector<2x32xf32>
    %cst_335 = arith.constant dense<0.000000e+00> : vector<2xf32>
    %517 = vector.multi_reduction <add>, %516, %cst_335 [1] : vector<2x32xf32> to vector<2xf32>
    %518 = vector.shape_cast %517 : vector<2xf32> to vector<2x1xf32>
    %cst_336 = arith.constant 3.200000e+01 : f32
    %519 = vector.broadcast %cst_336 : f32 to vector<2x1xf32>
    %520 = arith.divf %518, %519 : vector<2x1xf32>
    %521 = vector.broadcast %513 : vector<2x1xf32> to vector<2x32xf32>
    %522 = arith.subf %509, %521 : vector<2x32xf32>
    %cst_337 = arith.constant 9.99999997E-7 : f32
    %523 = vector.broadcast %cst_337 : f32 to vector<2x1xf32>
    %524 = arith.addf %520, %523 : vector<2x1xf32>
    %525 = math.rsqrt %524 : vector<2x1xf32>
    %526 = vector.broadcast %525 : vector<2x1xf32> to vector<2x32xf32>
    %527 = arith.mulf %522, %526 : vector<2x32xf32>
    %c0_338 = arith.constant 0 : index
    %c0_339 = arith.constant 0 : index
    %528 = vector.load %arg30[%c0_338, %c0_339] : memref<1x32xf32, #tpu.memory_space<vmem>>, vector<1x32xf32>
    %529 = vector.broadcast %528 : vector<1x32xf32> to vector<2x32xf32>
    %530 = arith.mulf %527, %529 : vector<2x32xf32>
    %c0_340 = arith.constant 0 : index
    %c0_341 = arith.constant 0 : index
    %531 = vector.load %arg31[%c0_340, %c0_341] : memref<1x32xf32, #tpu.memory_space<vmem>>, vector<1x32xf32>
    %532 = vector.broadcast %531 : vector<1x32xf32> to vector<2x32xf32>
    %533 = arith.addf %530, %532 : vector<2x32xf32>
    %c0_342 = arith.constant 0 : index
    %c0_343 = arith.constant 0 : index
    %534 = vector.load %arg32[%c0_342, %c0_343] : memref<32x64xf32, #tpu.memory_space<vmem>>, vector<32x64xf32>
    %cst_344 = arith.constant dense<0.000000e+00> : vector<2x64xf32>
    %535 = tpu.matmul %533, %534, %cst_344 {dimension_numbers = #tpu.dot_dimension_numbers<[1], [0], [0], [1], [0, 0, 1, 1], [], []>} : vector<2x32xf32>, vector<32x64xf32>, vector<2x64xf32> -> vector<2x64xf32>
    %c0_345 = arith.constant 0 : index
    %c0_346 = arith.constant 0 : index
    %536 = vector.load %arg33[%c0_345, %c0_346] : memref<1x64xf32, #tpu.memory_space<vmem>>, vector<1x64xf32>
    %537 = vector.broadcast %536 : vector<1x64xf32> to vector<2x64xf32>
    %538 = arith.addf %535, %537 : vector<2x64xf32>
    %cst_347 = arith.constant 0.000000e+00 : f32
    %539 = vector.broadcast %cst_347 : f32 to vector<2x64xf32>
    %540 = arith.maximumf %538, %539 : vector<2x64xf32>
    %c0_348 = arith.constant 0 : index
    %c0_349 = arith.constant 0 : index
    %541 = vector.load %arg34[%c0_348, %c0_349] : memref<64x16xf32, #tpu.memory_space<vmem>>, vector<64x16xf32>
    %cst_350 = arith.constant dense<0.000000e+00> : vector<2x16xf32>
    %542 = tpu.matmul %540, %541, %cst_350 {dimension_numbers = #tpu.dot_dimension_numbers<[1], [0], [0], [1], [0, 0, 1, 1], [], []>} : vector<2x64xf32>, vector<64x16xf32>, vector<2x16xf32> -> vector<2x16xf32>
    %c0_351 = arith.constant 0 : index
    %c0_352 = arith.constant 0 : index
    %543 = vector.load %arg35[%c0_351, %c0_352] : memref<1x16xf32, #tpu.memory_space<vmem>>, vector<1x16xf32>
    %544 = vector.broadcast %543 : vector<1x16xf32> to vector<2x16xf32>
    %545 = arith.addf %542, %544 : vector<2x16xf32>
    %c0_353 = arith.constant 0 : index
    %c0_354 = arith.constant 0 : index
    %546 = vector.load %arg36[%c0_353, %c0_354] : memref<2x16xf32, #tpu.memory_space<vmem>>, vector<2x16xf32>
    tpu.vector_store %arg36[%c0_353, %c0_354], %545 {strides = array<i32>} : memref<2x16xf32, #tpu.memory_space<vmem>>, vector<2x16xf32>,
    return
  }
  func.func @transform_0(%arg0: i32) -> (i32, i32) {
    %c0_i32 = arith.constant 0 : i32
    %c0_i32_0 = arith.constant 0 : i32
    %c0_i32_1 = arith.constant 0 : i32
    return %c0_i32, %c0_i32_0 : i32, i32
  }
  func.func @transform_1(%arg0: i32) -> (i32, i32) {
    %c0_i32 = arith.constant 0 : i32
    %c0_i32_0 = arith.constant 0 : i32
    %c0_i32_1 = arith.constant 0 : i32
    return %c0_i32, %c0_i32_0 : i32, i32
  }
  func.func @transform_2(%arg0: i32) -> (i32, i32) {
    %c0_i32 = arith.constant 0 : i32
    %c0_i32_0 = arith.constant 0 : i32
    %c0_i32_1 = arith.constant 0 : i32
    return %c0_i32, %c0_i32_0 : i32, i32
  }
  func.func @transform_3(%arg0: i32) -> (i32, i32) {
    %c0_i32 = arith.constant 0 : i32
    %c0_i32_0 = arith.constant 0 : i32
    %c0_i32_1 = arith.constant 0 : i32
    return %c0_i32, %c0_i32_0 : i32, i32
  }
  func.func @transform_4(%arg0: i32) -> (i32, i32) {
    %c0_i32 = arith.constant 0 : i32
    %c0_i32_0 = arith.constant 0 : i32
    %c0_i32_1 = arith.constant 0 : i32
    return %c0_i32, %c0_i32_0 : i32, i32
  }
  func.func @transform_5(%arg0: i32) -> (i32, i32) {
    %c0_i32 = arith.constant 0 : i32
    %c0_i32_0 = arith.constant 0 : i32
    %c0_i32_1 = arith.constant 0 : i32
    return %c0_i32, %c0_i32_0 : i32, i32
  }
  func.func @transform_6(%arg0: i32) -> (i32, i32) {
    %c0_i32 = arith.constant 0 : i32
    %c0_i32_0 = arith.constant 0 : i32
    %c0_i32_1 = arith.constant 0 : i32
    return %c0_i32, %c0_i32_0 : i32, i32
  }
  func.func @transform_7(%arg0: i32) -> (i32, i32) {
    %c0_i32 = arith.constant 0 : i32
    %c0_i32_0 = arith.constant 0 : i32
    %c0_i32_1 = arith.constant 0 : i32
    return %c0_i32, %c0_i32_0 : i32, i32
  }
  func.func @transform_8(%arg0: i32) -> (i32, i32) {
    %c0_i32 = arith.constant 0 : i32
    %c0_i32_0 = arith.constant 0 : i32
    %c0_i32_1 = arith.constant 0 : i32
    return %c0_i32, %c0_i32_0 : i32, i32
  }
  func.func @transform_9(%arg0: i32) -> (i32, i32) {
    %c0_i32 = arith.constant 0 : i32
    %c0_i32_0 = arith.constant 0 : i32
    %c0_i32_1 = arith.constant 0 : i32
    return %c0_i32, %c0_i32_0 : i32, i32
  }
  func.func @transform_10(%arg0: i32) -> (i32, i32) {
    %c0_i32 = arith.constant 0 : i32
    %c0_i32_0 = arith.constant 0 : i32
    %c0_i32_1 = arith.constant 0 : i32
    return %c0_i32, %c0_i32_0 : i32, i32
  }
  func.func @transform_11(%arg0: i32) -> (i32, i32) {
    %c0_i32 = arith.constant 0 : i32
    %c0_i32_0 = arith.constant 0 : i32
    %c0_i32_1 = arith.constant 0 : i32
    return %c0_i32, %c0_i32_0 : i32, i32
  }
  func.func @transform_12(%arg0: i32) -> (i32, i32) {
    %c0_i32 = arith.constant 0 : i32
    %c0_i32_0 = arith.constant 0 : i32
    %c0_i32_1 = arith.constant 0 : i32
    return %c0_i32, %c0_i32_0 : i32, i32
  }
  func.func @transform_13(%arg0: i32) -> (i32, i32) {
    %c0_i32 = arith.constant 0 : i32
    %c0_i32_0 = arith.constant 0 : i32
    %c0_i32_1 = arith.constant 0 : i32
    return %c0_i32, %c0_i32_0 : i32, i32
  }
  func.func @transform_14(%arg0: i32) -> (i32, i32) {
    %c0_i32 = arith.constant 0 : i32
    %c0_i32_0 = arith.constant 0 : i32
    %c0_i32_1 = arith.constant 0 : i32
    return %c0_i32, %c0_i32_0 : i32, i32
  }
  func.func @transform_15(%arg0: i32) -> (i32, i32) {
    %c0_i32 = arith.constant 0 : i32
    %c0_i32_0 = arith.constant 0 : i32
    %c0_i32_1 = arith.constant 0 : i32
    return %c0_i32, %c0_i32_0 : i32, i32
  }
  func.func @transform_16(%arg0: i32) -> (i32, i32) {
    %c0_i32 = arith.constant 0 : i32
    %c0_i32_0 = arith.constant 0 : i32
    %c0_i32_1 = arith.constant 0 : i32
    return %c0_i32, %c0_i32_0 : i32, i32
  }
  func.func @transform_17(%arg0: i32) -> (i32, i32) {
    %c0_i32 = arith.constant 0 : i32
    %c0_i32_0 = arith.constant 0 : i32
    %c0_i32_1 = arith.constant 0 : i32
    return %c0_i32, %c0_i32_0 : i32, i32
  }
  func.func @transform_18(%arg0: i32) -> (i32, i32) {
    %c0_i32 = arith.constant 0 : i32
    %c0_i32_0 = arith.constant 0 : i32
    %c0_i32_1 = arith.constant 0 : i32
    return %c0_i32, %c0_i32_0 : i32, i32
  }
  func.func @transform_19(%arg0: i32) -> (i32, i32) {
    %c0_i32 = arith.constant 0 : i32
    %c0_i32_0 = arith.constant 0 : i32
    %c0_i32_1 = arith.constant 0 : i32
    return %c0_i32, %c0_i32_0 : i32, i32
  }
  func.func @transform_20(%arg0: i32) -> (i32, i32) {
    %c0_i32 = arith.constant 0 : i32
    %c0_i32_0 = arith.constant 0 : i32
    %c0_i32_1 = arith.constant 0 : i32
    return %c0_i32, %c0_i32_0 : i32, i32
  }
  func.func @transform_21(%arg0: i32) -> (i32, i32) {
    %c0_i32 = arith.constant 0 : i32
    %c0_i32_0 = arith.constant 0 : i32
    %c0_i32_1 = arith.constant 0 : i32
    return %c0_i32, %c0_i32_0 : i32, i32
  }
  func.func @transform_22(%arg0: i32) -> (i32, i32) {
    %c0_i32 = arith.constant 0 : i32
    %c0_i32_0 = arith.constant 0 : i32
    %c0_i32_1 = arith.constant 0 : i32
    return %c0_i32, %c0_i32_0 : i32, i32
  }
  func.func @transform_23(%arg0: i32) -> (i32, i32) {
    %c0_i32 = arith.constant 0 : i32
    %c0_i32_0 = arith.constant 0 : i32
    %c0_i32_1 = arith.constant 0 : i32
    return %c0_i32, %c0_i32_0 : i32, i32
  }
  func.func @transform_24(%arg0: i32) -> (i32, i32) {
    %c0_i32 = arith.constant 0 : i32
    %c0_i32_0 = arith.constant 0 : i32
    %c0_i32_1 = arith.constant 0 : i32
    return %c0_i32, %c0_i32_0 : i32, i32
  }
  func.func @transform_25(%arg0: i32) -> (i32, i32) {
    %c0_i32 = arith.constant 0 : i32
    %c0_i32_0 = arith.constant 0 : i32
    %c0_i32_1 = arith.constant 0 : i32
    return %c0_i32, %c0_i32_0 : i32, i32
  }
  func.func @transform_26(%arg0: i32) -> (i32, i32) {
    %c0_i32 = arith.constant 0 : i32
    %c0_i32_0 = arith.constant 0 : i32
    %c0_i32_1 = arith.constant 0 : i32
    return %c0_i32, %c0_i32_0 : i32, i32
  }
  func.func @transform_27(%arg0: i32) -> (i32, i32) {
    %c0_i32 = arith.constant 0 : i32
    %c0_i32_0 = arith.constant 0 : i32
    %c0_i32_1 = arith.constant 0 : i32
    return %c0_i32, %c0_i32_0 : i32, i32
  }
  func.func @transform_28(%arg0: i32) -> (i32, i32) {
    %c0_i32 = arith.constant 0 : i32
    %c0_i32_0 = arith.constant 0 : i32
    %c0_i32_1 = arith.constant 0 : i32
    return %c0_i32, %c0_i32_0 : i32, i32
  }
  func.func @transform_29(%arg0: i32) -> (i32, i32) {
    %c0_i32 = arith.constant 0 : i32
    %c0_i32_0 = arith.constant 0 : i32
    %c0_i32_1 = arith.constant 0 : i32
    return %c0_i32, %c0_i32_0 : i32, i32
  }
  func.func @transform_30(%arg0: i32) -> (i32, i32) {
    %c0_i32 = arith.constant 0 : i32
    %c0_i32_0 = arith.constant 0 : i32
    %c0_i32_1 = arith.constant 0 : i32
    return %c0_i32, %c0_i32_0 : i32, i32
  }
  func.func @transform_31(%arg0: i32) -> (i32, i32) {
    %c0_i32 = arith.constant 0 : i32
    %c0_i32_0 = arith.constant 0 : i32
    %c0_i32_1 = arith.constant 0 : i32
    return %c0_i32, %c0_i32_0 : i32, i32
  }
  func.func @transform_32(%arg0: i32) -> (i32, i32) {
    %c0_i32 = arith.constant 0 : i32
    %c0_i32_0 = arith.constant 0 : i32
    %c0_i32_1 = arith.constant 0 : i32
    return %c0_i32, %c0_i32_0 : i32, i32
  }
  func.func @transform_33(%arg0: i32) -> (i32, i32) {
    %c0_i32 = arith.constant 0 : i32
    %c0_i32_0 = arith.constant 0 : i32
    %c0_i32_1 = arith.constant 0 : i32
    return %c0_i32, %c0_i32_0 : i32, i32
  }
  func.func @transform_34(%arg0: i32) -> (i32, i32) {
    %c0_i32 = arith.constant 0 : i32
    %c0_i32_0 = arith.constant 0 : i32
    %c0_i32_1 = arith.constant 0 : i32
    return %c0_i32, %c0_i32_0 : i32, i32
  }
  func.func @transform_35(%arg0: i32) -> (i32, i32) {
    %c0_i32 = arith.constant 0 : i32
    %c0_i32_0 = arith.constant 0 : i32
    %c0_i32_1 = arith.constant 0 : i32
    return %c0_i32, %c0_i32_0 : i32, i32
  }
}

</mosaic_0001>

<bundles_post_ra>
// kernel: slug_classifier_forward.1
= control target key start
LH: loop header
LB: loop body
LE: loop exit
PB: predicated region body
PF: predicated region fallthrough
CT: control target
= control target key end

     0   :  { %s5283_s6 = smov 1   ;;  %s5284_s10 = smov 2   ;;  %s6167_s0 = inlined_call_operand.smem [shape: u32[36], index: -1, kind: input, shape index: {}] }
   0x1   :  { %s5344_s5 = sld [smem:[%s6167_s0]]   ;;  %s5285_s14 = smov 3  }
   0x2   :  { %s5349_s9 = sld [smem:[%s6167_s0 + %s5283_s6]]   ;;  %s5286_s18 = smov 4  }
   0x3   :  { %s5354_s13 = sld [smem:[%s6167_s0 + %s5284_s10]]   ;;  %s5287_s22 = smov 5  }
   0x4   :  { %s5359_s17 = sld [smem:[%s6167_s0 + %s5285_s14]]   ;;  %s5288_s26 = smov 6  }
   0x5   :  { %s5364_s21 = sld [smem:[%s6167_s0 + %s5286_s18]]   ;;  %s5289_s30 = smov 7  }
   0x6   :  { %s5369_s25 = sld [smem:[%s6167_s0 + %s5287_s22]]   ;;  %s5290_s4 = smov 8  }
   0x7   :  { %s5374_s29 = sld [smem:[%s6167_s0 + %s5288_s26]]   ;;  %s5291_s10 = smov 9  }
   0x8   :  { %s5379_s3 = sld [smem:[%s6167_s0 + %s5289_s30]]   ;;  %s5292_s15 = smov 10  }
   0x9   :  { %s5384_s8 = sld [smem:[%s6167_s0 + %s5290_s4]]   ;;  %s5293_s20 = smov 11  }
   0xa   :  { %s5389_s14 = sld [smem:[%s6167_s0 + %s5291_s10]]   ;;  %s5294_s26 = smov 12  }
   0xb   :  { %s5394_s19 = sld [smem:[%s6167_s0 + %s5292_s15]]   ;;  %s5295_s1 = smov 13  }
   0xc   :  { %s5399_s24 = sld [smem:[%s6167_s0 + %s5293_s20]]   ;;  %s5296_s7 = smov 14  }
   0xd   :  { %s5404_s30 = sld [smem:[%s6167_s0 + %s5294_s26]]   ;;  %s5297_s15 = smov 15  }
   0xe   :  { %s5409_s6 = sld [smem:[%s6167_s0 + %s5295_s1]]   ;;  %s5298_s22 = smov 16  }
   0xf   :  { %s5414_s12 = sld [smem:[%s6167_s0 + %s5296_s7]]   ;;  %s5299_s28 = smov 17  }
  0x10   :  { %s5419_s20 = sld [smem:[%s6167_s0 + %s5297_s15]]   ;;  %s5300_s7 = smov 18  }
  0x11   :  { %s5424_s27 = sld [smem:[%s6167_s0 + %s5298_s22]]   ;;  %s5301_s15 = smov 19  }
  0x12   :  { %s5429_s4 = sld [smem:[%s6167_s0 + %s5299_s28]]   ;;  %s5302_s22 = smov 20  }
  0x13   :  { %s5303_s28 = smov 21  }
  0x15   :  { %6174 = sst [smem:[#allocation9_spill]] %s5414_s12 }
  0x16   :  { %6175 = sst [smem:[#allocation10_spill]] %s5419_s20 }
  0x17   :  { %6176 = sst [smem:[#allocation11_spill]] %s5424_s27 }
  0x18   :  { %6177 = sst [smem:[#allocation12_spill]] %s5429_s4 }
  0x19   :  { %s5434_s12 = sld [smem:[%s6167_s0 + %s5300_s7]]   ;;  %s5304_s7 = smov 22  }
  0x1a   :  { %s5439_s20 = sld [smem:[%s6167_s0 + %s5301_s15]]   ;;  %s5305_s15 = smov 23  }
  0x1b   :  { %s5444_s27 = sld [smem:[%s6167_s0 + %s5302_s22]]   ;;  %s5306_s22 = smov 24  }
  0x1c   :  { %s5449_s4 = sld [smem:[%s6167_s0 + %s5303_s28]]   ;;  %s5307_s28 = smov 25  }
  0x1f   :  { %6178 = sst [smem:[#allocation13_spill]] %s5434_s12 }
  0x20   :  { %6179 = sst [smem:[#allocation14_spill]] %s5439_s20 }
  0x21   :  { %6180 = sst [smem:[#allocation15_spill]] %s5444_s27 }
  0x22   :  { %6181 = sst [smem:[#allocation16_spill]] %s5449_s4 }
  0x23   :  { %s5454_s12 = sld [smem:[%s6167_s0 + %s5304_s7]]   ;;  %s5308_s7 = smov 26  }
  0x24   :  { %s5459_s20 = sld [smem:[%s6167_s0 + %s5305_s15]]   ;;  %s5309_s15 = smov 27  }
  0x25   :  { %s5464_s27 = sld [smem:[%s6167_s0 + %s5306_s22]]   ;;  %s5310_s22 = smov 28  }
  0x26   :  { %s5469_s4 = sld [smem:[%s6167_s0 + %s5307_s28]]   ;;  %s5311_s28 = smov 29  }
  0x29   :  { %6182 = sst [smem:[#allocation17_spill]] %s5454_s12 }
  0x2a   :  { %6183 = sst [smem:[#allocation18_spill]] %s5459_s20 }
  0x2b   :  { %6184 = sst [smem:[#allocation19_spill]] %s5464_s27 }
  0x2c   :  { %6185 = sst [smem:[#allocation20_spill]] %s5469_s4 }
  0x2d   :  { %s5474_s12 = sld [smem:[%s6167_s0 + %s5308_s7]]   ;;  %s5312_s7 = smov 30  }
  0x2e   :  { %s5479_s20 = sld [smem:[%s6167_s0 + %s5309_s15]]   ;;  %s5313_s15 = smov 31  }
  0x2f   :  { %s5484_s27 = sld [smem:[%s6167_s0 + %s5310_s22]]   ;;  %s5314_s22 = smov 32  }
  0x30   :  { %s5489_s4 = sld [smem:[%s6167_s0 + %s5311_s28]]   ;;  %s5315_s28 = smov 33  }
  0x33   :  { %6186 = sst [smem:[#allocation21_spill]] %s5474_s12 }
  0x34   :  { %6187 = sst [smem:[#allocation22_spill]] %s5479_s20 }
  0x35   :  { %6188 = sst [smem:[#allocation23_spill]] %s5484_s27 }
  0x36   :  { %6189 = sst [smem:[#allocation24_spill]] %s5489_s4 }
  0x37   :  { %s5494_s12 = sld [smem:[%s6167_s0 + %s5312_s7]]   ;;  %s5316_s7 = smov 34  }
  0x38   :  { %s5499_s20 = sld [smem:[%s6167_s0 + %s5313_s15]]   ;;  %s5317_s15 = smov 35  }
  0x39   :  { %s5504_s27 = sld [smem:[%s6167_s0 + %s5314_s22]]  }
  0x3a   :  { %s5509_s4 = sld [smem:[%s6167_s0 + %s5315_s28]]  }
  0x3d   :  { %6190 = sst [smem:[#allocation25_spill]] %s5494_s12 }
  0x3e   :  { %6191 = sst [smem:[#allocation26_spill]] %s5499_s20 }
  0x3f   :  { %s5514_s12 = sld [smem:[%s6167_s0 + %s5316_s7]]  }
  0x40   :  { %s5519_s20 = sld [smem:[%s6167_s0 + %s5317_s15]]  }
  0x41   :  { %v187_v0 = vld [vmem:[%s5349_s9 + $0xf8] sm:$0xff]  ;;  %v186_v2 = vld [vmem:[%s5349_s9 + $0xf0] sm:$0xff]  ;;  %v185_v6 = vld [vmem:[%s5349_s9 + $0xe8] sm:$0xff] }
  0x42   :  { %v171_v1 = vld [vmem:[%s5349_s9 + $0x78] sm:$0xff]  ;;  %4585 = vmatprep.subr.mxu0 %v187_v0  ;;  %v170_v4 = vld [vmem:[%s5349_s9 + $0x70] sm:$0xff]  ;;  %v169_v8 = vld [vmem:[%s5349_s9 + $0x68] sm:$0xff] }
  0x43   :  { %v219_v3 = vld [vmem:[%s5349_s9 + $0x1f8] sm:$0xff]  ;;  %4586 = vmatpush3.msra.mxu0 %v171_v1  ;;  %v218_v7 = vld [vmem:[%s5349_s9 + $0x1f0] sm:$0xff]  ;;  %v217_v10 = vld [vmem:[%s5349_s9 + $0x1e8] sm:$0xff] }
  0x44   :  { %v203_v5 = vld [vmem:[%s5349_s9 + $0x178] sm:$0xff]  ;;  %4620 = vmatprep.subr.mxu1 %v219_v3  ;;  %4587 = vmatprep.subr.mxu0 %v186_v2  ;;  %v202_v9 = vld [vmem:[%s5349_s9 + $0x170] sm:$0xff]  ;;  %v184_v11 = vld [vmem:[%s5349_s9 + $0xe0] sm:$0xff] }
  0x45   :  { %4621 = vmatpush3.msra.mxu1 %v203_v5  ;;  %4588 = vmatpush3.msra.mxu0 %v170_v4  ;;  %v201_v12 = vld [vmem:[%s5349_s9 + $0x168] sm:$0xff]  ;;  %v168_v13 = vld [vmem:[%s5349_s9 + $0x60] sm:$0xff]  ;;  %v183_v15 = vld [vmem:[%s5349_s9 + $0xd8] sm:$0xff] }
  0x46   :  { %4622 = vmatprep.subr.mxu1 %v218_v7  ;;  %4589 = vmatprep.subr.mxu0 %v185_v6  ;;  %v216_v14 = vld [vmem:[%s5349_s9 + $0x1e0] sm:$0xff]  ;;  %v167_v17 = vld [vmem:[%s5349_s9 + $0x58] sm:$0xff]  ;;  %v182_v19 = vld [vmem:[%s5349_s9 + $0xd0] sm:$0xff] }
  0x47   :  { %4623 = vmatpush3.msra.mxu1 %v202_v9  ;;  %4590 = vmatpush3.msra.mxu0 %v169_v8  ;;  %v200_v16 = vld [vmem:[%s5349_s9 + $0x160] sm:$0xff]  ;;  %v215_v18 = vld [vmem:[%s5349_s9 + $0x1d8] sm:$0xff]  ;;  %v166_v21 = vld [vmem:[%s5349_s9 + $0x50] sm:$0xff] }
  0x48   :  { %4624 = vmatprep.subr.mxu1 %v217_v10  ;;  %4591 = vmatprep.subr.mxu0 %v184_v11  ;;  %v199_v20 = vld [vmem:[%s5349_s9 + $0x158] sm:$0xff]  ;;  %v214_v22 = vld [vmem:[%s5349_s9 + $0x1d0] sm:$0xff]  ;;  %v181_v23 = vld [vmem:[%s5349_s9 + $0xc8] sm:$0xff] }
  0x49   :  { %4625 = vmatpush3.msra.mxu1 %v201_v12  ;;  %4592 = vmatpush3.msra.mxu0 %v168_v13  ;;  %v198_v24 = vld [vmem:[%s5349_s9 + $0x150] sm:$0xff]  ;;  %v165_v25 = vld [vmem:[%s5349_s9 + $0x48] sm:$0xff]  ;;  %v180_v27 = vld [vmem:[%s5349_s9 + $0xc0] sm:$0xff] }
  0x4a   :  { %4626 = vmatprep.subr.mxu1 %v216_v14  ;;  %4593 = vmatprep.subr.mxu0 %v183_v15  ;;  %v213_v26 = vld [vmem:[%s5349_s9 + $0x1c8] sm:$0xff]  ;;  %v164_v29 = vld [vmem:[%s5349_s9 + $0x40] sm:$0xff]  ;;  %v179_v31 = vld [vmem:[%s5349_s9 + $0xb8] sm:$0xff] }
  0x4b   :  { %4627 = vmatpush3.msra.mxu1 %v200_v16  ;;  %4594 = vmatpush3.msra.mxu0 %v167_v17  ;;  %v197_v28 = vld [vmem:[%s5349_s9 + $0x148] sm:$0xff]  ;;  %v212_v30 = vld [vmem:[%s5349_s9 + $0x1c0] sm:$0xff]  ;;  %v163_v33 = vld [vmem:[%s5349_s9 + $0x38] sm:$0xff] }
  0x4c   :  { %4628 = vmatprep.subr.mxu1 %v215_v18  ;;  %4595 = vmatprep.subr.mxu0 %v182_v19  ;;  %v196_v32 = vld [vmem:[%s5349_s9 + $0x140] sm:$0xff]  ;;  %v211_v34 = vld [vmem:[%s5349_s9 + $0x1b8] sm:$0xff]  ;;  %v178_v35 = vld [vmem:[%s5349_s9 + $0xb0] sm:$0xff] }
  0x4d   :  { %4629 = vmatpush3.msra.mxu1 %v199_v20  ;;  %4596 = vmatpush3.msra.mxu0 %v166_v21  ;;  %v195_v36 = vld [vmem:[%s5349_s9 + $0x138] sm:$0xff]  ;;  %v162_v37 = vld [vmem:[%s5349_s9 + $0x30] sm:$0xff]  ;;  %v177_v39 = vld [vmem:[%s5349_s9 + $0xa8] sm:$0xff] }
  0x4e   :  { %4630 = vmatprep.subr.mxu1 %v214_v22  ;;  %4597 = vmatprep.subr.mxu0 %v181_v23  ;;  %v210_v38 = vld [vmem:[%s5349_s9 + $0x1b0] sm:$0xff]  ;;  %v161_v41 = vld [vmem:[%s5349_s9 + $0x28] sm:$0xff]  ;;  %v176_v43 = vld [vmem:[%s5349_s9 + $0xa0] sm:$0xff] }
  0x4f   :  { %4631 = vmatpush3.msra.mxu1 %v198_v24  ;;  %4598 = vmatpush3.msra.mxu0 %v165_v25  ;;  %v194_v40 = vld [vmem:[%s5349_s9 + $0x130] sm:$0xff]  ;;  %v209_v42 = vld [vmem:[%s5349_s9 + $0x1a8] sm:$0xff]  ;;  %v160_v45 = vld [vmem:[%s5349_s9 + $0x20] sm:$0xff] }
  0x50   :  { %4632 = vmatprep.subr.mxu1 %v213_v26  ;;  %4599 = vmatprep.subr.mxu0 %v180_v27  ;;  %v193_v44 = vld [vmem:[%s5349_s9 + $0x128] sm:$0xff]  ;;  %v208_v46 = vld [vmem:[%s5349_s9 + $0x1a0] sm:$0xff]  ;;  %v175_v47 = vld [vmem:[%s5349_s9 + $0x98] sm:$0xff] }
  0x51   :  { %4633 = vmatpush3.msra.mxu1 %v197_v28  ;;  %4600 = vmatpush3.msra.mxu0 %v164_v29  ;;  %v192_v48 = vld [vmem:[%s5349_s9 + $0x120] sm:$0xff]  ;;  %v159_v49 = vld [vmem:[%s5349_s9 + $0x18] sm:$0xff]  ;;  %v174_v51 = vld [vmem:[%s5349_s9 + $0x90] sm:$0xff] }
  0x52   :  { %4634 = vmatprep.subr.mxu1 %v212_v30  ;;  %4601 = vmatprep.subr.mxu0 %v179_v31  ;;  %v207_v50 = vld [vmem:[%s5349_s9 + $0x198] sm:$0xff]  ;;  %v158_v53 = vld [vmem:[%s5349_s9 + $0x10] sm:$0xff]  ;;  %v173_v55 = vld [vmem:[%s5349_s9 + $0x88] sm:$0xff] }
  0x53   :  { %4635 = vmatpush3.msra.mxu1 %v196_v32  ;;  %4602 = vmatpush3.msra.mxu0 %v163_v33  ;;  %v191_v52 = vld [vmem:[%s5349_s9 + $0x118] sm:$0xff]  ;;  %v206_v54 = vld [vmem:[%s5349_s9 + $0x190] sm:$0xff]  ;;  %v157_v57 = vld [vmem:[%s5349_s9 + $0x8] sm:$0xff] }
  0x54   :  { %4636 = vmatprep.subr.mxu1 %v211_v34  ;;  %4603 = vmatprep.subr.mxu0 %v178_v35  ;;  %v190_v56 = vld [vmem:[%s5349_s9 + $0x110] sm:$0xff]  ;;  %v205_v58 = vld [vmem:[%s5349_s9 + $0x188] sm:$0xff]  ;;  %v172_v59 = vld [vmem:[%s5349_s9 + $0x80] sm:$0xff] }
  0x55   :  { %4637 = vmatpush3.msra.mxu1 %v195_v36  ;;  %4604 = vmatpush3.msra.mxu0 %v162_v37  ;;  %v151_v60 = vld [vmem:[%s5344_s5 + $0x8] sm:$0xff]  ;;  %v156_v61 = vld [vmem:[%s5349_s9] sm:$0xff]  ;;  %v251_v1 = vld [vmem:[%s5349_s9 + $0x2f8] sm:$0xff] }
  0x56   :  { %4638 = vmatprep.subr.mxu1 %v210_v38  ;;  %4605 = vmatprep.subr.mxu0 %v177_v39  ;;  %v189_v62 = vld [vmem:[%s5349_s9 + $0x108] sm:$0xff]  ;;  %v150_v63 = vld [vmem:[%s5344_s5] sm:$0xff]  ;;  %v153_v3 = vld [vmem:[%s5344_s5 + $0x18] sm:$0xff] }
  0x57   :  { %4639 = vmatpush3.msra.mxu1 %v194_v40  ;;  %4606 = vmatpush3.msra.mxu0 %v161_v41  ;;  %v204_v0 = vld [vmem:[%s5349_s9 + $0x180] sm:$0xff]  ;;  %v235_v4 = vld [vmem:[%s5349_s9 + $0x278] sm:$0xff]  ;;  %v152_v5 = vld [vmem:[%s5344_s5 + $0x10] sm:$0xff] }
  0x58   :  { %4640 = vmatprep.subr.mxu1 %v209_v42  ;;  %4607 = vmatprep.subr.mxu0 %v176_v43  ;;  %v188_v2 = vld [vmem:[%s5349_s9 + $0x100] sm:$0xff]  ;;  %v250_v6 = vld [vmem:[%s5349_s9 + $0x2f0] sm:$0xff]  ;;  %v155_v8 = vld [vmem:[%s5344_s5 + $0x28] sm:$0xff] }
  0x59   :  { %4641 = vmatpush3.msra.mxu1 %v193_v44  ;;  %4608 = vmatpush3.msra.mxu0 %v160_v45  ;;  %v234_v7 = vld [vmem:[%s5349_s9 + $0x270] sm:$0xff] }
  0x5a   :  { %4642 = vmatprep.subr.mxu1 %v208_v46  ;;  %4609 = vmatprep.subr.mxu0 %v175_v47 }
  0x5b   :  { %4643 = vmatpush3.msra.mxu1 %v192_v48  ;;  %4610 = vmatpush3.msra.mxu0 %v159_v49 }
  0x5c   :  { %4644 = vmatprep.subr.mxu1 %v207_v50  ;;  %4611 = vmatprep.subr.mxu0 %v174_v51 }
  0x5d   :  { %4645 = vmatpush3.msra.mxu1 %v191_v52  ;;  %4612 = vmatpush3.msra.mxu0 %v158_v53 }
  0x5e   :  { %4646 = vmatprep.subr.mxu1 %v206_v54  ;;  %4613 = vmatprep.subr.mxu0 %v173_v55 }
  0x5f   :  { %4647 = vmatpush3.msra.mxu1 %v190_v56  ;;  %4614 = vmatpush3.msra.mxu0 %v157_v57 }
  0x60   :  { %4648 = vmatprep.subr.mxu1 %v205_v58  ;;  %4615 = vmatprep.subr.mxu0 %v172_v59 }
  0x61   :  { %323 = vmatprep.mubr.f32.mxu0 %v151_v60  ;;  %4616 = vmatpush3.msra.mxu0 %v156_v61 }
  0x62   :  { %4649 = vmatpush3.msra.mxu1 %v189_v62  ;;  %324 = vmatmul.mubr.f32.vlgmr.msra.gmra.mxu0 %v150_v63 }
  0x63   :  { %4650 = vmatprep.subr.mxu1 %v204_v0  ;;  %4655 = vmatprep.subr.mxu0 %v251_v1 }
  0x64   :  { %4651 = vmatpush3.msra.mxu1 %v188_v2 }
  0x65   :  { %76 = vsyncpa [#allocation7], 0  ;;  %393 = vmatprep.mubr.f32.mxu1 %v153_v3  ;;  %4656 = vmatpush3.msra.mxu0 %v235_v4  ;;  %v249_v9 = vld [vmem:[%s5349_s9 + $0x2e8] sm:$0xff]  ;;  %v248_v11 = vld [vmem:[%s5349_s9 + $0x2e0] sm:$0xff]  ;;  %vm147_vm0 = vcmask 261120   ;;  %v5318_v38 = vmov 0.0  }
  0x66   :  { %394 = vmatmul.mubr.f32.vlgmr.msra.gmra.mxu1 %v152_v5  ;;  %4657 = vmatprep.subr.mxu0 %v250_v6  ;;  %v233_v10 = vld [vmem:[%s5349_s9 + $0x268] sm:$0xff]  ;;  %v232_v12 = vld [vmem:[%s5349_s9 + $0x260] sm:$0xff]  ;;  %v247_v13 = vld [vmem:[%s5349_s9 + $0x2d8] sm:$0xff]  ;;  %148 = vst.msk [vmem:[#allocation2] sm:$0xff] %vm147_vm0, %v5318_v38  ;;  %vm471_vm1 = vcmask 253952   ;;  %vm474_vm2 = vcmask 257024  }
  0x67   :  { %4658 = vmatpush3.msra.mxu0 %v234_v7  ;;  %463 = vmatprep.mubr.f32.mxu0 %v155_v8  ;;  %v231_v14 = vld [vmem:[%s5349_s9 + $0x258] sm:$0xff]  ;;  %v246_v15 = vld [vmem:[%s5349_s9 + $0x2d0] sm:$0xff]  ;;  %v245_v17 = vld [vmem:[%s5349_s9 + $0x2c8] sm:$0xff]  ;;  %149 = vst.msk [vmem:[#allocation2 + $0x8] sm:$0xff] %vm147_vm0, %v5318_v38  ;;  %vm482_vm3 = vcmask 261124   ;;  %vm627_vm4 = vcmask 785408  }
  0x68   :  { %4659 = vmatprep.subr.mxu0 %v249_v9  ;;  %v230_v16 = vld [vmem:[%s5349_s9 + $0x250] sm:$0xff]  ;;  %v229_v18 = vld [vmem:[%s5349_s9 + $0x248] sm:$0xff]  ;;  %v244_v19 = vld [vmem:[%s5349_s9 + $0x2c0] sm:$0xff]  ;;  %vm5319_vm5 = vmmov 0   ;;  %s5320_s0 = smov 96   ;;  %vm635_vm6 = vcmask 64512  }
  0x69   :  { %4660 = vmatpush3.msra.mxu0 %v233_v10  ;;  %v228_v20 = vld [vmem:[%s5349_s9 + $0x240] sm:$0xff]  ;;  %v243_v21 = vld [vmem:[%s5349_s9 + $0x2b8] sm:$0xff]  ;;  %v242_v23 = vld [vmem:[%s5349_s9 + $0x2b0] sm:$0xff]  ;;  %s5331_s22 = smov 48   ;;  %s5332_s23 = smov 8   ;;  %vm972_vm8 = vcmask 130112  }
  0x6a   :  { %4661 = vmatprep.subr.mxu0 %v248_v11  ;;  %v227_v22 = vld [vmem:[%s5349_s9 + $0x238] sm:$0xff]  ;;  %v226_v24 = vld [vmem:[%s5349_s9 + $0x230] sm:$0xff]  ;;  %v241_v25 = vld [vmem:[%s5349_s9 + $0x2a8] sm:$0xff]  ;;  %s5333_s26 = smov 16   ;;  %s5334_s28 = smov 24   ;;  %vm1147_vm9 = vcmask 195712  }
  0x6b   :  { %4662 = vmatpush3.msra.mxu0 %v232_v12  ;;  %v225_v26 = vld [vmem:[%s5349_s9 + $0x228] sm:$0xff]  ;;  %v240_v27 = vld [vmem:[%s5349_s9 + $0x2a0] sm:$0xff]  ;;  %v239_v29 = vld [vmem:[%s5349_s9 + $0x298] sm:$0xff]  ;;  %vm1322_vm10 = vcmask 261312   ;;  %vm2281_vm11 = vcmask 523264   ;;  %s6197_s1 = sld [smem:[#allocation13_spill]] }
  0x6c   :  { %4663 = vmatprep.subr.mxu0 %v247_v13  ;;  %v224_v28 = vld [vmem:[%s5349_s9 + $0x220] sm:$0xff]  ;;  %v223_v30 = vld [vmem:[%s5349_s9 + $0x218] sm:$0xff]  ;;  %v238_v31 = vld [vmem:[%s5349_s9 + $0x290] sm:$0xff]  ;;  %s6198_s2 = sld [smem:[#allocation15_spill]]  ;;  %vm4244_vm12 = vcmask 254976   ;;  %vm4447_vm13 = vcmask 123904  }
  0x6d   :  { %4664 = vmatpush3.msra.mxu0 %v231_v14  ;;  %v222_v32 = vld [vmem:[%s5349_s9 + $0x210] sm:$0xff]  ;;  %v237_v33 = vld [vmem:[%s5349_s9 + $0x288] sm:$0xff]  ;;  %v236_v35 = vld [vmem:[%s5349_s9 + $0x280] sm:$0xff]  ;;  %s6199_s7 = sld [smem:[#allocation16_spill]] }
  0x6e   :  { %4665 = vmatprep.subr.mxu0 %v246_v15  ;;  %v221_v34 = vld [vmem:[%s5349_s9 + $0x208] sm:$0xff]  ;;  %v220_v36 = vld [vmem:[%s5349_s9 + $0x200] sm:$0xff]  ;;  %v538_v8 = vld [vmem:[%s5379_s3 + $0x18] sm:$0xff]  ;;  %s5323_s9 = smov 64   ;;  %s6200_s10 = sld [smem:[#allocation17_spill]] }
  0x6f   :  { %4666 = vmatpush3.msra.mxu0 %v230_v16  ;;  %v154_v37 = vld [vmem:[%s5344_s5 + $0x20] sm:$0xff]  ;;  %v537_v9 = vld [vmem:[%s5379_s3 + $0x10] sm:$0xff]  ;;  %4824 = vmatprep.subr.mxu1 %v538_v8  ;;  %v536_v10 = vld [vmem:[%s5379_s3 + $0x8] sm:$0xff]  ;;  %s5321_s5 = smov 88   ;;  %s6201_s11 = sld [smem:[#allocation20_spill]] }
  0x70   :  { %4667 = vmatprep.subr.mxu0 %v245_v17  ;;  %v470_v39 = vld [vmem:[%s5359_s17] sm:$0x1]  ;;  %4825 = vmatpush3.msra.mxu1 %v538_v8  ;;  %s6202_s15 = sld [smem:[#allocation18_spill]] }
  0x71   :  { %4668 = vmatpush3.msra.mxu0 %v229_v18  ;;  %472 = vst.msk [vmem:[#allocation2] sm:$0x1] %vm471_vm1, %v470_v39  ;;  %v476_v40 = vld [vmem:[%s5359_s17] sm:$0x1]  ;;  %4826 = vmatprep.subr.mxu1 %v537_v9  ;;  %v5322_v39 = vmov -1e+30  }
  0x72   :  { %4669 = vmatprep.subr.mxu0 %v244_v19  ;;  %477 = vst.msk [vmem:[#allocation2 + $0x8] sm:$0x1] %vm471_vm1, %v476_v40  ;;  %v4498_v45 = vld [vmem:[%s5354_s13] ss:$0 sm:$0xff]  ;;  %4827 = vmatpush3.msra.mxu1 %v537_v9  ;;  %s5324_s13 = smov 120   ;;  %s5325_s17 = smov 80  }
  0x73   :  { %4670 = vmatpush3.msra.mxu0 %v228_v20  ;;  %v469_v50 = vld [vmem:[%s5364_s21] sm:$0xf]  ;;  %4828 = vmatprep.subr.mxu1 %v536_v10  ;;  %s5326_s21 = smov 56   ;;  %s6203_s16 = sld [smem:[#allocation19_spill]] }
  0x74   :  { %4671 = vmatprep.subr.mxu0 %v243_v21  ;;  %v479_v54 = vrot.slane %v469_v50, 4  ;;  %4829 = vmatpush3.msra.mxu1 %v536_v10  ;;  %v535_v11 = vld [vmem:[%s5379_s3] sm:$0xff]  ;;  %s5329_s3 = smov 72   ;;  %s6204_s18 = sld [smem:[#allocation22_spill]] }
  0x75   :  { %4672 = vmatpush3.msra.mxu0 %v227_v22  ;;  %4830 = vmatprep.subr.mxu1 %v535_v11  ;;  %v4499_v19 = vld [vmem:[%s5369_s25] ss:$0 sm:$0xff]  ;;  %s5327_s25 = smov 112  }
  0x76   :  { %4673 = vmatprep.subr.mxu0 %v242_v23  ;;  %4831 = vmatpush3.msra.mxu1 %v535_v11  ;;  %v4500_v21 = vld [vmem:[%s5374_s29] ss:$0 sm:$0xff]  ;;  %s5328_s29 = smov 104  }
  0x77   :  { %4674 = vmatpush3.msra.mxu0 %v226_v24  ;;  %4840 = vmatprep.subr.mxu1 %v5318_v38 }
  0x78   :  { %4675 = vmatprep.subr.mxu0 %v241_v25 }
  0x79   :  { %4676 = vmatpush3.msra.mxu0 %v225_v26 }
  0x7a   :  { %4677 = vmatprep.subr.mxu0 %v240_v27 }
  0x7b   :  { %4678 = vmatpush3.msra.mxu0 %v224_v28  ;;  %v4501_v28 = vld [vmem:[%s5384_s8] ss:$0 sm:$0xff]  ;;  %s5330_s8 = smov 40  }
  0x7c   :  { %4679 = vmatprep.subr.mxu0 %v239_v29 }
  0x7d   :  { %4680 = vmatpush3.msra.mxu0 %v223_v30 }
  0x7e   :  { %4681 = vmatprep.subr.mxu0 %v238_v31 }
  0x7f   :  { %4682 = vmatpush3.msra.mxu0 %v222_v32 }
  0x80   :  { %4683 = vmatprep.subr.mxu0 %v237_v33 }
  0x81   :  { %4684 = vmatpush3.msra.mxu0 %v221_v34 }
  0x82   :  { %4685 = vmatprep.subr.mxu0 %v236_v35 }
  0x83   :  { %4686 = vmatpush3.msra.mxu0 %v220_v36  ;;  %v484_v36 = vlaneseq }
  0x84   :  { %464 = vmatmul.mubr.f32.vlgmr.msra.gmra.mxu0 %v154_v37  ;;  %4835 = vmatprep.subr.mxu0 %v5318_v38 }
  0x85   :  { %4837 = vmatprep.mubr.msk.f32.mxu0 %vm5319_vm5, %v5318_v38  ;;  %v485_v37 = vand.u32 127, %v484_v36 }
  0x87   :  { %vm486_vm7 = vcmp.lt.s32.totalorder %v485_v37, 5 }
  0x88   :  { %v5674_v40 = vsel %vm486_vm7, 0.0, %v5322_v39 }
 0x122   :  { %v4617_v41 = vpop.f32.mrf.mxu0 }
 0x124   :  { %v4618_v42 = vpop.f32.mrf.mxu0 }
 0x125   :  { %v4619_v44 = vadd.f32 %v4618_v42, %v4617_v41 }
 0x126   :  { %v4652_v43 = vpop.f32.mrf.mxu1 }
 0x127   :  { %v326_v47 = vadd.f32 %v4619_v44, %v4498_v45 }
 0x128   :  { %v4653_v46 = vpop.f32.mrf.mxu1 }
 0x129   :  { %v4654_v48 = vadd.f32 %v4653_v46, %v4652_v43 }
 0x12b   :  { %v396_v52 = vadd.f32 %v4654_v48, %v326_v47 }
 0x144   :  { %v4687_v49 = vpop.f32.mrf.mxu0 }
 0x146   :  { %v4688_v51 = vpop.f32.mrf.mxu0 }
 0x147   :  { %v4689_v53 = vadd.f32 %v4688_v51, %v4687_v49 }
 0x149   :  { %v466_v55 = vadd.f32 %v4689_v53, %v396_v52 }
 0x14b   :  { %v473_v56 = vadd.f32 %v469_v50, %v466_v55  ;;  %v481_v57 = vadd.f32 %v479_v54, %v466_v55 }
 0x14d   :  { %475 = vst.msk [vmem:[#allocation2 + $0x1] sm:$0xf] %vm474_vm2, %v473_v56 }
 0x14e   :  { %483 = vst.msk [vmem:[#allocation2 + $0x5] sm:$0xf0] %vm482_vm3, %v481_v57 }
 0x154   :  { %v5634_v58 = vld [vmem:[#allocation2] sm:$0xff] }
 0x155   :  { %v490_v59 = vsel %vm147_vm0, %v5634_v58, 0.0  ;;  %v5638_v60 = vld [vmem:[#allocation2 + $0x8] sm:$0xff] }
 0x156   :  { %491 = vadd.xlane.f32.xlu0 %v490_v59  ;;  %v493_v61 = vsel %vm147_vm0, %v5638_v60, 0.0 }
 0x15a   :  { %494 = vadd.xlane.f32.xlu0 %v493_v61 }
 0x1df   :  { %v492_v62 = vpop.xlane.xlu0 %491 }
 0x1e0   :  { %v497_v63 = vmul.f32 0.03125, %v492_v62 }
 0x1e2   :  { %v499_v0 = vsub.f32 %v5634_v58, %v497_v63 }
 0x1e3   :  { %v495_v1 = vpop.xlane.xlu0 %494 }
 0x1e4   :  { %v498_v2 = vmul.f32 0.03125, %v495_v1  ;;  %v501_v3 = vmul.f32 %v499_v0, %v499_v0 }
 0x1e6   :  { %v500_v4 = vsub.f32 %v5638_v60, %v498_v2  ;;  %v503_v5 = vsel %vm147_vm0, %v501_v3, 0.0 }
 0x1e7   :  { %504 = vadd.xlane.f32.xlu1 %v503_v5 }
 0x1e8   :  { %v502_v6 = vmul.f32 %v500_v4, %v500_v4 }
 0x1ea   :  { %v506_v7 = vsel %vm147_vm0, %v502_v6, 0.0 }
 0x1eb   :  { %507 = vadd.xlane.f32.xlu1 %v506_v7 }
 0x270   :  { %v505_v12 = vpop.xlane.xlu1 %504 }
 0x271   :  { %v509_v13 = vmul.f32 0.03125, %v505_v12 }
 0x273   :  { %v511_v14 = vadd.f32 1e-06, %v509_v13 }
 0x274   :  { %v508_v15 = vpop.xlane.xlu1 %507 }
 0x275   :  { %5171 = vrsqrt.f32 %v511_v14  ;;  %v510_v16 = vmul.f32 0.03125, %v508_v15 }
 0x277   :  { %v512_v17 = vadd.f32 1e-06, %v510_v16 }
 0x279   :  { %5173 = vrsqrt.f32 %v512_v17 }
 0x282   :  { %v5172_v18 = vpop.eup %5171 }
 0x283   :  { %v515_v20 = vmul.f32 %v5172_v18, %v499_v0 }
 0x285   :  { %v524_v22 = vmul.f32 %v4499_v19, %v515_v20 }
 0x286   :  { %v5174_v23 = vpop.eup %5173 }
 0x287   :  { %v516_v24 = vmul.f32 %v5174_v23, %v500_v4  ;;  %v533_v25 = vadd.f32 %v4500_v21, %v524_v22 }
 0x289   :  { %v525_v26 = vmul.f32 %v4499_v19, %v516_v24  ;;  %4832 = vmatprep.mubr.msk.f32.mxu1 %vm147_vm0, %v533_v25 }
 0x28b   :  { %v534_v27 = vadd.f32 %v4500_v21, %v525_v26 }
 0x28d   :  { %4833 = vmatmul.mubr.msk.f32.vlgmr.msra.gmra.mxu1 %vm147_vm0, %v534_v27 }
 0x28e   :  { %4842 = vmatprep.mubr.msk.f32.mxu1 %vm5319_vm5, %v5318_v38 }
 0x34d   :  { %v4834_v29 = vpop.f32.mrf.mxu1 }
 0x34e   :  { %v624_v30 = vadd.f32 %v4834_v29, %v4501_v28 }
 0x34f   :  { %v618_v31 = vpop.f32.mrf.mxu1 }
 0x350   :  { %629 = vst.msk [vmem:[#allocation4 + $0x8] sm:$0xff] %vm627_vm4, %v624_v30  ;;  %v619_v32 = vadd.f32 %v4501_v28, %v618_v31 }
 0x352   :  { %628 = vst.msk [vmem:[#allocation4] sm:$0xff] %vm627_vm4, %v619_v32 }
 0x357   :  { %v5700_v0 = vld [vmem:[#allocation4 + $0x8] sm:$0xff] }
 0x358   :  { %v1325_v7 = vmul.f32 0.35355338, %v5700_v0 }
 0x359   :  { %v5662_v33 = vld [vmem:[#allocation4] sm:$0xff] }
 0x35a   :  { %633 = vrot.lane.b32.xlu0 %v5662_v33, %s5320_s0  ;;  %v631_v35 = vmul.f32 0.35355338, %v5662_v33 }
 0x35e   :  { %805 = vrot.lane.b32.xlu0 %v5662_v33, %s5321_s5 }
 0x3cc   :  { %v634_v34 = vpop.permute.xlu0 %633 }
 0x3cd   :  { %4836 = vmatpush3.xpose.msk.msra.mxu0 %vm635_vm6, %v634_v34 }
 0x3ce   :  { %4865 = vmatprep.subr.mxu0 %v5318_v38 }
 0x3d0   :  { %4838 = vmatmul.mubr.msk.f32.vlgmr.msra.gmra.mxu0 %vm635_vm6, %v631_v35  ;;  %v806_v54 = vpop.permute.xlu0 %805 }
 0x3d1   :  { %4867 = vmatprep.mubr.msk.f32.mxu0 %vm5319_vm5, %v5318_v38 }
 0x490   :  { %v707_v41 = vpop.f32.mrf.mxu0 }
 0x491   :  { %v708_v42 = vadd.f32 %v707_v41, %v5674_v40 }
 0x492   :  { %v4839_v43 = vpop.f32.mrf.mxu0 }
 0x493   :  { %v711_v44 = vsel %vm635_vm6, %v708_v42, -inf }
 0x494   :  { %712 = vmax.xlane.f32.xlu1 %v711_v44 }
 0x4a5   :  { %722 = vrot.lane.b32.xlu1 %v5662_v33, %s5323_s9 }
 0x51d   :  { %v713_v45 = vpop.xlane.xlu1 %712 }
 0x51e   :  { %v714_v46 = vsub.f32 %v708_v42, %v713_v45 }
 0x520   :  { %v715_v47 = vmul.f32 1.442695, %v714_v46 }
 0x521   :  { %v723_v48 = vpop.permute.xlu1 %722 }
 0x522   :  { %5175 = vpow2.f32 %v715_v47  ;;  %4841 = vmatpush3.msra.mxu1 %v723_v48 }
 0x523   :  { %4845 = vmatprep.subr.mxu1 %v5318_v38 }
 0x52f   :  { %v5176_v49 = vpop.eup %5175 }
 0x530   :  { %v717_v50 = vsel %vm635_vm6, %v5176_v49, 0.0 }
 0x531   :  { %718 = vadd.xlane.f32.xlu1 %v717_v50 }
 0x542   :  { %802 = vrot.lane.b32.xlu1 %v631_v35, %s5324_s13 }
 0x546   :  { %980 = vrot.lane.b32.xlu1 %v5662_v33, %s5325_s17 }
 0x5ba   :  { %v719_v51 = vpop.xlane.xlu1 %718 }
 0x5bb   :  { %5177 = vrcp.f32 %v719_v51 }
 0x5be   :  { %v803_v55 = vpop.permute.xlu1 %802 }
 0x5c2   :  { %v981_v8 = vpop.permute.xlu1 %980 }
 0x5c8   :  { %v5178_v52 = vpop.eup %5177 }
 0x5c9   :  { %v721_v53 = vmul.f32 %v5178_v52, %v5176_v49 }
 0x5cb   :  { %4843 = vmatmul.mubr.msk.f32.vlgmr.msra.gmra.mxu1 %vm635_vm6, %v721_v53 }
 0x5cc   :  { %4846 = vmatpush3.xpose.msk.msra.mxu1 %vm635_vm6, %v806_v54  ;;  %4847 = vmatprep.mubr.msk.f32.mxu1 %vm5319_vm5, %v5318_v38 }
 0x5cd   :  { %4850 = vmatprep.subr.mxu1 %v5318_v38 }
 0x5cf   :  { %4848 = vmatmul.mubr.msk.f32.vlgmr.msra.gmra.mxu1 %vm635_vm6, %v803_v55 }
 0x5d0   :  { %4852 = vmatprep.mubr.msk.f32.mxu1 %vm5319_vm5, %v5318_v38 }
 0x68b   :  { %v794_v56 = vpop.f32.mrf.mxu1 }
 0x68c   :  { %798 = vst.msk [vmem:[#allocation3] sm:$0xff] %vm635_vm6, %v794_v56 }
 0x68d   :  { %v4844_v57 = vpop.f32.mrf.mxu1 }
 0x68f   :  { %v877_v59 = vpop.f32.mrf.mxu1 }
 0x690   :  { %v878_v61 = vadd.f32 %v877_v59, %v5674_v40 }
 0x691   :  { %v4849_v62 = vpop.f32.mrf.mxu1 }
 0x692   :  { %v881_v63 = vsel %vm635_vm6, %v878_v61, -inf }
 0x693   :  { %882 = vmax.xlane.f32.xlu0 %v881_v63 }
 0x6a9   :  { %892 = vrot.lane.b32.xlu0 %v5662_v33, %s5326_s21 }
 0x6ad   :  { %977 = vrot.lane.b32.xlu0 %v631_v35, %s5327_s25 }
 0x6b1   :  { %1152 = vrot.lane.b32.xlu0 %v631_v35, %s5328_s29 }
 0x6b5   :  { %1498 = vrot.lane.b32.xlu0 %v5700_v0, %s5321_s5 }
 0x6b9   :  { %1672 = vrot.lane.b32.xlu0 %v5700_v0, %s5325_s17 }
 0x6bd   :  { %1846 = vrot.lane.b32.xlu0 %v5700_v0, %s5329_s3 }
 0x71c   :  { %v883_v1 = vpop.xlane.xlu0 %882 }
 0x71d   :  { %v884_v2 = vsub.f32 %v878_v61, %v883_v1 }
 0x71f   :  { %v885_v3 = vmul.f32 1.442695, %v884_v2 }
 0x720   :  { %v893_v4 = vpop.permute.xlu0 %892 }
 0x721   :  { %5179 = vpow2.f32 %v885_v3  ;;  %4851 = vmatpush3.msra.mxu1 %v893_v4 }
 0x722   :  { %4855 = vmatprep.subr.mxu1 %v5318_v38 }
 0x724   :  { %v978_v9 = vpop.permute.xlu0 %977 }
 0x728   :  { %v1153_v11 = vpop.permute.xlu0 %1152 }
 0x72c   :  { %v1499_v13 = vpop.permute.xlu0 %1498 }
 0x72e   :  { %v5180_v5 = vpop.eup %5179 }
 0x72f   :  { %v887_v6 = vsel %vm635_vm6, %v5180_v5, 0.0 }
 0x730   :  { %888 = vadd.xlane.f32.xlu1 %v887_v6  ;;  %v1673_v17 = vpop.permute.xlu0 %1672 }
 0x734   :  { %v1847_v20 = vpop.permute.xlu0 %1846 }
 0x741   :  { %1155 = vrot.lane.b32.xlu1 %v5662_v33, %s5329_s3 }
 0x745   :  { %1327 = vrot.lane.b32.xlu1 %v5700_v0, %s5320_s0 }
 0x749   :  { %1495 = vrot.lane.b32.xlu1 %v1325_v7, %s5324_s13 }
 0x74d   :  { %1669 = vrot.lane.b32.xlu1 %v1325_v7, %s5327_s25 }
 0x751   :  { %1843 = vrot.lane.b32.xlu1 %v1325_v7, %s5328_s29 }
 0x7b9   :  { %v889_v10 = vpop.xlane.xlu1 %888 }
 0x7ba   :  { %5181 = vrcp.f32 %v889_v10 }
 0x7bd   :  { %v1156_v12 = vpop.permute.xlu1 %1155 }
 0x7be   :  { %4866 = vmatpush3.xpose.msk.msra.mxu0 %vm635_vm6, %v1156_v12 }
 0x7bf   :  { %4875 = vmatprep.subr.mxu0 %v5318_v38 }
 0x7c1   :  { %4868 = vmatmul.mubr.msk.f32.vlgmr.msra.gmra.mxu0 %vm635_vm6, %v1153_v11  ;;  %v1328_v14 = vpop.permute.xlu1 %1327 }
 0x7c2   :  { %4876 = vmatpush3.xpose.msk.msra.mxu0 %vm635_vm6, %v1328_v14  ;;  %4877 = vmatprep.mubr.msk.f32.mxu0 %vm5319_vm5, %v5318_v38 }
 0x7c3   :  { %4885 = vmatprep.subr.mxu0 %v5318_v38 }
 0x7c5   :  { %4878 = vmatmul.mubr.msk.f32.vlgmr.msra.gmra.mxu0 %vm635_vm6, %v1325_v7  ;;  %v1496_v15 = vpop.permute.xlu1 %1495 }
 0x7c6   :  { %4886 = vmatpush3.xpose.msk.msra.mxu0 %vm635_vm6, %v1499_v13  ;;  %4887 = vmatprep.mubr.msk.f32.mxu0 %vm5319_vm5, %v5318_v38 }
 0x7c7   :  { %v5182_v16 = vpop.eup %5181  ;;  %4895 = vmatprep.subr.mxu0 %v5318_v38 }
 0x7c8   :  { %v891_v18 = vmul.f32 %v5182_v16, %v5180_v5 }
 0x7c9   :  { %4888 = vmatmul.mubr.msk.f32.vlgmr.msra.gmra.mxu0 %vm635_vm6, %v1496_v15  ;;  %v1670_v19 = vpop.permute.xlu1 %1669 }
 0x7ca   :  { %4853 = vmatmul.mubr.msk.f32.vlgmr.msra.gmra.mxu1 %vm635_vm6, %v891_v18  ;;  %4896 = vmatpush3.xpose.msk.msra.mxu0 %vm635_vm6, %v1673_v17 }
 0x7cb   :  { %4856 = vmatpush3.xpose.msk.msra.mxu1 %vm635_vm6, %v981_v8  ;;  %4897 = vmatprep.mubr.msk.f32.mxu0 %vm5319_vm5, %v5318_v38 }
 0x7cc   :  { %4857 = vmatprep.mubr.msk.f32.mxu1 %vm5319_vm5, %v5318_v38  ;;  %4905 = vmatprep.subr.mxu0 %v5318_v38 }
 0x7cd   :  { %4898 = vmatmul.mubr.msk.f32.vlgmr.msra.gmra.mxu0 %vm635_vm6, %v1670_v19  ;;  %4860 = vmatprep.subr.mxu1 %v5318_v38  ;;  %v1844_v21 = vpop.permute.xlu1 %1843 }
 0x7ce   :  { %4858 = vmatmul.mubr.msk.f32.vlgmr.msra.gmra.mxu1 %vm635_vm6, %v978_v9  ;;  %4906 = vmatpush3.xpose.msk.msra.mxu0 %vm635_vm6, %v1847_v20 }
 0x7cf   :  { %4907 = vmatprep.mubr.msk.f32.mxu0 %vm5319_vm5, %v5318_v38  ;;  %4862 = vmatprep.mubr.msk.f32.mxu1 %vm5319_vm5, %v5318_v38 }
 0x7d1   :  { %4908 = vmatmul.mubr.msk.f32.vlgmr.msra.gmra.mxu0 %vm635_vm6, %v1844_v21 }
 0x881   :  { %v1227_v22 = vpop.f32.mrf.mxu0 }
 0x882   :  { %v1228_v23 = vadd.f32 %v1227_v22, %v5674_v40 }
 0x883   :  { %v4869_v24 = vpop.f32.mrf.mxu0 }
 0x884   :  { %v1231_v25 = vsel %vm635_vm6, %v1228_v23, -inf }
 0x885   :  { %1232 = vmax.xlane.f32.xlu1 %v1231_v25  ;;  %v1400_v26 = vpop.f32.mrf.mxu0 }
 0x886   :  { %v1401_v39 = vadd.f32 %v1400_v26, %v5674_v40 }
 0x887   :  { %v4879_v27 = vpop.f32.mrf.mxu0 }
 0x888   :  { %v1404_v47 = vsel %vm635_vm6, %v1401_v39, -inf }
 0x889   :  { %v1570_v28 = vpop.f32.mrf.mxu0 }
 0x88a   :  { %v5750_v29 = vpop.f32.mrf.mxu1  ;;  %v1571_v46 = vadd.f32 %v1570_v28, %v5674_v40 }
 0x88b   :  { %v4889_v30 = vpop.f32.mrf.mxu0 }
 0x88c   :  { %v4854_v31 = vpop.f32.mrf.mxu1  ;;  %v1574_v49 = vsel %vm635_vm6, %v1571_v46, -inf }
 0x88d   :  { %v1744_v32 = vpop.f32.mrf.mxu0 }
 0x88e   :  { %v1052_v34 = vpop.f32.mrf.mxu1  ;;  %v1745_v48 = vadd.f32 %v1744_v32, %v5674_v40 }
 0x88f   :  { %v1053_v35 = vadd.f32 %v1052_v34, %v5674_v40  ;;  %v4899_v36 = vpop.f32.mrf.mxu0 }
 0x890   :  { %v4859_v37 = vpop.f32.mrf.mxu1  ;;  %v1748_v50 = vsel %vm635_vm6, %v1745_v48, -inf }
 0x891   :  { %v1918_v41 = vpop.f32.mrf.mxu0  ;;  %v1056_v42 = vsel %vm635_vm6, %v1053_v35, -inf }
 0x892   :  { %v1919_v43 = vadd.f32 %v1918_v41, %v5674_v40  ;;  %1057 = vmax.xlane.f32.xlu0 %v1056_v42 }
 0x893   :  { %v4909_v44 = vpop.f32.mrf.mxu0 }
 0x894   :  { %v1922_v45 = vsel %vm635_vm6, %v1919_v43, -inf }
 0x895   :  { %1923 = vmax.xlane.f32.xlu1 %v1922_v45 }
 0x896   :  { %1405 = vmax.xlane.f32.xlu0 %v1404_v47 }
 0x89a   :  { %1575 = vmax.xlane.f32.xlu0 %v1574_v49 }
 0x89e   :  { %1749 = vmax.xlane.f32.xlu0 %v1748_v50 }
 0x90e   :  { %v1233_v51 = vpop.xlane.xlu1 %1232 }
 0x90f   :  { %v1234_v52 = vsub.f32 %v1228_v23, %v1233_v51  ;;  %v2019_v51 = vld [vmem:[%s5389_s14 + $0x18] sm:$0xff] }
 0x910   :  { %4915 = vmatprep.subr.mxu0 %v2019_v51 }
 0x911   :  { %v1235_v53 = vmul.f32 1.442695, %v1234_v52  ;;  %v2018_v52 = vld [vmem:[%s5389_s14 + $0x10] sm:$0xff]  ;;  %4916 = vmatpush3.msra.mxu0 %v2019_v51 }
 0x912   :  { %4917 = vmatprep.subr.mxu0 %v2018_v52 }
 0x913   :  { %5183 = vpow2.f32 %v1235_v53  ;;  %4918 = vmatpush3.msra.mxu0 %v2018_v52 }
 0x91b   :  { %v1058_v54 = vpop.xlane.xlu0 %1057 }
 0x91c   :  { %v1059_v3 = vsub.f32 %v1053_v35, %v1058_v54  ;;  %v2017_v54 = vld [vmem:[%s5389_s14 + $0x8] sm:$0xff] }
 0x91d   :  { %4919 = vmatprep.subr.mxu0 %v2017_v54 }
 0x91e   :  { %v1924_v55 = vpop.xlane.xlu1 %1923  ;;  %v1060_v8 = vmul.f32 1.442695, %v1059_v3  ;;  %4920 = vmatpush3.msra.mxu0 %v2017_v54 }
 0x91f   :  { %v1406_v56 = vpop.xlane.xlu0 %1405  ;;  %v1925_v62 = vsub.f32 %v1919_v43, %v1924_v55 }
 0x920   :  { %v5762_v57 = vpop.eup %5183  ;;  %v1407_v59 = vsub.f32 %v1401_v39, %v1406_v56  ;;  %v2016_v56 = vld [vmem:[%s5389_s14] sm:$0xff]  ;;  %s6192_s14 = sld [smem:[#allocation10_spill]] }
 0x921   :  { %v1237_v61 = vsel %vm635_vm6, %v5762_v57, 0.0  ;;  %v1926_v4 = vmul.f32 1.442695, %v1925_v62  ;;  %4921 = vmatprep.subr.mxu0 %v2016_v56 }
 0x922   :  { %v1408_v63 = vmul.f32 1.442695, %v1407_v59  ;;  %1238 = vadd.xlane.f32.xlu1 %v1237_v61  ;;  %4922 = vmatpush3.msra.mxu0 %v2016_v56 }
 0x923   :  { %v1576_v1 = vpop.xlane.xlu0 %1575 }
 0x924   :  { %5185 = vpow2.f32 %v1408_v63  ;;  %v1577_v2 = vsub.f32 %v1571_v46, %v1576_v1 }
 0x926   :  { %v1578_v5 = vmul.f32 1.442695, %v1577_v2  ;;  %v2268_v51 = vld [vmem:[%s6192_s14 + $0x10] sm:$0xff]  ;;  %v2267_v52 = vld [vmem:[%s6192_s14 + $0x8] sm:$0xff] }
 0x927   :  { %v1750_v6 = vpop.xlane.xlu0 %1749 }
 0x928   :  { %5187 = vpow2.f32 %v1578_v5  ;;  %v1751_v7 = vsub.f32 %v1745_v48, %v1750_v6 }
 0x929   :  { %5189 = vpow2.f32 %v1926_v4 }
 0x92a   :  { %v1752_v9 = vmul.f32 1.442695, %v1751_v7 }
 0x92c   :  { %5191 = vpow2.f32 %v1752_v9 }
 0x92d   :  { %5193 = vpow2.f32 %v1060_v8  ;;  %v4528_v8 = vld [vmem:[%s5394_s19] ss:$0 sm:$0xff]  ;;  %s6193_s19 = sld [smem:[#allocation9_spill]] }
 0x931   :  { %v5186_v10 = vpop.eup %5185 }
 0x932   :  { %v1410_v11 = vsel %vm635_vm6, %v5186_v10, 0.0 }
 0x933   :  { %1411 = vadd.xlane.f32.xlu0 %v1410_v11  ;;  %v4533_v54 = vld [vmem:[%s6193_s19] ss:$0 sm:$0xff] }
 0x935   :  { %v5767_v12 = vpop.eup %5187 }
 0x936   :  { %v1580_v13 = vsel %vm635_vm6, %v5767_v12, 0.0  ;;  %v5771_v14 = vpop.eup %5189 }
 0x937   :  { %1581 = vadd.xlane.f32.xlu1 %v1580_v13  ;;  %v1928_v17 = vsel %vm635_vm6, %v5771_v14, 0.0 }
 0x939   :  { %v5773_v15 = vpop.eup %5191 }
 0x93a   :  { %v1754_v16 = vsel %vm635_vm6, %v5773_v15, 0.0  ;;  %v5194_v18 = vpop.eup %5193 }
 0x93b   :  { %1755 = vadd.xlane.f32.xlu0 %v1754_v16  ;;  %1929 = vadd.xlane.f32.xlu1 %v1928_v17  ;;  %v1062_v19 = vsel %vm635_vm6, %v5194_v18, 0.0 }
 0x93f   :  { %1063 = vadd.xlane.f32.xlu0 %v1062_v19 }
 0x94c   :  { %1242 = vrot.lane.b32.xlu1 %v5662_v33, %s5330_s8 }
 0x950   :  { %1415 = vrot.lane.b32.xlu1 %v5700_v0, %s5323_s9 }
 0x954   :  { %1585 = vrot.lane.b32.xlu1 %v5700_v0, %s5326_s21 }
 0x955   :  { %1067 = vrot.lane.b32.xlu0 %v5662_v33, %s5331_s22 }
 0x958   :  { %1933 = vrot.lane.b32.xlu1 %v5700_v0, %s5330_s8 }
 0x959   :  { %1759 = vrot.lane.b32.xlu0 %v5700_v0, %s5331_s22 }
 0x95d   :  { %969 = vrot.lane.b32.xlu0 %v5750_v29, %s5332_s23 }
 0x9ab   :  { %v1239_v22 = vpop.xlane.xlu1 %1238 }
 0x9bc   :  { %v1412_v20 = vpop.xlane.xlu0 %1411 }
 0x9c0   :  { %v1582_v24 = vpop.xlane.xlu1 %1581 }
 0x9c4   :  { %v1756_v21 = vpop.xlane.xlu0 %1755  ;;  %v1930_v33 = vpop.xlane.xlu1 %1929 }
 0x9c8   :  { %v1064_v23 = vpop.xlane.xlu0 %1063  ;;  %v1243_v27 = vpop.permute.xlu1 %1242 }
 0x9c9   :  { %5195 = vrcp.f32 %v1064_v23 }
 0x9ca   :  { %5197 = vrcp.f32 %v1239_v22 }
 0x9cb   :  { %5199 = vrcp.f32 %v1412_v20 }
 0x9cc   :  { %v1068_v25 = vpop.permute.xlu0 %1067  ;;  %5201 = vrcp.f32 %v1582_v24  ;;  %v1416_v31 = vpop.permute.xlu1 %1415 }
 0x9cd   :  { %4861 = vmatpush3.msra.mxu1 %v1068_v25  ;;  %5203 = vrcp.f32 %v1756_v21  ;;  %v2159_v25 = vld [vmem:[%s5409_s6 + $0x18] sm:$0xff] }
 0x9ce   :  { %4870 = vmatprep.subr.mxu1 %v5318_v38  ;;  %5205 = vrcp.f32 %v1930_v33  ;;  %v2158_v33 = vld [vmem:[%s5409_s6 + $0x10] sm:$0xff] }
 0x9d0   :  { %v1760_v26 = vpop.permute.xlu0 %1759  ;;  %v1586_v37 = vpop.permute.xlu1 %1585 }
 0x9d4   :  { %v970_v0 = vpop.permute.xlu0 %969  ;;  %v1934_v44 = vpop.permute.xlu1 %1933 }
 0x9d5   :  { %973 = vst.msk [vmem:[#allocation3] sm:$0xff] %vm972_vm8, %v970_v0  ;;  %v2156_v0 = vld [vmem:[%s5409_s6] sm:$0xff] }
 0x9d6   :  { %v5196_v28 = vpop.eup %5195 }
 0x9d7   :  { %v1066_v29 = vmul.f32 %v5196_v28, %v5194_v18  ;;  %v5198_v30 = vpop.eup %5197 }
 0x9d8   :  { %v1241_v32 = vmul.f32 %v5198_v30, %v5762_v57  ;;  %v5200_v34 = vpop.eup %5199 }
 0x9d9   :  { %4863 = vmatmul.mubr.msk.f32.vlgmr.msra.gmra.mxu1 %vm635_vm6, %v1066_v29  ;;  %v1414_v35 = vmul.f32 %v5200_v34, %v5186_v10  ;;  %v5202_v36 = vpop.eup %5201 }
 0x9da   :  { %4871 = vmatpush3.msra.mxu1 %v1243_v27  ;;  %4872 = vmatprep.mubr.msk.f32.mxu1 %vm5319_vm5, %v5318_v38  ;;  %v1584_v39 = vmul.f32 %v5202_v36, %v5767_v12  ;;  %v5204_v41 = vpop.eup %5203 }
 0x9db   :  { %4880 = vmatprep.subr.mxu1 %v5318_v38  ;;  %v1758_v42 = vmul.f32 %v5204_v41, %v5773_v15  ;;  %v5206_v43 = vpop.eup %5205 }
 0x9dc   :  { %v1932_v45 = vmul.f32 %v5206_v43, %v5771_v14 }
 0x9dd   :  { %4873 = vmatmul.mubr.msk.f32.vlgmr.msra.gmra.mxu1 %vm635_vm6, %v1241_v32 }
 0x9de   :  { %4881 = vmatpush3.msra.mxu1 %v1416_v31  ;;  %4882 = vmatprep.mubr.msk.f32.mxu1 %vm5319_vm5, %v5318_v38 }
 0x9df   :  { %4890 = vmatprep.subr.mxu1 %v5318_v38 }
 0x9e1   :  { %4883 = vmatmul.mubr.msk.f32.vlgmr.msra.gmra.mxu1 %vm635_vm6, %v1414_v35  ;;  %v4531_v35 = vld [vmem:[%s5399_s24] ss:$0 sm:$0xff]  ;;  %s6194_s24 = sld [smem:[#allocation11_spill]] }
 0x9e2   :  { %4891 = vmatpush3.msra.mxu1 %v1586_v37  ;;  %4892 = vmatprep.mubr.msk.f32.mxu1 %vm5319_vm5, %v5318_v38  ;;  %v4532_v37 = vld [vmem:[%s5404_s30] ss:$0 sm:$0xff]  ;;  %s6195_s30 = sld [smem:[#allocation14_spill]] }
 0x9e3   :  { %4900 = vmatprep.subr.mxu1 %v5318_v38 }
 0x9e5   :  { %4893 = vmatmul.mubr.msk.f32.vlgmr.msra.gmra.mxu1 %vm635_vm6, %v1584_v39 }
 0x9e6   :  { %4901 = vmatpush3.msra.mxu1 %v1760_v26  ;;  %4902 = vmatprep.mubr.msk.f32.mxu1 %vm5319_vm5, %v5318_v38  ;;  %v2157_v26 = vld [vmem:[%s5409_s6 + $0x8] sm:$0xff]  ;;  %s6196_s6 = sld [smem:[#allocation12_spill]] }
 0x9e7   :  { %4910 = vmatprep.subr.mxu1 %v5318_v38 }
 0x9e9   :  { %4903 = vmatmul.mubr.msk.f32.vlgmr.msra.gmra.mxu1 %vm635_vm6, %v1758_v42 }
 0x9ea   :  { %4911 = vmatpush3.msra.mxu1 %v1934_v44  ;;  %4912 = vmatprep.mubr.msk.f32.mxu1 %vm5319_vm5, %v5318_v38 }
 0x9eb   :  { %4926 = vmatprep.subr.mxu1 %v2159_v25 }
 0x9ed   :  { %4913 = vmatmul.mubr.msk.f32.vlgmr.msra.gmra.mxu1 %vm635_vm6, %v1932_v45 }
 0x9ee   :  { %4927 = vmatpush3.msra.mxu1 %v2159_v25 }
 0x9ef   :  { %4928 = vmatprep.subr.mxu1 %v2158_v33 }
 0x9f0   :  { %4929 = vmatpush3.msra.mxu1 %v2158_v33 }
 0x9f1   :  { %4930 = vmatprep.subr.mxu1 %v2157_v26 }
 0x9f2   :  { %4931 = vmatpush3.msra.mxu1 %v2157_v26 }
 0x9f3   :  { %4932 = vmatprep.subr.mxu1 %v2156_v0 }
 0x9f4   :  { %4933 = vmatpush3.msra.mxu1 %v2156_v0 }
 0xa99   :  { %v1139_v46 = vpop.f32.mrf.mxu1 }
 0xa9a   :  { %1144 = vrot.lane.b32.xlu1 %v1139_v46, %s5333_s26  ;;  %v2273_v46 = vld [vmem:[%s6192_s14 + $0x38] sm:$0xff] }
 0xa9b   :  { %v4864_v47 = vpop.f32.mrf.mxu1  ;;  %4937 = vmatprep.subr.mxu0 %v2273_v46 }
 0xa9c   :  { %v2272_v47 = vld [vmem:[%s6192_s14 + $0x30] sm:$0xff] }
 0xa9d   :  { %v1314_v48 = vpop.f32.mrf.mxu1 }
 0xa9e   :  { %1319 = vrot.lane.b32.xlu1 %v1314_v48, %s5334_s28  ;;  %v2271_v48 = vld [vmem:[%s6192_s14 + $0x28] sm:$0xff] }
 0xa9f   :  { %v4874_v49 = vpop.f32.mrf.mxu1 }
 0xaa0   :  { %v2270_v49 = vld [vmem:[%s6192_s14 + $0x20] sm:$0xff] }
 0xaa1   :  { %v1487_v50 = vpop.f32.mrf.mxu1 }
 0xaa2   :  { %1491 = vst.msk [vmem:[#allocation3 + $0x8] sm:$0xff] %vm635_vm6, %v1487_v50  ;;  %v2269_v50 = vld [vmem:[%s6192_s14 + $0x18] sm:$0xff] }
 0xaa3   :  { %v4884_v53 = vpop.f32.mrf.mxu1 }
 0xaa4   :  { %v2266_v53 = vld [vmem:[%s6192_s14] sm:$0xff] }
 0xaa5   :  { %v1657_v55 = vpop.f32.mrf.mxu1 }
 0xaa6   :  { %1662 = vrot.lane.b32.xlu0 %v1657_v55, %s5332_s23 }
 0xaa7   :  { %v4894_v57 = vpop.f32.mrf.mxu1 }
 0xaa9   :  { %v1831_v59 = vpop.f32.mrf.mxu1 }
 0xaaa   :  { %1836 = vrot.lane.b32.xlu0 %v1831_v59, %s5333_s26 }
 0xaab   :  { %v4904_v61 = vpop.f32.mrf.mxu1 }
 0xaad   :  { %v2005_v62 = vpop.f32.mrf.mxu1 }
 0xaae   :  { %2010 = vrot.lane.b32.xlu1 %v2005_v62, %s5334_s28 }
 0xaaf   :  { %v4914_v63 = vpop.f32.mrf.mxu1 }
 0xb0c   :  { %v1145_v1 = vpop.permute.xlu1 %1144 }
 0xb0d   :  { %1148 = vst.msk [vmem:[#allocation3] sm:$0xff] %vm1147_vm9, %v1145_v1 }
 0xb10   :  { %v1320_v2 = vpop.permute.xlu1 %1319 }
 0xb11   :  { %1323 = vst.msk [vmem:[#allocation3] sm:$0xff] %vm1322_vm10, %v1320_v2 }
 0xb18   :  { %v1663_v3 = vpop.permute.xlu0 %1662  ;;  %v2014_v4 = vld [vmem:[#allocation3] sm:$0xff] }
 0xb19   :  { %1665 = vst.msk [vmem:[#allocation3 + $0x8] sm:$0xff] %vm972_vm8, %v1663_v3  ;;  %4923 = vmatprep.mubr.msk.f32.mxu0 %vm147_vm0, %v2014_v4 }
 0xb1c   :  { %v1837_v5 = vpop.permute.xlu0 %1836 }
 0xb1d   :  { %1839 = vst.msk [vmem:[#allocation3 + $0x8] sm:$0xff] %vm1147_vm9, %v1837_v5 }
 0xb20   :  { %v2011_v6 = vpop.permute.xlu1 %2010 }
 0xb21   :  { %2013 = vst.msk [vmem:[#allocation3 + $0x8] sm:$0xff] %vm1322_vm10, %v2011_v6 }
 0xb28   :  { %v2015_v7 = vld [vmem:[#allocation3 + $0x8] sm:$0xff] }
 0xb29   :  { %4924 = vmatmul.mubr.msk.f32.vlgmr.msra.gmra.mxu0 %vm147_vm0, %v2015_v7 }
 0xb2a   :  { %4938 = vmatpush3.msra.mxu0 %v2273_v46 }
 0xb2b   :  { %4939 = vmatprep.subr.mxu0 %v2272_v47 }
 0xb2c   :  { %4940 = vmatpush3.msra.mxu0 %v2272_v47 }
 0xb2d   :  { %4941 = vmatprep.subr.mxu0 %v2271_v48 }
 0xb2e   :  { %4942 = vmatpush3.msra.mxu0 %v2271_v48  ;;  %v4539_v48 = vld [vmem:[%s6196_s6] ss:$0 sm:$0xff] }
 0xb2f   :  { %4943 = vmatprep.subr.mxu0 %v2270_v49 }
 0xb30   :  { %4944 = vmatpush3.msra.mxu0 %v2270_v49 }
 0xb31   :  { %4945 = vmatprep.subr.mxu0 %v2269_v50 }
 0xb32   :  { %4946 = vmatpush3.msra.mxu0 %v2269_v50 }
 0xb33   :  { %4947 = vmatprep.subr.mxu0 %v2268_v51 }
 0xb34   :  { %4948 = vmatpush3.msra.mxu0 %v2268_v51 }
 0xb35   :  { %4949 = vmatprep.subr.mxu0 %v2267_v52 }
 0xb36   :  { %4950 = vmatpush3.msra.mxu0 %v2267_v52 }
 0xb37   :  { %4951 = vmatprep.subr.mxu0 %v2266_v53 }
 0xb38   :  { %4952 = vmatpush3.msra.mxu0 %v2266_v53  ;;  %v4540_v53 = vld [vmem:[%s6197_s1] ss:$0 sm:$0xff] }
 0xb39   :  { %4977 = vmatprep.subr.mxu0 %v5318_v38 }
 0xbe9   :  { %v4925_v9 = vpop.f32.mrf.mxu0 }
 0xbea   :  { %v2105_v10 = vadd.f32 %v4925_v9, %v4528_v8 }
 0xbeb   :  { %v2099_v11 = vpop.f32.mrf.mxu0 }
 0xbec   :  { %v5839_v12 = vadd.f32 %v2105_v10, %v5638_v60  ;;  %v2100_v13 = vadd.f32 %v4528_v8, %v2099_v11 }
 0xbee   :  { %2111 = vst.msk [vmem:[#allocation2 + $0x8] sm:$0xff] %vm147_vm0, %v5839_v12  ;;  %v5844_v14 = vadd.f32 %v2100_v13, %v5634_v58  ;;  %v2115_v15 = vsel %vm147_vm0, %v5839_v12, 0.0 }
 0xbef   :  { %2116 = vadd.xlane.f32.xlu1 %v2115_v15 }
 0xbf0   :  { %2110 = vst.msk [vmem:[#allocation2] sm:$0xff] %vm147_vm0, %v5844_v14  ;;  %v2112_v60 = vsel %vm147_vm0, %v5844_v14, 0.0 }
 0xbf1   :  { %2113 = vadd.xlane.f32.xlu0 %v2112_v60 }
 0xc78   :  { %v2117_v16 = vpop.xlane.xlu1 %2116 }
 0xc79   :  { %v2119_v17 = vmul.f32 0.03125, %v2117_v16 }
 0xc7a   :  { %v2114_v18 = vpop.xlane.xlu0 %2113 }
 0xc7b   :  { %v2118_v19 = vmul.f32 0.03125, %v2114_v18  ;;  %v2121_v58 = vsub.f32 %v5839_v12, %v2119_v17  ;;  %v4536_v17 = vld [vmem:[%s6194_s24] ss:$0 sm:$0xff] }
 0xc7d   :  { %v2120_v20 = vsub.f32 %v5844_v14, %v2118_v19  ;;  %v2123_v23 = vmul.f32 %v2121_v58, %v2121_v58 }
 0xc7f   :  { %v2122_v21 = vmul.f32 %v2120_v20, %v2120_v20  ;;  %v2127_v24 = vsel %vm147_vm0, %v2123_v23, 0.0 }
 0xc81   :  { %v2124_v22 = vsel %vm147_vm0, %v2122_v21, 0.0 }
 0xc82   :  { %2125 = vadd.xlane.f32.xlu0 %v2124_v22 }
 0xc86   :  { %2128 = vadd.xlane.f32.xlu0 %v2127_v24 }
 0xd0b   :  { %v2126_v27 = vpop.xlane.xlu0 %2125 }
 0xd0c   :  { %v2130_v28 = vmul.f32 0.03125, %v2126_v27 }
 0xd0e   :  { %v2132_v29 = vadd.f32 1e-06, %v2130_v28 }
 0xd0f   :  { %v2129_v30 = vpop.xlane.xlu0 %2128 }
 0xd10   :  { %5207 = vrsqrt.f32 %v2132_v29  ;;  %v2131_v31 = vmul.f32 0.03125, %v2129_v30 }
 0xd12   :  { %v2133_v32 = vadd.f32 1e-06, %v2131_v31 }
 0xd14   :  { %5209 = vrsqrt.f32 %v2133_v32 }
 0xd1d   :  { %v5208_v34 = vpop.eup %5207 }
 0xd1e   :  { %v2136_v36 = vmul.f32 %v5208_v34, %v2120_v20  ;;  %v2416_v34 = vld [vmem:[%s6195_s30 + $0x18] sm:$0xff] }
 0xd1f   :  { %4956 = vmatprep.subr.mxu1 %v2416_v34 }
 0xd20   :  { %v2145_v39 = vmul.f32 %v4531_v35, %v2136_v36  ;;  %v2414_v36 = vld [vmem:[%s6195_s30 + $0x8] sm:$0xff] }
 0xd21   :  { %v5210_v41 = vpop.eup %5209 }
 0xd22   :  { %v2137_v42 = vmul.f32 %v5210_v41, %v2121_v58  ;;  %v2154_v43 = vadd.f32 %v4532_v37, %v2145_v39 }
 0xd24   :  { %v2146_v44 = vmul.f32 %v4531_v35, %v2137_v42  ;;  %4934 = vmatprep.mubr.msk.f32.mxu1 %vm147_vm0, %v2154_v43  ;;  %v2415_v35 = vld [vmem:[%s6195_s30 + $0x10] sm:$0xff] }
 0xd26   :  { %v2155_v45 = vadd.f32 %v4532_v37, %v2146_v44  ;;  %v2413_v37 = vld [vmem:[%s6195_s30] sm:$0xff] }
 0xd28   :  { %4935 = vmatmul.mubr.msk.f32.vlgmr.msra.gmra.mxu1 %vm147_vm0, %v2155_v45 }
 0xd29   :  { %4957 = vmatpush3.msra.mxu1 %v2416_v34 }
 0xd2a   :  { %4958 = vmatprep.subr.mxu1 %v2415_v35 }
 0xd2b   :  { %4959 = vmatpush3.msra.mxu1 %v2415_v35 }
 0xd2c   :  { %4960 = vmatprep.subr.mxu1 %v2414_v36 }
 0xd2d   :  { %4961 = vmatpush3.msra.mxu1 %v2414_v36 }
 0xd2e   :  { %4962 = vmatprep.subr.mxu1 %v2413_v37 }
 0xd2f   :  { %4963 = vmatpush3.msra.mxu1 %v2413_v37 }
 0xd30   :  { %4967 = vmatprep.subr.mxu1 %v5318_v38 }
 0xde8   :  { %v4936_v55 = vpop.f32.mrf.mxu1 }
 0xde9   :  { %v2245_v56 = vadd.f32 %v4936_v55, %v4533_v54 }
 0xdea   :  { %v2239_v57 = vpop.f32.mrf.mxu1 }
 0xdeb   :  { %v2249_v59 = vmul.f32 %v2245_v56, %v2245_v56  ;;  %v2240_v61 = vadd.f32 %v4533_v54, %v2239_v57 }
 0xded   :  { %v2251_v62 = vmul.f32 %v2249_v59, %v2245_v56  ;;  %v2248_v63 = vmul.f32 %v2240_v61, %v2240_v61 }
 0xdef   :  { %v2253_v1 = vmul.f32 0.044715, %v2251_v62  ;;  %v2250_v2 = vmul.f32 %v2248_v63, %v2240_v61 }
 0xdf1   :  { %v2255_v3 = vadd.f32 %v2253_v1, %v2245_v56  ;;  %v2252_v4 = vmul.f32 0.044715, %v2250_v2 }
 0xdf3   :  { %v2257_v5 = vmul.f32 0.7978846, %v2255_v3  ;;  %v2254_v6 = vadd.f32 %v2252_v4, %v2240_v61 }
 0xdf5   :  { %5211 = vtanh.f32 %v2257_v5  ;;  %v2256_v7 = vmul.f32 0.7978846, %v2254_v6 }
 0xdf7   :  { %5213 = vtanh.f32 %v2256_v7 }
 0xe02   :  { %v5212_v8 = vpop.eup %5211 }
 0xe03   :  { %v2261_v9 = vadd.f32 1.0, %v5212_v8 }
 0xe04   :  { %v5214_v10 = vpop.eup %5213 }
 0xe05   :  { %v2260_v11 = vadd.f32 1.0, %v5214_v10  ;;  %v2263_v13 = vmul.f32 0.5, %v2261_v9 }
 0xe07   :  { %v2262_v15 = vmul.f32 0.5, %v2260_v11  ;;  %v2265_v16 = vmul.f32 %v2263_v13, %v2245_v56  ;;  %v4541_v56 = vld [vmem:[%s6198_s2] ss:$0 sm:$0xff] }
 0xe09   :  { %v2264_v60 = vmul.f32 %v2262_v15, %v2240_v61 }
 0xe0b   :  { %4953 = vmatprep.mubr.msk.f32.mxu0 %vm2281_vm11, %v2264_v60 }
 0xe0c   :  { %4954 = vmatmul.mubr.msk.f32.vlgmr.msra.gmra.mxu0 %vm2281_vm11, %v2265_v16 }
 0xe0d   :  { %4979 = vmatprep.mubr.msk.f32.mxu0 %vm5319_vm5, %v5318_v38 }
 0xecc   :  { %v4955_v18 = vpop.f32.mrf.mxu0 }
 0xecd   :  { %v2360_v19 = vadd.f32 %v4955_v18, %v4536_v17 }
 0xece   :  { %v2354_v58 = vpop.f32.mrf.mxu0 }
 0xecf   :  { %v2364_v20 = vadd.f32 %v2360_v19, %v5839_v12  ;;  %v2355_v21 = vadd.f32 %v4536_v17, %v2354_v58 }
 0xed1   :  { %2366 = vst.msk [vmem:[#allocation2 + $0x8] sm:$0xff] %vm147_vm0, %v2364_v20  ;;  %v2363_v22 = vadd.f32 %v2355_v21, %v5844_v14 }
 0xed3   :  { %2365 = vst.msk [vmem:[#allocation2] sm:$0xff] %vm147_vm0, %v2363_v22 }
 0xed8   :  { %v5883_v23 = vld [vmem:[#allocation2 + $0x8] sm:$0xff] }
 0xed9   :  { %v2372_v24 = vsel %vm147_vm0, %v5883_v23, 0.0 }
 0xeda   :  { %2373 = vadd.xlane.f32.xlu1 %v2372_v24  ;;  %v5887_v25 = vld [vmem:[#allocation2] sm:$0xff] }
 0xedb   :  { %v2369_v12 = vsel %vm147_vm0, %v5887_v25, 0.0 }
 0xedc   :  { %2370 = vadd.xlane.f32.xlu0 %v2369_v12 }
 0xf63   :  { %v2374_v33 = vpop.xlane.xlu1 %2373 }
 0xf64   :  { %v2376_v26 = vmul.f32 0.03125, %v2374_v33 }
 0xf65   :  { %v2371_v14 = vpop.xlane.xlu0 %2370 }
 0xf66   :  { %v2378_v0 = vsub.f32 %v5883_v23, %v2376_v26  ;;  %v2375_v27 = vmul.f32 0.03125, %v2371_v14 }
 0xf68   :  { %v2377_v28 = vsub.f32 %v5887_v25, %v2375_v27  ;;  %v2380_v29 = vmul.f32 %v2378_v0, %v2378_v0 }
 0xf6a   :  { %v2384_v30 = vsel %vm147_vm0, %v2380_v29, 0.0  ;;  %v2379_v31 = vmul.f32 %v2377_v28, %v2377_v28 }
 0xf6b   :  { %2385 = vadd.xlane.f32.xlu1 %v2384_v30 }
 0xf6c   :  { %v2381_v32 = vsel %vm147_vm0, %v2379_v31, 0.0 }
 0xf6d   :  { %2382 = vadd.xlane.f32.xlu0 %v2381_v32 }
 0xff4   :  { %v2386_v39 = vpop.xlane.xlu1 %2385 }
 0xff5   :  { %v2388_v41 = vmul.f32 0.03125, %v2386_v39 }
 0xff6   :  { %v2383_v42 = vpop.xlane.xlu0 %2382 }
 0xff7   :  { %v2390_v43 = vadd.f32 1e-06, %v2388_v41  ;;  %v2387_v44 = vmul.f32 0.03125, %v2383_v42 }
 0xff9   :  { %5215 = vrsqrt.f32 %v2390_v43  ;;  %v2389_v45 = vadd.f32 1e-06, %v2387_v44 }
 0xffb   :  { %5217 = vrsqrt.f32 %v2389_v45 }
0x1006   :  { %v5216_v46 = vpop.eup %5215 }
0x1007   :  { %v2394_v47 = vmul.f32 %v5216_v46, %v2378_v0 }
0x1008   :  { %v5218_v49 = vpop.eup %5217 }
0x1009   :  { %v2393_v50 = vmul.f32 %v5218_v49, %v2377_v28  ;;  %v2403_v51 = vmul.f32 %v4539_v48, %v2394_v47 }
0x100b   :  { %v2402_v52 = vmul.f32 %v4539_v48, %v2393_v50  ;;  %v2412_v55 = vadd.f32 %v4540_v53, %v2403_v51 }
0x100d   :  { %v2411_v54 = vadd.f32 %v4540_v53, %v2402_v52 }
0x100f   :  { %4964 = vmatprep.mubr.msk.f32.mxu1 %vm147_vm0, %v2411_v54 }
0x1010   :  { %4965 = vmatmul.mubr.msk.f32.vlgmr.msra.gmra.mxu1 %vm147_vm0, %v2412_v55 }
0x1011   :  { %4969 = vmatprep.mubr.msk.f32.mxu1 %vm5319_vm5, %v5318_v38 }
0x10d0   :  { %v4966_v57 = vpop.f32.mrf.mxu1 }
0x10d1   :  { %v2502_v59 = vadd.f32 %v4966_v57, %v4541_v56 }
0x10d2   :  { %v2496_v61 = vpop.f32.mrf.mxu1 }
0x10d3   :  { %2506 = vst.msk [vmem:[#allocation4 + $0x8] sm:$0xff] %vm627_vm4, %v2502_v59  ;;  %v2497_v62 = vadd.f32 %v4541_v56, %v2496_v61 }
0x10d5   :  { %2505 = vst.msk [vmem:[#allocation4] sm:$0xff] %vm627_vm4, %v2497_v62 }
0x10da   :  { %v5921_v2 = vld [vmem:[#allocation4 + $0x8] sm:$0xff] }
0x10db   :  { %v3198_v3 = vmul.f32 0.35355338, %v5921_v2 }
0x10dc   :  { %v5909_v63 = vld [vmem:[#allocation4] sm:$0xff] }
0x10dd   :  { %2681 = vrot.lane.b32.xlu1 %v5909_v63, %s5321_s5  ;;  %2510 = vrot.lane.b32.xlu0 %v5909_v63, %s5320_s0  ;;  %v2508_v1 = vmul.f32 0.35355338, %v5909_v63 }
0x10e1   :  { %2678 = vrot.lane.b32.xlu1 %v2508_v1, %s5324_s13  ;;  %2852 = vrot.lane.b32.xlu0 %v2508_v1, %s5327_s25 }
0x10e5   :  { %2855 = vrot.lane.b32.xlu1 %v5909_v63, %s5325_s17  ;;  %3026 = vrot.lane.b32.xlu0 %v2508_v1, %s5328_s29 }
0x10e9   :  { %3029 = vrot.lane.b32.xlu1 %v5909_v63, %s5329_s3  ;;  %3371 = vrot.lane.b32.xlu0 %v5921_v2, %s5321_s5  ;;  %s6206_s5 = sld [smem:[#allocation23_spill]] }
0x10ed   :  { %3200 = vrot.lane.b32.xlu1 %v5921_v2, %s5320_s0  ;;  %3545 = vrot.lane.b32.xlu0 %v5921_v2, %s5325_s17  ;;  %s6205_s0 = sld [smem:[#allocation21_spill]] }
0x10ee   :  { %s6209_s17 = sld [smem:[#allocation25_spill]] }
0x10f1   :  { %3368 = vrot.lane.b32.xlu1 %v3198_v3, %s5324_s13  ;;  %3719 = vrot.lane.b32.xlu0 %v5921_v2, %s5329_s3  ;;  %s6208_s13 = sld [smem:[#allocation24_spill]] }
0x10f5   :  { %3542 = vrot.lane.b32.xlu1 %v3198_v3, %s5327_s25 }
0x10f9   :  { %3716 = vrot.lane.b32.xlu1 %v3198_v3, %s5328_s29 }
0x114f   :  { %v2682_v4 = vpop.permute.xlu1 %2681  ;;  %v2511_v5 = vpop.permute.xlu0 %2510 }
0x1150   :  { %4968 = vmatpush3.xpose.msk.msra.mxu1 %vm635_vm6, %v2511_v5  ;;  %4978 = vmatpush3.xpose.msk.msra.mxu0 %vm635_vm6, %v2682_v4 }
0x1151   :  { %4987 = vmatprep.subr.mxu0 %v5318_v38  ;;  %4972 = vmatprep.subr.mxu1 %v5318_v38 }
0x1153   :  { %v2679_v6 = vpop.permute.xlu1 %2678  ;;  %v2853_v7 = vpop.permute.xlu0 %2852  ;;  %4970 = vmatmul.mubr.msk.f32.vlgmr.msra.gmra.mxu1 %vm635_vm6, %v2508_v1 }
0x1154   :  { %4980 = vmatmul.mubr.msk.f32.vlgmr.msra.gmra.mxu0 %vm635_vm6, %v2679_v6  ;;  %4974 = vmatprep.mubr.msk.f32.mxu1 %vm5319_vm5, %v5318_v38 }
0x1155   :  { %4989 = vmatprep.mubr.msk.f32.mxu0 %vm5319_vm5, %v5318_v38 }
0x1157   :  { %v2856_v8 = vpop.permute.xlu1 %2855  ;;  %v3027_v9 = vpop.permute.xlu0 %3026 }
0x1158   :  { %4988 = vmatpush3.xpose.msk.msra.mxu0 %vm635_vm6, %v2856_v8 }
0x1159   :  { %4997 = vmatprep.subr.mxu0 %v5318_v38 }
0x115b   :  { %v3030_v10 = vpop.permute.xlu1 %3029  ;;  %4990 = vmatmul.mubr.msk.f32.vlgmr.msra.gmra.mxu0 %vm635_vm6, %v2853_v7  ;;  %v3372_v11 = vpop.permute.xlu0 %3371 }
0x115c   :  { %4998 = vmatpush3.xpose.msk.msra.mxu0 %vm635_vm6, %v3030_v10  ;;  %4999 = vmatprep.mubr.msk.f32.mxu0 %vm5319_vm5, %v5318_v38 }
0x115d   :  { %5007 = vmatprep.subr.mxu0 %v5318_v38 }
0x115f   :  { %v3201_v13 = vpop.permute.xlu1 %3200  ;;  %5000 = vmatmul.mubr.msk.f32.vlgmr.msra.gmra.mxu0 %vm635_vm6, %v3027_v9  ;;  %v3546_v60 = vpop.permute.xlu0 %3545 }
0x1160   :  { %5008 = vmatpush3.xpose.msk.msra.mxu0 %vm635_vm6, %v3201_v13  ;;  %5009 = vmatprep.mubr.msk.f32.mxu0 %vm5319_vm5, %v5318_v38 }
0x1161   :  { %5017 = vmatprep.subr.mxu0 %v5318_v38 }
0x1163   :  { %v3369_v15 = vpop.permute.xlu1 %3368  ;;  %5010 = vmatmul.mubr.msk.f32.vlgmr.msra.gmra.mxu0 %vm635_vm6, %v3198_v3  ;;  %v3720_v17 = vpop.permute.xlu0 %3719 }
0x1164   :  { %5018 = vmatpush3.xpose.msk.msra.mxu0 %vm635_vm6, %v3372_v11  ;;  %5019 = vmatprep.mubr.msk.f32.mxu0 %vm5319_vm5, %v5318_v38 }
0x1165   :  { %5027 = vmatprep.subr.mxu0 %v5318_v38 }
0x1167   :  { %5020 = vmatmul.mubr.msk.f32.vlgmr.msra.gmra.mxu0 %vm635_vm6, %v3369_v15  ;;  %v3543_v16 = vpop.permute.xlu1 %3542 }
0x1168   :  { %5028 = vmatpush3.xpose.msk.msra.mxu0 %vm635_vm6, %v3546_v60  ;;  %5029 = vmatprep.mubr.msk.f32.mxu0 %vm5319_vm5, %v5318_v38 }
0x1169   :  { %5037 = vmatprep.subr.mxu0 %v5318_v38 }
0x116b   :  { %5030 = vmatmul.mubr.msk.f32.vlgmr.msra.gmra.mxu0 %vm635_vm6, %v3543_v16  ;;  %v3717_v18 = vpop.permute.xlu1 %3716 }
0x116c   :  { %5038 = vmatpush3.xpose.msk.msra.mxu0 %vm635_vm6, %v3720_v17  ;;  %5039 = vmatprep.mubr.msk.f32.mxu0 %vm5319_vm5, %v5318_v38 }
0x116f   :  { %5040 = vmatmul.mubr.msk.f32.vlgmr.msra.gmra.mxu0 %vm635_vm6, %v3717_v18 }
0x1213   :  { %v2583_v19 = vpop.f32.mrf.mxu1 }
0x1214   :  { %v2584_v58 = vadd.f32 %v2583_v19, %v5674_v40  ;;  %v2753_v20 = vpop.f32.mrf.mxu0 }
0x1215   :  { %v2754_v21 = vadd.f32 %v2753_v20, %v5674_v40  ;;  %v4971_v22 = vpop.f32.mrf.mxu1 }
0x1216   :  { %v4981_v24 = vpop.f32.mrf.mxu0  ;;  %v2587_v12 = vsel %vm635_vm6, %v2584_v58, -inf }
0x1217   :  { %2588 = vmax.xlane.f32.xlu0 %v2587_v12  ;;  %v2757_v33 = vsel %vm635_vm6, %v2754_v21, -inf }
0x1218   :  { %2758 = vmax.xlane.f32.xlu1 %v2757_v33 }
0x121b   :  { %v2927_v26 = vpop.f32.mrf.mxu0 }
0x121c   :  { %v5979_v14 = vadd.f32 %v2927_v26, %v5674_v40 }
0x121d   :  { %v4991_v0 = vpop.f32.mrf.mxu0 }
0x121e   :  { %v2931_v27 = vsel %vm635_vm6, %v5979_v14, -inf }
0x121f   :  { %v3101_v28 = vpop.f32.mrf.mxu0  ;;  %2932 = vmax.xlane.f32.xlu0 %v2931_v27 }
0x1220   :  { %v3102_v29 = vadd.f32 %v3101_v28, %v5674_v40 }
0x1221   :  { %v5001_v30 = vpop.f32.mrf.mxu0 }
0x1222   :  { %v3105_v31 = vsel %vm635_vm6, %v3102_v29, -inf }
0x1223   :  { %v3273_v32 = vpop.f32.mrf.mxu0  ;;  %3106 = vmax.xlane.f32.xlu0 %v3105_v31 }
0x1224   :  { %v3274_v34 = vadd.f32 %v3273_v32, %v5674_v40 }
0x1225   :  { %v5011_v35 = vpop.f32.mrf.mxu0 }
0x1226   :  { %v3277_v36 = vsel %vm635_vm6, %v3274_v34, -inf }
0x1227   :  { %v3443_v37 = vpop.f32.mrf.mxu0  ;;  %3278 = vmax.xlane.f32.xlu0 %v3277_v36 }
0x1228   :  { %v3444_v39 = vadd.f32 %v3443_v37, %v5674_v40 }
0x1229   :  { %v5021_v41 = vpop.f32.mrf.mxu0 }
0x122a   :  { %v3447_v42 = vsel %vm635_vm6, %v3444_v39, -inf }
0x122b   :  { %3448 = vmax.xlane.f32.xlu1 %v3447_v42  ;;  %v3617_v43 = vpop.f32.mrf.mxu0 }
0x122c   :  { %v3618_v44 = vadd.f32 %v3617_v43, %v5674_v40 }
0x122d   :  { %v5031_v45 = vpop.f32.mrf.mxu0 }
0x122e   :  { %v3621_v46 = vsel %vm635_vm6, %v3618_v44, -inf }
0x122f   :  { %v3791_v47 = vpop.f32.mrf.mxu0  ;;  %3622 = vmax.xlane.f32.xlu0 %v3621_v46 }
0x1230   :  { %v3792_v49 = vadd.f32 %v3791_v47, %v5674_v40 }
0x1231   :  { %v5041_v48 = vpop.f32.mrf.mxu0 }
0x1232   :  { %v3795_v50 = vsel %vm635_vm6, %v3792_v49, -inf }
0x123c   :  { %2598 = vrot.lane.b32.xlu1 %v5909_v63, %s5323_s9 }
0x1260   :  { %3796 = vmax.xlane.f32.xlu1 %v3795_v50 }
0x1271   :  { %2942 = vrot.lane.b32.xlu1 %v5909_v63, %s5331_s22 }
0x1275   :  { %3116 = vrot.lane.b32.xlu1 %v5909_v63, %s5330_s8 }
0x1279   :  { %3288 = vrot.lane.b32.xlu1 %v5921_v2, %s5323_s9  ;;  %s6207_s9 = sld [smem:[#allocation26_spill]] }
0x12a0   :  { %v2589_v51 = vpop.xlane.xlu0 %2588 }
0x12a1   :  { %v2590_v52 = vsub.f32 %v2584_v58, %v2589_v51  ;;  %v2759_v53 = vpop.xlane.xlu1 %2758 }
0x12a2   :  { %v2760_v54 = vsub.f32 %v2754_v21, %v2759_v53 }
0x12a3   :  { %v2591_v55 = vmul.f32 1.442695, %v2590_v52 }
0x12a4   :  { %v2761_v56 = vmul.f32 1.442695, %v2760_v54 }
0x12a5   :  { %5219 = vpow2.f32 %v2591_v55 }
0x12a6   :  { %5221 = vpow2.f32 %v2761_v56 }
0x12a8   :  { %v2933_v40 = vpop.xlane.xlu0 %2932 }
0x12a9   :  { %v2934_v9 = vsub.f32 %v5979_v14, %v2933_v40 }
0x12ab   :  { %v2935_v11 = vmul.f32 1.442695, %v2934_v9 }
0x12ac   :  { %v3107_v57 = vpop.xlane.xlu0 %3106 }
0x12ad   :  { %v3108_v59 = vsub.f32 %v3102_v29, %v3107_v57 }
0x12af   :  { %v3109_v61 = vmul.f32 1.442695, %v3108_v59 }
0x12b0   :  { %v3279_v10 = vpop.xlane.xlu0 %3278 }
0x12b1   :  { %5223 = vpow2.f32 %v3109_v61  ;;  %v3280_v13 = vsub.f32 %v3274_v34, %v3279_v10 }
0x12b2   :  { %v5220_v62 = vpop.eup %5219  ;;  %5225 = vpow2.f32 %v2935_v11  ;;  %v3892_v11 = vld [vmem:[%s6199_s7 + $0x18] sm:$0xff] }
0x12b3   :  { %v6001_v1 = vpop.eup %5221  ;;  %v2593_v3 = vsel %vm635_vm6, %v5220_v62, 0.0  ;;  %v3281_v60 = vmul.f32 1.442695, %v3280_v13  ;;  %v3891_v13 = vld [vmem:[%s6199_s7 + $0x10] sm:$0xff]  ;;  %5047 = vmatprep.subr.mxu0 %v3892_v11 }
0x12b4   :  { %v3449_v4 = vpop.xlane.xlu1 %3448  ;;  %2594 = vadd.xlane.f32.xlu0 %v2593_v3  ;;  %v2763_v5 = vsel %vm635_vm6, %v6001_v1, 0.0  ;;  %5048 = vmatpush3.msra.mxu0 %v3892_v11  ;;  %v4141_v11 = vld [vmem:[%s6204_s18 + $0x10] sm:$0xff] }
0x12b5   :  { %2764 = vadd.xlane.f32.xlu1 %v2763_v5  ;;  %5227 = vpow2.f32 %v3281_v60  ;;  %v3450_v17 = vsub.f32 %v3444_v39, %v3449_v4  ;;  %v3890_v60 = vld [vmem:[%s6199_s7 + $0x8] sm:$0xff]  ;;  %5049 = vmatprep.subr.mxu0 %v3891_v13 }
0x12b6   :  { %5050 = vmatpush3.msra.mxu0 %v3891_v13  ;;  %v4140_v13 = vld [vmem:[%s6204_s18 + $0x8] sm:$0xff] }
0x12b7   :  { %v3451_v19 = vmul.f32 1.442695, %v3450_v17  ;;  %v3889_v17 = vld [vmem:[%s6199_s7] sm:$0xff]  ;;  %5051 = vmatprep.subr.mxu0 %v3890_v60 }
0x12b8   :  { %v2599_v6 = vpop.permute.xlu1 %2598  ;;  %v3623_v15 = vpop.xlane.xlu0 %3622  ;;  %5052 = vmatpush3.msra.mxu0 %v3890_v60  ;;  %v4573_v60 = vld [vmem:[%s6205_s0] ss:$0 sm:$0xff] }
0x12b9   :  { %4973 = vmatpush3.msra.mxu1 %v2599_v6  ;;  %v3624_v16 = vsub.f32 %v3618_v44, %v3623_v15  ;;  %5053 = vmatprep.subr.mxu0 %v3889_v17 }
0x12ba   :  { %4982 = vmatprep.subr.mxu1 %v5318_v38  ;;  %5054 = vmatpush3.msra.mxu0 %v3889_v17 }
0x12bb   :  { %v3625_v18 = vmul.f32 1.442695, %v3624_v16 }
0x12bd   :  { %5229 = vpow2.f32 %v3625_v18 }
0x12be   :  { %v6007_v7 = vpop.eup %5223  ;;  %5231 = vpow2.f32 %v3451_v19 }
0x12bf   :  { %v3111_v8 = vsel %vm635_vm6, %v6007_v7, 0.0  ;;  %v5226_v58 = vpop.eup %5225 }
0x12c0   :  { %3112 = vadd.xlane.f32.xlu1 %v3111_v8 }
0x12c2   :  { %v6017_v20 = vpop.eup %5227 }
0x12c3   :  { %v3283_v12 = vsel %vm635_vm6, %v6017_v20, 0.0 }
0x12ca   :  { %2768 = vrot.lane.b32.xlu0 %v5909_v63, %s5326_s21  ;;  %v2937_v63 = vsel %vm635_vm6, %v5226_v58, 0.0  ;;  %v6021_v33 = vpop.eup %5229 }
0x12cb   :  { %v3627_v26 = vsel %vm635_vm6, %v6021_v33, 0.0  ;;  %v5232_v14 = vpop.eup %5231 }
0x12cc   :  { %v3453_v0 = vsel %vm635_vm6, %v5232_v14, 0.0 }
0x12d1   :  { %3458 = vrot.lane.b32.xlu1 %v5921_v2, %s5326_s21  ;;  %s5335_s21 = smov [#allocation6]  }
0x12d2   :  { %s4455_s25 = sshll.u32 %s5335_s21, 4  ;;  %s4456_s25 = int_to_ptr.vmem [resolvable:$true] %s4455_s25 }
0x12d3   :  { %p5266_p1 = scmp.lt.s32.totalorder %s4456_s25, %s4456_s25 }
0x12e9   :  { %v3797_v21 = vpop.xlane.xlu1 %3796  ;;  %2938 = vadd.xlane.f32.xlu0 %v2937_v63 }
0x12ea   :  { %v3798_v22 = vsub.f32 %v3792_v49, %v3797_v21 }
0x12ec   :  { %v3799_v24 = vmul.f32 1.442695, %v3798_v22 }
0x12ed   :  { %3284 = vadd.xlane.f32.xlu0 %v3283_v12  ;;  %v2943_v29 = vpop.permute.xlu1 %2942 }
0x12ee   :  { %5233 = vpow2.f32 %v3799_v24 }
0x12f1   :  { %3628 = vadd.xlane.f32.xlu0 %v3627_v26  ;;  %v3117_v30 = vpop.permute.xlu1 %3116 }
0x12f5   :  { %3454 = vadd.xlane.f32.xlu1 %v3453_v0  ;;  %v3289_v31 = vpop.permute.xlu1 %3288 }
0x12fb   :  { %v6026_v27 = vpop.eup %5233 }
0x12fc   :  { %v3801_v28 = vsel %vm635_vm6, %v6026_v27, 0.0 }
0x12fd   :  { %3802 = vadd.xlane.f32.xlu0 %v3801_v28 }
0x1306   :  { %3806 = vrot.lane.b32.xlu1 %v5921_v2, %s5330_s8 }
0x1313   :  { %3632 = vrot.lane.b32.xlu0 %v5921_v2, %s5331_s22 }
0x133d   :  { %v2595_v32 = vpop.xlane.xlu0 %2594 }
0x133e   :  { %5235 = vrcp.f32 %v2595_v32  ;;  %v2765_v34 = vpop.xlane.xlu1 %2764 }
0x133f   :  { %5237 = vrcp.f32 %v2765_v34 }
0x1341   :  { %v2769_v39 = vpop.permute.xlu0 %2768 }
0x1349   :  { %v3113_v41 = vpop.xlane.xlu1 %3112 }
0x134b   :  { %v5236_v35 = vpop.eup %5235 }
0x134c   :  { %v2597_v36 = vmul.f32 %v5236_v35, %v5220_v62  ;;  %v5238_v37 = vpop.eup %5237 }
0x134d   :  { %v2767_v2 = vmul.f32 %v5238_v37, %v6001_v1  ;;  %v3459_v44 = vpop.permute.xlu1 %3458 }
0x134e   :  { %4975 = vmatmul.mubr.msk.f32.vlgmr.msra.gmra.mxu1 %vm635_vm6, %v2597_v36 }
0x134f   :  { %4983 = vmatpush3.msra.mxu1 %v2769_v39  ;;  %4984 = vmatprep.mubr.msk.f32.mxu1 %vm5319_vm5, %v5318_v38 }
0x1350   :  { %4992 = vmatprep.subr.mxu1 %v5318_v38 }
0x1352   :  { %4985 = vmatmul.mubr.msk.f32.vlgmr.msra.gmra.mxu1 %vm635_vm6, %v2767_v2 }
0x1353   :  { %4993 = vmatpush3.msra.mxu1 %v2943_v29  ;;  %4994 = vmatprep.mubr.msk.f32.mxu1 %vm5319_vm5, %v5318_v38 }
0x1354   :  { %5002 = vmatprep.subr.mxu1 %v5318_v38 }
0x1372   :  { %v2939_v42 = vpop.xlane.xlu0 %2938 }
0x1373   :  { %5239 = vrcp.f32 %v2939_v42 }
0x1374   :  { %5241 = vrcp.f32 %v3113_v41 }
0x1376   :  { %v3285_v43 = vpop.xlane.xlu0 %3284 }
0x1377   :  { %5243 = vrcp.f32 %v3285_v43 }
0x137a   :  { %v3629_v45 = vpop.xlane.xlu0 %3628 }
0x137e   :  { %v3455_v46 = vpop.xlane.xlu1 %3454 }
0x137f   :  { %5245 = vrcp.f32 %v3455_v46  ;;  %v4032_v46 = vld [vmem:[%s6201_s11 + $0x18] sm:$0xff] }
0x1380   :  { %v5240_v47 = vpop.eup %5239  ;;  %5247 = vrcp.f32 %v3629_v45 }
0x1381   :  { %v2941_v48 = vmul.f32 %v5240_v47, %v5226_v58  ;;  %v5242_v49 = vpop.eup %5241  ;;  %v4031_v47 = vld [vmem:[%s6201_s11 + $0x10] sm:$0xff] }
0x1382   :  { %v3115_v50 = vmul.f32 %v5242_v49, %v6007_v7  ;;  %v3807_v59 = vpop.permute.xlu1 %3806  ;;  %v4029_v49 = vld [vmem:[%s6201_s11] sm:$0xff] }
0x1383   :  { %4995 = vmatmul.mubr.msk.f32.vlgmr.msra.gmra.mxu1 %vm635_vm6, %v2941_v48  ;;  %v4030_v48 = vld [vmem:[%s6201_s11 + $0x8] sm:$0xff] }
0x1384   :  { %5003 = vmatpush3.msra.mxu1 %v3117_v30  ;;  %5004 = vmatprep.mubr.msk.f32.mxu1 %vm5319_vm5, %v5318_v38  ;;  %v5244_v51 = vpop.eup %5243 }
0x1385   :  { %5012 = vmatprep.subr.mxu1 %v5318_v38  ;;  %v3287_v53 = vmul.f32 %v5244_v51, %v6017_v20 }
0x1386   :  { %v3803_v52 = vpop.xlane.xlu0 %3802 }
0x1387   :  { %5249 = vrcp.f32 %v3803_v52  ;;  %5005 = vmatmul.mubr.msk.f32.vlgmr.msra.gmra.mxu1 %vm635_vm6, %v3115_v50 }
0x1388   :  { %5013 = vmatpush3.msra.mxu1 %v3289_v31  ;;  %5014 = vmatprep.mubr.msk.f32.mxu1 %vm5319_vm5, %v5318_v38 }
0x1389   :  { %5022 = vmatprep.subr.mxu1 %v5318_v38 }
0x138a   :  { %v3633_v40 = vpop.permute.xlu0 %3632 }
0x138b   :  { %5015 = vmatmul.mubr.msk.f32.vlgmr.msra.gmra.mxu1 %vm635_vm6, %v3287_v53 }
0x138c   :  { %v5246_v54 = vpop.eup %5245  ;;  %5023 = vmatpush3.msra.mxu1 %v3459_v44  ;;  %5024 = vmatprep.mubr.msk.f32.mxu1 %vm5319_vm5, %v5318_v38 }
0x138d   :  { %5032 = vmatprep.subr.mxu1 %v5318_v38  ;;  %v3457_v55 = vmul.f32 %v5246_v54, %v5232_v14  ;;  %v5248_v56 = vpop.eup %5247 }
0x138e   :  { %v3631_v57 = vmul.f32 %v5248_v56, %v6021_v33 }
0x138f   :  { %5025 = vmatmul.mubr.msk.f32.vlgmr.msra.gmra.mxu1 %vm635_vm6, %v3457_v55 }
0x1390   :  { %5033 = vmatpush3.msra.mxu1 %v3633_v40  ;;  %5034 = vmatprep.mubr.msk.f32.mxu1 %vm5319_vm5, %v5318_v38  ;;  %v4571_v40 = vld [vmem:[%s6202_s15] ss:$0 sm:$0xff] }
0x1391   :  { %5042 = vmatprep.subr.mxu1 %v5318_v38 }
0x1393   :  { %5035 = vmatmul.mubr.msk.f32.vlgmr.msra.gmra.mxu1 %vm635_vm6, %v3631_v57 }
0x1394   :  { %v5250_v61 = vpop.eup %5249  ;;  %5043 = vmatpush3.msra.mxu1 %v3807_v59  ;;  %5044 = vmatprep.mubr.msk.f32.mxu1 %vm5319_vm5, %v5318_v38  ;;  %v4572_v59 = vld [vmem:[%s6203_s16] ss:$0 sm:$0xff] }
0x1395   :  { %v3805_v62 = vmul.f32 %v5250_v61, %v6026_v27  ;;  %v4568_v27 = vld [vmem:[%s6200_s10] ss:$0 sm:$0xff]  ;;  %5058 = vmatprep.subr.mxu1 %v4032_v46 }
0x1397   :  { %5045 = vmatmul.mubr.msk.f32.vlgmr.msra.gmra.mxu1 %vm635_vm6, %v3805_v62 }
0x1398   :  { %5059 = vmatpush3.msra.mxu1 %v4032_v46 }
0x1399   :  { %5060 = vmatprep.subr.mxu1 %v4031_v47 }
0x139a   :  { %5061 = vmatpush3.msra.mxu1 %v4031_v47 }
0x139b   :  { %5062 = vmatprep.subr.mxu1 %v4030_v48 }
0x139c   :  { %5063 = vmatpush3.msra.mxu1 %v4030_v48 }
0x139d   :  { %5064 = vmatprep.subr.mxu1 %v4029_v49 }
0x139e   :  { %5065 = vmatpush3.msra.mxu1 %v4029_v49 }
0x139f   :  { %5088 = vmatprep.subr.mxu1 %v5318_v38 }
0x140e   :  { %v2670_v1 = vpop.f32.mrf.mxu1 }
0x140f   :  { %2674 = vst.msk [vmem:[#allocation3] sm:$0xff] %vm635_vm6, %v2670_v1 }
0x1410   :  { %v4976_v3 = vpop.f32.mrf.mxu1 }
0x1412   :  { %v2840_v4 = vpop.f32.mrf.mxu1 }
0x1413   :  { %2845 = vrot.lane.b32.xlu0 %v2840_v4, %s5332_s23 }
0x1414   :  { %v4986_v5 = vpop.f32.mrf.mxu1 }
0x1443   :  { %v3014_v6 = vpop.f32.mrf.mxu1 }
0x1444   :  { %3019 = vrot.lane.b32.xlu1 %v3014_v6, %s5333_s26  ;;  %v4146_v6 = vld [vmem:[%s6204_s18 + $0x38] sm:$0xff] }
0x1445   :  { %v4996_v7 = vpop.f32.mrf.mxu1  ;;  %5069 = vmatprep.subr.mxu0 %v4146_v6 }
0x1446   :  { %v4145_v7 = vld [vmem:[%s6204_s18 + $0x30] sm:$0xff] }
0x1447   :  { %v3188_v8 = vpop.f32.mrf.mxu1 }
0x1448   :  { %3193 = vrot.lane.b32.xlu1 %v3188_v8, %s5334_s28  ;;  %v4144_v8 = vld [vmem:[%s6204_s18 + $0x28] sm:$0xff] }
0x1449   :  { %v5006_v9 = vpop.f32.mrf.mxu1 }
0x144a   :  { %v4143_v9 = vld [vmem:[%s6204_s18 + $0x20] sm:$0xff] }
0x144b   :  { %v3360_v10 = vpop.f32.mrf.mxu1 }
0x144c   :  { %3364 = vst.msk [vmem:[#allocation3 + $0x8] sm:$0xff] %vm635_vm6, %v3360_v10  ;;  %v4142_v10 = vld [vmem:[%s6204_s18 + $0x18] sm:$0xff] }
0x144d   :  { %v5016_v15 = vpop.f32.mrf.mxu1 }
0x144e   :  { %v4139_v15 = vld [vmem:[%s6204_s18] sm:$0xff] }
0x144f   :  { %v3530_v16 = vpop.f32.mrf.mxu1 }
0x1450   :  { %3535 = vrot.lane.b32.xlu0 %v3530_v16, %s5332_s23 }
0x1451   :  { %v5026_v18 = vpop.f32.mrf.mxu1 }
0x1453   :  { %v3704_v19 = vpop.f32.mrf.mxu1 }
0x1454   :  { %3709 = vrot.lane.b32.xlu0 %v3704_v19, %s5333_s26 }
0x1455   :  { %v5036_v58 = vpop.f32.mrf.mxu1 }
0x1457   :  { %v3878_v63 = vpop.f32.mrf.mxu1 }
0x1458   :  { %3883 = vrot.lane.b32.xlu1 %v3878_v63, %s5334_s28 }
0x1459   :  { %v5046_v20 = vpop.f32.mrf.mxu1 }
0x1485   :  { %v2846_v21 = vpop.permute.xlu0 %2845 }
0x1486   :  { %2848 = vst.msk [vmem:[#allocation3] sm:$0xff] %vm972_vm8, %v2846_v21 }
0x14b6   :  { %v3020_v22 = vpop.permute.xlu1 %3019 }
0x14b7   :  { %3022 = vst.msk [vmem:[#allocation3] sm:$0xff] %vm1147_vm9, %v3020_v22 }
0x14ba   :  { %v3194_v24 = vpop.permute.xlu1 %3193 }
0x14bb   :  { %3196 = vst.msk [vmem:[#allocation3] sm:$0xff] %vm1322_vm10, %v3194_v24 }
0x14c2   :  { %v3536_v12 = vpop.permute.xlu0 %3535  ;;  %v3887_v33 = vld [vmem:[#allocation3] sm:$0xff] }
0x14c3   :  { %3538 = vst.msk [vmem:[#allocation3 + $0x8] sm:$0xff] %vm972_vm8, %v3536_v12  ;;  %5055 = vmatprep.mubr.msk.f32.mxu0 %vm147_vm0, %v3887_v33 }
0x14c6   :  { %v3710_v26 = vpop.permute.xlu0 %3709 }
0x14c7   :  { %3712 = vst.msk [vmem:[#allocation3 + $0x8] sm:$0xff] %vm1147_vm9, %v3710_v26 }
0x14ca   :  { %v3884_v14 = vpop.permute.xlu1 %3883 }
0x14cb   :  { %3886 = vst.msk [vmem:[#allocation3 + $0x8] sm:$0xff] %vm1322_vm10, %v3884_v14 }
0x14d2   :  { %v3888_v0 = vld [vmem:[#allocation3 + $0x8] sm:$0xff] }
0x14d3   :  { %5056 = vmatmul.mubr.msk.f32.vlgmr.msra.gmra.mxu0 %vm147_vm0, %v3888_v0 }
0x14d4   :  { %5070 = vmatpush3.msra.mxu0 %v4146_v6  ;;  %v4363_v6 = vld [vmem:[%s5509_s4 + $0x20] sm:$0xff] }
0x14d5   :  { %5071 = vmatprep.subr.mxu0 %v4145_v7 }
0x14d6   :  { %5072 = vmatpush3.msra.mxu0 %v4145_v7  ;;  %v4362_v7 = vld [vmem:[%s5509_s4 + $0x18] sm:$0xff] }
0x14d7   :  { %5073 = vmatprep.subr.mxu0 %v4144_v8 }
0x14d8   :  { %5074 = vmatpush3.msra.mxu0 %v4144_v8  ;;  %v4361_v8 = vld [vmem:[%s5509_s4 + $0x10] sm:$0xff] }
0x14d9   :  { %5075 = vmatprep.subr.mxu0 %v4143_v9 }
0x14da   :  { %5076 = vmatpush3.msra.mxu0 %v4143_v9  ;;  %v4360_v9 = vld [vmem:[%s5509_s4 + $0x8] sm:$0xff] }
0x14db   :  { %5077 = vmatprep.subr.mxu0 %v4142_v10 }
0x14dc   :  { %5078 = vmatpush3.msra.mxu0 %v4142_v10  ;;  %v4359_v10 = vld [vmem:[%s5509_s4] sm:$0xff] }
0x14dd   :  { %5079 = vmatprep.subr.mxu0 %v4141_v11 }
0x14de   :  { %5080 = vmatpush3.msra.mxu0 %v4141_v11  ;;  %v4581_v11 = vld [vmem:[%s5504_s27] ss:$0 sm:$0xff] }
0x14df   :  { %5081 = vmatprep.subr.mxu0 %v4140_v13 }
0x14e0   :  { %5082 = vmatpush3.msra.mxu0 %v4140_v13 }
0x14e1   :  { %5083 = vmatprep.subr.mxu0 %v4139_v15 }
0x14e2   :  { %5084 = vmatpush3.msra.mxu0 %v4139_v15 }
0x1593   :  { %v5057_v28 = vpop.f32.mrf.mxu0 }
0x1594   :  { %v3978_v29 = vadd.f32 %v5057_v28, %v4568_v27 }
0x1595   :  { %v3972_v30 = vpop.f32.mrf.mxu0 }
0x1596   :  { %v6089_v31 = vadd.f32 %v3978_v29, %v5883_v23  ;;  %v3973_v32 = vadd.f32 %v4568_v27, %v3972_v30 }
0x1598   :  { %3984 = vst.msk [vmem:[#allocation2 + $0x8] sm:$0xff] %vm147_vm0, %v6089_v31  ;;  %v6094_v34 = vadd.f32 %v3973_v32, %v5887_v25  ;;  %v3988_v35 = vsel %vm147_vm0, %v6089_v31, 0.0 }
0x1599   :  { %3989 = vadd.xlane.f32.xlu1 %v3988_v35 }
0x159a   :  { %3983 = vst.msk [vmem:[#allocation2] sm:$0xff] %vm147_vm0, %v6094_v34  ;;  %v3985_v23 = vsel %vm147_vm0, %v6094_v34, 0.0 }
0x159b   :  { %3986 = vadd.xlane.f32.xlu0 %v3985_v23 }
0x1622   :  { %v3990_v36 = vpop.xlane.xlu1 %3989 }
0x1623   :  { %v3992_v37 = vmul.f32 0.03125, %v3990_v36  ;;  %v4576_v36 = vld [vmem:[%s6206_s5] ss:$0 sm:$0xff] }
0x1624   :  { %v3987_v39 = vpop.xlane.xlu0 %3986 }
0x1625   :  { %v3991_v2 = vmul.f32 0.03125, %v3987_v39  ;;  %v3994_v25 = vsub.f32 %v6089_v31, %v3992_v37 }
0x1627   :  { %v3993_v41 = vsub.f32 %v6094_v34, %v3991_v2  ;;  %v3996_v44 = vmul.f32 %v3994_v25, %v3994_v25 }
0x1629   :  { %v3995_v42 = vmul.f32 %v3993_v41, %v3993_v41  ;;  %v4000_v45 = vsel %vm147_vm0, %v3996_v44, 0.0 }
0x162b   :  { %v3997_v43 = vsel %vm147_vm0, %v3995_v42, 0.0 }
0x162c   :  { %3998 = vadd.xlane.f32.xlu0 %v3997_v43 }
0x1630   :  { %4001 = vadd.xlane.f32.xlu0 %v4000_v45 }
0x16b5   :  { %v3999_v50 = vpop.xlane.xlu0 %3998 }
0x16b6   :  { %v4003_v51 = vmul.f32 0.03125, %v3999_v50  ;;  %v4277_v50 = vld [vmem:[%s6207_s9 + $0x18] sm:$0xff] }
0x16b8   :  { %v4005_v52 = vadd.f32 1e-06, %v4003_v51  ;;  %v4276_v51 = vld [vmem:[%s6207_s9 + $0x10] sm:$0xff] }
0x16b9   :  { %v4002_v53 = vpop.xlane.xlu0 %4001 }
0x16ba   :  { %5251 = vrsqrt.f32 %v4005_v52  ;;  %v4004_v54 = vmul.f32 0.03125, %v4002_v53  ;;  %v4275_v52 = vld [vmem:[%s6207_s9 + $0x8] sm:$0xff]  ;;  %v4274_v53 = vld [vmem:[%s6207_s9] sm:$0xff] }
0x16bc   :  { %v4006_v55 = vadd.f32 1e-06, %v4004_v54 }
0x16be   :  { %5253 = vrsqrt.f32 %v4006_v55 }
0x16c7   :  { %v5252_v56 = vpop.eup %5251 }
0x16c8   :  { %v4009_v57 = vmul.f32 %v5252_v56, %v3993_v41 }
0x16ca   :  { %v4018_v61 = vmul.f32 %v4571_v40, %v4009_v57  ;;  %v4579_v57 = vld [vmem:[%s6208_s13] ss:$0 sm:$0xff] }
0x16cb   :  { %v5254_v62 = vpop.eup %5253 }
0x16cc   :  { %v4010_v1 = vmul.f32 %v5254_v62, %v3994_v25  ;;  %v4027_v3 = vadd.f32 %v4572_v59, %v4018_v61  ;;  %v4580_v61 = vld [vmem:[%s6209_s17] ss:$0 sm:$0xff] }
0x16ce   :  { %v4019_v4 = vmul.f32 %v4571_v40, %v4010_v1  ;;  %5066 = vmatprep.mubr.msk.f32.mxu1 %vm147_vm0, %v4027_v3  ;;  %v4366_v3 = vld [vmem:[%s5509_s4 + $0x38] sm:$0xff] }
0x16d0   :  { %v4028_v5 = vadd.f32 %v4572_v59, %v4019_v4  ;;  %v4365_v4 = vld [vmem:[%s5509_s4 + $0x30] sm:$0xff] }
0x16d2   :  { %5067 = vmatmul.mubr.msk.f32.vlgmr.msra.gmra.mxu1 %vm147_vm0, %v4028_v5  ;;  %v4364_v5 = vld [vmem:[%s5509_s4 + $0x28] sm:$0xff]  ;;  %s5261_s4 = scalar_lea.vmem %s4456_s25, 32 }
0x16d3   :  { %5096 = vmatprep.mubr.msk.f32.mxu1 %vm5319_vm5, %v5318_v38  ;;  %5089 = vmatpush3.msra.mxu1 %v4277_v50  ;;  %p5262_p0 = scmp.ne.s32.totalorder %s4456_s25, %s5261_s4  ;;  %p5267_p2 = scmp.lt.s32.totalorder %s5261_s4, %s5261_s4 }
0x16d4   :  { %5090 = vmatprep.subr.mxu1 %v5318_v38 }
0x16d5   :  { %5091 = vmatpush3.msra.mxu1 %v4276_v51  ;;  %p5268_p3 = por %p5267_p2, %p5266_p1 }
0x16d6   :  { %5092 = vmatprep.subr.mxu1 %v5318_v38 }
0x16d7   :  { %5093 = vmatpush3.msra.mxu1 %v4275_v52  ;;  %p5269_p4 = pnand %p5268_p3, %p5262_p0 }
0x16d8   :  { %5094 = vmatprep.subr.mxu1 %v5318_v38 }
0x16d9   :  { %5095 = vmatpush3.msra.mxu1 %v4274_v53 }
0x16da   :  { %5099 = vmatprep.subr.mxu1 %v5318_v38 }
0x1792   :  { %v5068_v16 = vpop.f32.mrf.mxu1 }
0x1793   :  { %v4118_v17 = vadd.f32 %v5068_v16, %v4573_v60 }
0x1794   :  { %v4112_v18 = vpop.f32.mrf.mxu1 }
0x1795   :  { %v4122_v19 = vmul.f32 %v4118_v17, %v4118_v17  ;;  %v4113_v58 = vadd.f32 %v4573_v60, %v4112_v18 }
0x1797   :  { %v4124_v63 = vmul.f32 %v4122_v19, %v4118_v17  ;;  %v4121_v20 = vmul.f32 %v4113_v58, %v4113_v58 }
0x1799   :  { %v4126_v21 = vmul.f32 0.044715, %v4124_v63  ;;  %v4123_v22 = vmul.f32 %v4121_v20, %v4113_v58 }
0x179b   :  { %v4128_v24 = vadd.f32 %v4126_v21, %v4118_v17  ;;  %v4125_v12 = vmul.f32 0.044715, %v4123_v22 }
0x179d   :  { %v4130_v33 = vmul.f32 0.7978846, %v4128_v24  ;;  %v4127_v26 = vadd.f32 %v4125_v12, %v4113_v58 }
0x179f   :  { %5255 = vtanh.f32 %v4130_v33  ;;  %v4129_v14 = vmul.f32 0.7978846, %v4127_v26 }
0x17a1   :  { %5257 = vtanh.f32 %v4129_v14 }
0x17ac   :  { %v5256_v0 = vpop.eup %5255 }
0x17ad   :  { %v4134_v27 = vadd.f32 1.0, %v5256_v0 }
0x17ae   :  { %v5258_v28 = vpop.eup %5257 }
0x17af   :  { %v4133_v29 = vadd.f32 1.0, %v5258_v28  ;;  %v4136_v30 = vmul.f32 0.5, %v4134_v27 }
0x17b1   :  { %v4135_v32 = vmul.f32 0.5, %v4133_v29  ;;  %v4138_v23 = vmul.f32 %v4136_v30, %v4118_v17  ;;  %v4583_v17 = vld [vmem:[%s5514_s12] ss:$0 sm:$0xff] }
0x17b3   :  { %v4137_v35 = vmul.f32 %v4135_v32, %v4113_v58 }
0x17b5   :  { %5085 = vmatprep.mubr.msk.f32.mxu0 %vm2281_vm11, %v4137_v35 }
0x17b6   :  { %5086 = vmatmul.mubr.msk.f32.vlgmr.msra.gmra.mxu0 %vm2281_vm11, %v4138_v23 }
0x1876   :  { %v5087_v37 = vpop.f32.mrf.mxu0 }
0x1877   :  { %v4232_v39 = vadd.f32 %v5087_v37, %v4576_v36 }
0x1878   :  { %v4226_v2 = vpop.f32.mrf.mxu0 }
0x1879   :  { %v4236_v25 = vadd.f32 %v4232_v39, %v6089_v31  ;;  %v4227_v41 = vadd.f32 %v4576_v36, %v4226_v2 }
0x187b   :  { %4238 = vst.msk [vmem:[#allocation2 + $0x8] sm:$0xff] %vm147_vm0, %v4236_v25  ;;  %v4235_v42 = vadd.f32 %v4227_v41, %v6094_v34 }
0x187d   :  { %4237 = vst.msk [vmem:[#allocation2] sm:$0xff] %vm147_vm0, %v4235_v42 }
0x1882   :  { %v4241_v43 = vld [vmem:[#allocation2 + $0x8] sm:$0x1] }
0x1883   :  { %4242 = vst.msk [vmem:[#allocation5 + $0x1] sm:$0x1] %vm471_vm1, %v4241_v43 }
0x1884   :  { %v4239_v44 = vld [vmem:[#allocation2] sm:$0x1] }
0x1885   :  { %4240 = vst.msk [vmem:[#allocation5] sm:$0x1] %vm471_vm1, %v4239_v44 }
0x188c   :  { %v4243_v45 = vld [vmem:[#allocation5] sm:$0x3] }
0x188d   :  { %v4245_v31 = vsel %vm4244_vm12, %v4243_v45, 0.0 }
0x188e   :  { %4246 = vadd.xlane.f32.xlu0 %v4245_v31 }
0x1917   :  { %v4247_v46 = vpop.xlane.xlu0 %4246 }
0x1918   :  { %v4248_v47 = vmul.f32 0.03125, %v4247_v46 }
0x191a   :  { %v4249_v48 = vsub.f32 %v4243_v45, %v4248_v47 }
0x191c   :  { %v4250_v34 = vmul.f32 %v4249_v48, %v4249_v48 }
0x191e   :  { %v4251_v49 = vsel %vm4244_vm12, %v4250_v34, 0.0 }
0x191f   :  { %4252 = vadd.xlane.f32.xlu1 %v4251_v49 }
0x19a8   :  { %v4253_v54 = vpop.xlane.xlu1 %4252 }
0x19a9   :  { %v4254_v55 = vmul.f32 0.03125, %v4253_v54 }
0x19ab   :  { %v4255_v56 = vadd.f32 1e-06, %v4254_v55 }
0x19ad   :  { %5259 = vrsqrt.f32 %v4255_v56 }
0x19ba   :  { %v5260_v40 = vpop.eup %5259 }
0x19bb   :  { %v4257_v59 = vmul.f32 %v5260_v40, %v4249_v48 }
0x19bd   :  { %v4265_v62 = vmul.f32 %v4579_v57, %v4257_v59 }
0x19bf   :  { %v4273_v1 = vadd.f32 %v4580_v61, %v4265_v62 }
0x19c1   :  { %5097 = vmatmul.mubr.msk.f32.vlgmr.msra.gmra.mxu1 %vm147_vm0, %v4273_v1 }
0x19c2   :  { %5100 = vmatpush3.msra.mxu1 %v4366_v3  ;;  %5115 = vmatprep.mubr.msk.f32.mxu1 %vm5319_vm5, %v5318_v38 }
0x19c3   :  { %5101 = vmatprep.subr.mxu1 %v5318_v38 }
0x19c4   :  { %5102 = vmatpush3.msra.mxu1 %v4365_v4 }
0x19c5   :  { %5103 = vmatprep.subr.mxu1 %v5318_v38 }
0x19c6   :  { %5104 = vmatpush3.msra.mxu1 %v4364_v5 }
0x19c7   :  { %5105 = vmatprep.subr.mxu1 %v5318_v38 }
0x19c8   :  { %5106 = vmatpush3.msra.mxu1 %v4363_v6 }
0x19c9   :  { %5107 = vmatprep.subr.mxu1 %v5318_v38 }
0x19ca   :  { %5108 = vmatpush3.msra.mxu1 %v4362_v7 }
0x19cb   :  { %5109 = vmatprep.subr.mxu1 %v5318_v38 }
0x19cc   :  { %5110 = vmatpush3.msra.mxu1 %v4361_v8 }
0x19cd   :  { %5111 = vmatprep.subr.mxu1 %v5318_v38 }
0x19ce   :  { %5112 = vmatpush3.msra.mxu1 %v4360_v9 }
0x19cf   :  { %5113 = vmatprep.subr.mxu1 %v5318_v38 }
0x19d0   :  { %5114 = vmatpush3.msra.mxu1 %v4359_v10 }
0x1a81   :  { %v4354_v13 = vpop.f32.mrf.mxu1 }
0x1a82   :  { %v4355_v15 = vadd.f32 %v4581_v11, %v4354_v13 }
0x1a83   :  { %v5098_v60 = vpop.f32.mrf.mxu1 }
0x1a84   :  { %v4358_v16 = vmax.f32 %v4355_v15, 0.0 }
0x1a86   :  { %5116 = vmatmul.mubr.msk.f32.vlgmr.msra.gmra.mxu1 %vm2281_vm11, %v4358_v16 }
0x1b46   :  { %v4443_v18 = vpop.f32.mrf.mxu1 }
0x1b47   :  { %v4444_v19 = vadd.f32 %v4583_v17, %v4443_v18 }
0x1b48   :  { %v5117_v58 = vpop.f32.mrf.mxu1 }
0x1b49   :  { %4448 = vst.msk [vmem:[#allocation6] sm:$0x3] %vm4447_vm13, %v4444_v19 }
0x1b4a   :  { %5272 = shalt.err (!%p5269_p4)
}
0x1b4b   :  { %4458 = dma.vmem_to_hbm [thread:$0]  %s4456_s25, 32, %s5519_s20, [#allocation7]  }
0x1b4c   :  { %5281 = dma.done.wait [#allocation7], 32  }
0x1b4d   :  { %5282 = vsyncadd [#allocation7], 4294967264 }
0x1b4e   :  { %4462 = vsyncpa [#allocation7], 1 }

</bundles_post_ra>
